<compile_context>
chip_gen: v7x
topology: tpu7x:2x2x1
jax: 0.10.0
libtpu: 0.0.40
codegen_flags: <defaults>
</compile_context>

<pallas_src>
import functools

import jax
import jax.numpy as jnp
from jax.experimental import pallas as pl
from jax.experimental.pallas import tpu as pltpu

NEG_SLOPE = 0.01          # PyTorch nn.LeakyReLU default
K_IN = 784                # 28*28 (no K padding; block == full dim)
H1 = H2 = 1024
N_OUT, N_PAD = 10, 128    # logits padded to one full lane group
N_CHUNKS = 4              # H1 split for MXU/VPU overlap
CHUNK = H1 // N_CHUNKS    # 256 (lane- and sublane-aligned slices)


def _leaky_relu(x):
    # Valid for 0 < slope < 1: max(x, slope*x) == leaky_relu(x).
    return jnp.maximum(x, NEG_SLOPE * x)


def mlp_kernel(x_ref, w1_ref, b1_ref, w2_ref, b2_ref, w3_ref, b3_ref, o_ref):
    x = x_ref[...]                                            # (tb, 784) bf16
    tb = x.shape[0]

    # Layer-2 accumulator starts at b2 (added exactly once).
    acc2 = jnp.broadcast_to(b2_ref[...], (tb, H2)).astype(jnp.float32)

    # K-chunked layers 1+2: per chunk, matmul -> bias+LeakyReLU+cast -> matmul.
    # Chunk c's VPU epilogue co-issues with chunk c+1's MXU pushes.
    for c in range(N_CHUNKS):
        lo = c * CHUNK
        h1c = jnp.dot(x, w1_ref[:, lo:lo + CHUNK],
                      preferred_element_type=jnp.float32)     # (tb, 256) f32
        a1c = _leaky_relu(h1c + b1_ref[:, lo:lo + CHUNK]).astype(jnp.bfloat16)
        acc2 = acc2 + jnp.dot(a1c, w2_ref[lo:lo + CHUNK, :],
                              preferred_element_type=jnp.float32)

    h2 = _leaky_relu(acc2).astype(jnp.bfloat16)               # (tb, 1024)

    # Layer 3: lane-dense padded N=128 (cols 10..127 are zero weights/bias).
    o_ref[...] = (
        jnp.dot(h2, w3_ref[...], preferred_element_type=jnp.float32)
        + b3_ref[...]
    ).astype(o_ref.dtype)


def prepare_kernel_params(params):
    """Cast weights to bf16; zero-pad only N (10->128). Biases stay f32."""
    w1, b1, w2, b2, w3, b3 = params
    w1p = w1.astype(jnp.bfloat16)                                        # (784, 1024)
    w2p = w2.astype(jnp.bfloat16)                                        # (1024, 1024)
    w3p = jnp.zeros((H2, N_PAD), jnp.bfloat16).at[:, :N_OUT].set(
        w3.astype(jnp.bfloat16))                                         # (1024, 128)
    b1p = b1.astype(jnp.float32)
    b2p = b2.astype(jnp.float32)
    b3p = jnp.zeros((1, N_PAD), jnp.float32).at[:, :N_OUT].set(b3.astype(jnp.float32))
    # TODO(synk): int8 (v5e/v6e) / fp8 (v7x) weight quantization with
    # per-output-channel scales folded into the f32 epilogue.
    return (w1p, b1p, w2p, b2p, w3p, b3p)


def _choose_tile(batch, batch_tile):
    """Pick the batch tile (sublane-aligned); ensure >=2 grid steps for
    moderate batches so v7x's two TensorCores both get work."""
    b8 = max(8, ((batch + 7) // 8) * 8)
    if b8 <= 128:
        return b8                      # single small tile (grid of 1)
    if b8 <= 512:
        return 128                     # >=2 steps -> megacore sharding on v7x
    return min(batch_tile, 512)        # big batches: amortize per-step overhead


@functools.partial(jax.jit, static_argnames=("batch_tile",))
def mlp_forward(x_nchw, kparams, batch_tile=512):
    """x_nchw: (B, 1, 28, 28) float32 -> logits (B, 10) float32."""
    w1, b1, w2, b2, w3, b3 = kparams
    B = x_nchw.shape[0]
    x = x_nchw.reshape(B, K_IN).astype(jnp.bfloat16)   # nn.Flatten() + bf16 stream

    tb = _choose_tile(B, batch_tile)
    b_pad = ((B + tb - 1) // tb) * tb
    if b_pad != B:                                     # skip the copy when aligned
        x = jnp.pad(x, ((0, b_pad - B), (0, 0)))

    resident = dict(pipeline_mode=pl.Buffered(1))      # single-buffer the weight set

    out = pl.pallas_call(
        mlp_kernel,
        out_shape=jax.ShapeDtypeStruct((b_pad, N_PAD), jnp.float32),
        grid=(b_pad // tb,),
        in_specs=[
            pl.BlockSpec((tb, K_IN), lambda i: (i, 0)),             # x tile (pipelined)
            pl.BlockSpec((K_IN, H1), lambda i: (0, 0), **resident),  # w1 (VMEM-resident)
            pl.BlockSpec((1, H1), lambda i: (0, 0), **resident),     # b1
            pl.BlockSpec((H1, H2), lambda i: (0, 0), **resident),    # w2
            pl.BlockSpec((1, H2), lambda i: (0, 0), **resident),     # b2
            pl.BlockSpec((H2, N_PAD), lambda i: (0, 0), **resident), # w3 (padded N)
            pl.BlockSpec((1, N_PAD), lambda i: (0, 0), **resident),  # b3 (padded N)
        ],
        out_specs=pl.BlockSpec((tb, N_PAD), lambda i: (i, 0)),
        compiler_params=pltpu.CompilerParams(
            dimension_semantics=("parallel",),   # shard batch tiles across v7x's 2 TCs
            vmem_limit_bytes=32 << 20,           # fits v7x 64 MiB/TC; plenty on v5e/v6e
        ),
    )(x, w1, b1, w2, b2, w3, b3)
    return out[:B, :N_OUT]


def init_params(key):
    """Deterministic init mimicking PyTorch Linear default (uniform +/- 1/sqrt(fan_in))."""
    def linear(k, fan_in, fan_out):
        k_w, k_b = jax.random.split(k)
        bound = 1.0 / (fan_in ** 0.5)
        w = jax.random.uniform(k_w, (fan_in, fan_out), jnp.float32, -bound, bound)
        b = jax.random.uniform(k_b, (1, fan_out), jnp.float32, -bound, bound)
        return w, b

    k1, k2, k3 = jax.random.split(key, 3)
    w1, b1 = linear(k1, K_IN, H1)
    w2, b2 = linear(k2, H1, H2)
    w3, b3 = linear(k3, H2, N_OUT)
    return (w1, b1, w2, b2, w3, b3)


def reference_forward(x_nchw, params):
    """Plain-JAX reference using the same bf16-weight / f32-accumulate recipe.
    (Intentional divergence from pure-f32 PyTorch: bf16 activations between layers.)"""
    w1, b1, w2, b2, w3, b3 = params
    x = x_nchw.reshape(x_nchw.shape[0], -1).astype(jnp.bfloat16)
    h1 = _leaky_relu(
        jnp.dot(x, w1.astype(jnp.bfloat16), preferred_element_type=jnp.float32) + b1
    ).astype(jnp.bfloat16)
    h2 = _leaky_relu(
        jnp.dot(h1, w2.astype(jnp.bfloat16), preferred_element_type=jnp.float32) + b2
    ).astype(jnp.bfloat16)
    return jnp.dot(h2, w3.astype(jnp.bfloat16), preferred_element_type=jnp.float32) + b3


if __name__ == "__main__":
    key = jax.random.PRNGKey(0)
    k_params, k_x = jax.random.split(key)

    params = init_params(k_params)
    kparams = prepare_kernel_params(params)

    # Small serving-size batch: single-tile path.
    x_small = jax.random.normal(k_x, (8, 1, 28, 28), jnp.float32)
    logits_small = jax.block_until_ready(mlp_forward(x_small, kparams))
    ref_small = reference_forward(x_small, params)
    assert logits_small.shape == (8, N_OUT), logits_small.shape
    assert jnp.allclose(logits_small, ref_small, atol=2e-2, rtol=2e-2), \
        "small-batch mismatch vs JAX reference"

    # Moderate batch: exercises batch padding (200 -> 256), grid=(2,) and
    # megacore-shardable "parallel" axis with VMEM-resident weights.
    x_med = jax.random.normal(jax.random.PRNGKey(1), (200, 1, 28, 28), jnp.float32)
    logits_med = jax.block_until_ready(mlp_forward(x_med, kparams))
    ref_med = reference_forward(x_med, params)
    assert logits_med.shape == (200, N_OUT), logits_med.shape
    assert jnp.allclose(logits_med, ref_med, atol=2e-2, rtol=2e-2), \
        "multi-tile mismatch vs JAX reference"

    print("KERNEL_OK")
</pallas_src>

<mosaic_0001>
module attributes {stable_mosaic.version = 11 : i64} {
  func.func @mlp_kernel(%arg0: i32, %arg1: memref<8x784xbf16, #tpu.memory_space<vmem>>, %arg2: memref<784x1024xbf16, #tpu.memory_space<vmem>>, %arg3: memref<1x1024xf32, #tpu.memory_space<vmem>>, %arg4: memref<1024x1024xbf16, #tpu.memory_space<vmem>>, %arg5: memref<1x1024xf32, #tpu.memory_space<vmem>>, %arg6: memref<1024x128xbf16, #tpu.memory_space<vmem>>, %arg7: memref<1x128xf32, #tpu.memory_space<vmem>>, %arg8: memref<8x128xf32, #tpu.memory_space<vmem>>) attributes {dimension_semantics = [#tpu.dimension_semantics<parallel>], iteration_bounds = array<i64: 1>, scalar_prefetch = 0 : i64, scratch_operands = 0 : i64, tpu.core_type = #tpu.core_type<tc>, window_params = [{transform_indices = @transform_0, window_bounds = array<i64: 8, 784>}, {pipeline_mode = #tpu.pipeline_mode<synchronous>, transform_indices = @transform_1, window_bounds = array<i64: 784, 1024>}, {pipeline_mode = #tpu.pipeline_mode<synchronous>, transform_indices = @transform_2, window_bounds = array<i64: 1, 1024>}, {pipeline_mode = #tpu.pipeline_mode<synchronous>, transform_indices = @transform_3, window_bounds = array<i64: 1024, 1024>}, {pipeline_mode = #tpu.pipeline_mode<synchronous>, transform_indices = @transform_4, window_bounds = array<i64: 1, 1024>}, {pipeline_mode = #tpu.pipeline_mode<synchronous>, transform_indices = @transform_5, window_bounds = array<i64: 1024, 128>}, {pipeline_mode = #tpu.pipeline_mode<synchronous>, transform_indices = @transform_6, window_bounds = array<i64: 1, 128>}, {transform_indices = @transform_7, window_bounds = array<i64: 8, 128>}]} {
    %c0 = arith.constant 0 : index
    %c0_0 = arith.constant 0 : index
    %0 = vector.load %arg1[%c0, %c0_0] : memref<8x784xbf16, #tpu.memory_space<vmem>>, vector<8x784xbf16>
    %c0_1 = arith.constant 0 : index
    %c0_2 = arith.constant 0 : index
    %1 = vector.load %arg5[%c0_1, %c0_2] : memref<1x1024xf32, #tpu.memory_space<vmem>>, vector<1x1024xf32>
    %2 = vector.shape_cast %1 : vector<1x1024xf32> to vector<1x1024xf32>
    %3 = vector.broadcast %2 : vector<1x1024xf32> to vector<8x1024xf32>
    %c0_3 = arith.constant 0 : index
    %c0_4 = arith.constant 0 : index
    %4 = vector.load %arg2[%c0_3, %c0_4] : memref<784x1024xbf16, #tpu.memory_space<vmem>>, vector<784x256xbf16>
    %cst = arith.constant dense<0.000000e+00> : vector<8x256xf32>
    %5 = tpu.matmul %0, %4, %cst {dimension_numbers = #tpu.dot_dimension_numbers<[1], [0], [0], [1], [0, 0, 1, 1], [], []>} : vector<8x784xbf16>, vector<784x256xbf16>, vector<8x256xf32> -> vector<8x256xf32>
    %c0_5 = arith.constant 0 : index
    %c0_6 = arith.constant 0 : index
    %6 = vector.load %arg3[%c0_5, %c0_6] : memref<1x1024xf32, #tpu.memory_space<vmem>>, vector<1x256xf32>
    %7 = vector.broadcast %6 : vector<1x256xf32> to vector<8x256xf32>
    %8 = arith.addf %5, %7 : vector<8x256xf32>
    %cst_7 = arith.constant 0.00999999977 : f32
    %9 = vector.broadcast %cst_7 : f32 to vector<8x256xf32>
    %10 = arith.mulf %9, %8 : vector<8x256xf32>
    %11 = arith.maximumf %8, %10 : vector<8x256xf32>
    %12 = arith.truncf %11 : vector<8x256xf32> to vector<8x256xbf16>
    %c0_8 = arith.constant 0 : index
    %c0_9 = arith.constant 0 : index
    %13 = vector.load %arg4[%c0_8, %c0_9] : memref<1024x1024xbf16, #tpu.memory_space<vmem>>, vector<256x1024xbf16>
    %cst_10 = arith.constant dense<0.000000e+00> : vector<8x1024xf32>
    %14 = tpu.matmul %12, %13, %cst_10 {dimension_numbers = #tpu.dot_dimension_numbers<[1], [0], [0], [1], [0, 0, 1, 1], [], []>} : vector<8x256xbf16>, vector<256x1024xbf16>, vector<8x1024xf32> -> vector<8x1024xf32>
    %15 = arith.addf %3, %14 : vector<8x1024xf32>
    %c0_11 = arith.constant 0 : index
    %c256 = arith.constant 256 : index
    %16 = vector.load %arg2[%c0_11, %c256] : memref<784x1024xbf16, #tpu.memory_space<vmem>>, vector<784x256xbf16>
    %cst_12 = arith.constant dense<0.000000e+00> : vector<8x256xf32>
    %17 = tpu.matmul %0, %16, %cst_12 {dimension_numbers = #tpu.dot_dimension_numbers<[1], [0], [0], [1], [0, 0, 1, 1], [], []>} : vector<8x784xbf16>, vector<784x256xbf16>, vector<8x256xf32> -> vector<8x256xf32>
    %c0_13 = arith.constant 0 : index
    %c256_14 = arith.constant 256 : index
    %18 = vector.load %arg3[%c0_13, %c256_14] : memref<1x1024xf32, #tpu.memory_space<vmem>>, vector<1x256xf32>
    %19 = vector.broadcast %18 : vector<1x256xf32> to vector<8x256xf32>
    %20 = arith.addf %17, %19 : vector<8x256xf32>
    %cst_15 = arith.constant 0.00999999977 : f32
    %21 = vector.broadcast %cst_15 : f32 to vector<8x256xf32>
    %22 = arith.mulf %21, %20 : vector<8x256xf32>
    %23 = arith.maximumf %20, %22 : vector<8x256xf32>
    %24 = arith.truncf %23 : vector<8x256xf32> to vector<8x256xbf16>
    %c256_16 = arith.constant 256 : index
    %c0_17 = arith.constant 0 : index
    %25 = vector.load %arg4[%c256_16, %c0_17] : memref<1024x1024xbf16, #tpu.memory_space<vmem>>, vector<256x1024xbf16>
    %cst_18 = arith.constant dense<0.000000e+00> : vector<8x1024xf32>
    %26 = tpu.matmul %24, %25, %cst_18 {dimension_numbers = #tpu.dot_dimension_numbers<[1], [0], [0], [1], [0, 0, 1, 1], [], []>} : vector<8x256xbf16>, vector<256x1024xbf16>, vector<8x1024xf32> -> vector<8x1024xf32>
    %27 = arith.addf %15, %26 : vector<8x1024xf32>
    %c0_19 = arith.constant 0 : index
    %c512 = arith.constant 512 : index
    %28 = vector.load %arg2[%c0_19, %c512] : memref<784x1024xbf16, #tpu.memory_space<vmem>>, vector<784x256xbf16>
    %cst_20 = arith.constant dense<0.000000e+00> : vector<8x256xf32>
    %29 = tpu.matmul %0, %28, %cst_20 {dimension_numbers = #tpu.dot_dimension_numbers<[1], [0], [0], [1], [0, 0, 1, 1], [], []>} : vector<8x784xbf16>, vector<784x256xbf16>, vector<8x256xf32> -> vector<8x256xf32>
    %c0_21 = arith.constant 0 : index
    %c512_22 = arith.constant 512 : index
    %30 = vector.load %arg3[%c0_21, %c512_22] : memref<1x1024xf32, #tpu.memory_space<vmem>>, vector<1x256xf32>
    %31 = vector.broadcast %30 : vector<1x256xf32> to vector<8x256xf32>
    %32 = arith.addf %29, %31 : vector<8x256xf32>
    %cst_23 = arith.constant 0.00999999977 : f32
    %33 = vector.broadcast %cst_23 : f32 to vector<8x256xf32>
    %34 = arith.mulf %33, %32 : vector<8x256xf32>
    %35 = arith.maximumf %32, %34 : vector<8x256xf32>
    %36 = arith.truncf %35 : vector<8x256xf32> to vector<8x256xbf16>
    %c512_24 = arith.constant 512 : index
    %c0_25 = arith.constant 0 : index
    %37 = vector.load %arg4[%c512_24, %c0_25] : memref<1024x1024xbf16, #tpu.memory_space<vmem>>, vector<256x1024xbf16>
    %cst_26 = arith.constant dense<0.000000e+00> : vector<8x1024xf32>
    %38 = tpu.matmul %36, %37, %cst_26 {dimension_numbers = #tpu.dot_dimension_numbers<[1], [0], [0], [1], [0, 0, 1, 1], [], []>} : vector<8x256xbf16>, vector<256x1024xbf16>, vector<8x1024xf32> -> vector<8x1024xf32>
    %39 = arith.addf %27, %38 : vector<8x1024xf32>
    %c0_27 = arith.constant 0 : index
    %c768 = arith.constant 768 : index
    %40 = vector.load %arg2[%c0_27, %c768] : memref<784x1024xbf16, #tpu.memory_space<vmem>>, vector<784x256xbf16>
    %cst_28 = arith.constant dense<0.000000e+00> : vector<8x256xf32>
    %41 = tpu.matmul %0, %40, %cst_28 {dimension_numbers = #tpu.dot_dimension_numbers<[1], [0], [0], [1], [0, 0, 1, 1], [], []>} : vector<8x784xbf16>, vector<784x256xbf16>, vector<8x256xf32> -> vector<8x256xf32>
    %c0_29 = arith.constant 0 : index
    %c768_30 = arith.constant 768 : index
    %42 = vector.load %arg3[%c0_29, %c768_30] : memref<1x1024xf32, #tpu.memory_space<vmem>>, vector<1x256xf32>
    %43 = vector.broadcast %42 : vector<1x256xf32> to vector<8x256xf32>
    %44 = arith.addf %41, %43 : vector<8x256xf32>
    %cst_31 = arith.constant 0.00999999977 : f32
    %45 = vector.broadcast %cst_31 : f32 to vector<8x256xf32>
    %46 = arith.mulf %45, %44 : vector<8x256xf32>
    %47 = arith.maximumf %44, %46 : vector<8x256xf32>
    %48 = arith.truncf %47 : vector<8x256xf32> to vector<8x256xbf16>
    %c768_32 = arith.constant 768 : index
    %c0_33 = arith.constant 0 : index
    %49 = vector.load %arg4[%c768_32, %c0_33] : memref<1024x1024xbf16, #tpu.memory_space<vmem>>, vector<256x1024xbf16>
    %cst_34 = arith.constant dense<0.000000e+00> : vector<8x1024xf32>
    %50 = tpu.matmul %48, %49, %cst_34 {dimension_numbers = #tpu.dot_dimension_numbers<[1], [0], [0], [1], [0, 0, 1, 1], [], []>} : vector<8x256xbf16>, vector<256x1024xbf16>, vector<8x1024xf32> -> vector<8x1024xf32>
    %51 = arith.addf %39, %50 : vector<8x1024xf32>
    %cst_35 = arith.constant 0.00999999977 : f32
    %52 = vector.broadcast %cst_35 : f32 to vector<8x1024xf32>
    %53 = arith.mulf %52, %51 : vector<8x1024xf32>
    %54 = arith.maximumf %51, %53 : vector<8x1024xf32>
    %55 = arith.truncf %54 : vector<8x1024xf32> to vector<8x1024xbf16>
    %c0_36 = arith.constant 0 : index
    %c0_37 = arith.constant 0 : index
    %56 = vector.load %arg6[%c0_36, %c0_37] : memref<1024x128xbf16, #tpu.memory_space<vmem>>, vector<1024x128xbf16>
    %cst_38 = arith.constant dense<0.000000e+00> : vector<8x128xf32>
    %57 = tpu.matmul %55, %56, %cst_38 {dimension_numbers = #tpu.dot_dimension_numbers<[1], [0], [0], [1], [0, 0, 1, 1], [], []>} : vector<8x1024xbf16>, vector<1024x128xbf16>, vector<8x128xf32> -> vector<8x128xf32>
    %c0_39 = arith.constant 0 : index
    %c0_40 = arith.constant 0 : index
    %58 = vector.load %arg7[%c0_39, %c0_40] : memref<1x128xf32, #tpu.memory_space<vmem>>, vector<1x128xf32>
    %59 = vector.broadcast %58 : vector<1x128xf32> to vector<8x128xf32>
    %60 = arith.addf %57, %59 : vector<8x128xf32>
    %c0_41 = arith.constant 0 : index
    %c0_42 = arith.constant 0 : index
    %61 = vector.load %arg8[%c0_41, %c0_42] : memref<8x128xf32, #tpu.memory_space<vmem>>, vector<8x128xf32>
    tpu.vector_store %arg8[%c0_41, %c0_42], %60 {strides = array<i32>} : memref<8x128xf32, #tpu.memory_space<vmem>>, vector<8x128xf32>,
    return
  }
  func.func @transform_0(%arg0: i32) -> (i32, i32) {
    %c0_i32 = arith.constant 0 : i32
    %c0_i32_0 = arith.constant 0 : i32
    return %arg0, %c0_i32 : i32, i32
  }
  func.func @transform_1(%arg0: i32) -> (i32, i32) {
    %c0_i32 = arith.constant 0 : i32
    %c0_i32_0 = arith.constant 0 : i32
    %c0_i32_1 = arith.constant 0 : i32
    return %c0_i32, %c0_i32_0 : i32, i32
  }
  func.func @transform_2(%arg0: i32) -> (i32, i32) {
    %c0_i32 = arith.constant 0 : i32
    %c0_i32_0 = arith.constant 0 : i32
    %c0_i32_1 = arith.constant 0 : i32
    return %c0_i32, %c0_i32_0 : i32, i32
  }
  func.func @transform_3(%arg0: i32) -> (i32, i32) {
    %c0_i32 = arith.constant 0 : i32
    %c0_i32_0 = arith.constant 0 : i32
    %c0_i32_1 = arith.constant 0 : i32
    return %c0_i32, %c0_i32_0 : i32, i32
  }
  func.func @transform_4(%arg0: i32) -> (i32, i32) {
    %c0_i32 = arith.constant 0 : i32
    %c0_i32_0 = arith.constant 0 : i32
    %c0_i32_1 = arith.constant 0 : i32
    return %c0_i32, %c0_i32_0 : i32, i32
  }
  func.func @transform_5(%arg0: i32) -> (i32, i32) {
    %c0_i32 = arith.constant 0 : i32
    %c0_i32_0 = arith.constant 0 : i32
    %c0_i32_1 = arith.constant 0 : i32
    return %c0_i32, %c0_i32_0 : i32, i32
  }
  func.func @transform_6(%arg0: i32) -> (i32, i32) {
    %c0_i32 = arith.constant 0 : i32
    %c0_i32_0 = arith.constant 0 : i32
    %c0_i32_1 = arith.constant 0 : i32
    return %c0_i32, %c0_i32_0 : i32, i32
  }
  func.func @transform_7(%arg0: i32) -> (i32, i32) {
    %c0_i32 = arith.constant 0 : i32
    %c0_i32_0 = arith.constant 0 : i32
    return %arg0, %c0_i32 : i32, i32
  }
}

</mosaic_0001>

<bundles_post_ra>
// kernel: mlp_forward.1
= control target key start
LH: loop header
LB: loop body
LE: loop exit
PB: predicated region body
PF: predicated region fallthrough
CT: control target
= control target key end

     0   :  { %12 = vsyncpa [#allocation3], 0  ;;  %s9505_s0 = inlined_call_operand.vmem [shape: bf16[8,784], index: 0, kind: input, shape index: {}]   ;;  %s9506_s1 = inlined_call_operand.hbm [shape: bf16[784,1024], index: 1, kind: input, shape index: {}]   ;;  %s9507_s2 = inlined_call_operand.hbm [shape: f32[1,1024], index: 2, kind: input, shape index: {}]   ;;  %s9508_s3 = inlined_call_operand.hbm [shape: bf16[1024,1024], index: 3, kind: input, shape index: {}]   ;;  %s9509_s4 = inlined_call_operand.hbm [shape: f32[1,1024], index: 4, kind: input, shape index: {}]   ;;  %s9510_s5 = inlined_call_operand.hbm [shape: bf16[1024,128], index: 5, kind: input, shape index: {}]   ;;  %s9511_s6 = inlined_call_operand.hbm [shape: f32[1,128], index: 6, kind: input, shape index: {}]   ;;  %s9512_s7 = inlined_call_operand.hbm [shape: f32[8,128], index: 7, kind: output, shape index: {}]  }
   0x1   :  { %13 = vsyncpa [#allocation6], 0 }
   0x2   :  { %14 = vsyncpa [#allocation9], 0 }
   0x3   :  { %15 = vsyncpa [#allocation12], 0 }
   0x4   :  { %16 = vsyncpa [#allocation4], 0  ;;  %s9163_s24 = smov [#allocation5]   ;;  %s9164_s26 = smov [#allocation8]  }
   0x5   :  { %s37_s25 = sshll.u32 %s9163_s24, 4  ;;  %s59_s27 = sshll.u32 %s9164_s26, 4  ;;  %s38_s25 = int_to_ptr.vmem [resolvable:$true] %s37_s25  ;;  %s60_s27 = int_to_ptr.vmem [resolvable:$true] %s59_s27 }
   0x6   :  { %s8999_s30 = scalar_lea.hbm %s9507_s2, 128 }
   0x7   :  { %p9000_p0 = scmp.ne.s32.totalorder %s9507_s2, %s8999_s30  ;;  %p9003_p1 = scmp.lt.u32.totalorder %s8999_s30, %s9507_s2 }
   0x9   :  { %p9005_p2 = pnand %p9003_p1, %p9000_p0 }
   0xb   :  { %9008 = shalt.err (!%p9005_p2)
}
   0xc   :  { %s9009_s12 = scalar_lea.vmem %s38_s25, 128  ;;  %p9014_p4 = scmp.lt.s32.totalorder %s38_s25, %s38_s25 }
   0xd   :  { %p9010_p3 = scmp.ne.s32.totalorder %s38_s25, %s9009_s12  ;;  %p9015_p5 = scmp.lt.s32.totalorder %s9009_s12, %s9009_s12 }
   0xf   :  { %p9016_p6 = por %p9015_p5, %p9014_p4 }
  0x11   :  { %p9017_p7 = pnand %p9016_p6, %p9010_p3 }
  0x13   :  { %9020 = shalt.err (!%p9017_p7)
}
  0x14   :  { %40 = dma.hbm_to_vmem [thread:$0]  %s9507_s2, 128, %s38_s25, [#allocation6]  }
  0x15   :  { %s9021_s17 = scalar_lea.hbm %s9509_s4, 128 }
  0x16   :  { %p9022_p8 = scmp.ne.s32.totalorder %s9509_s4, %s9021_s17  ;;  %p9025_p9 = scmp.lt.u32.totalorder %s9021_s17, %s9509_s4 }
  0x18   :  { %p9027_p10 = pnand %p9025_p9, %p9022_p8 }
  0x1a   :  { %9030 = shalt.err (!%p9027_p10)
}
  0x1b   :  { %s9031_s22 = scalar_lea.vmem %s60_s27, 128  ;;  %p9036_p12 = scmp.lt.s32.totalorder %s60_s27, %s60_s27 }
  0x1c   :  { %p9032_p11 = scmp.ne.s32.totalorder %s60_s27, %s9031_s22  ;;  %p9037_p13 = scmp.lt.s32.totalorder %s9031_s22, %s9031_s22 }
  0x1e   :  { %p9038_p0 = por %p9037_p13, %p9036_p12 }
  0x20   :  { %p9039_p1 = pnand %p9038_p0, %p9032_p11 }
  0x22   :  { %9042 = shalt.err (!%p9039_p1)
}
  0x23   :  { %62 = dma.hbm_to_vmem [thread:$0]  %s9509_s4, 128, %s60_s27, [#allocation9]  }
  0x24   :  { %s9165_s24 = smov [#allocation2]   ;;  %s9043_s29 = scalar_lea.hbm %s9506_s1, 50176 }
  0x25   :  { %s24_s25 = sshll.u32 %s9165_s24, 4  ;;  %p9044_p2 = scmp.ne.s32.totalorder %s9506_s1, %s9043_s29  ;;  %s25_s25 = int_to_ptr.vmem [resolvable:$true] %s24_s25 }
  0x26   :  { %p9047_p3 = scmp.lt.u32.totalorder %s9043_s29, %s9506_s1 }
  0x28   :  { %p9049_p4 = pnand %p9047_p3, %p9044_p2 }
  0x2a   :  { %9052 = shalt.err (!%p9049_p4)
}
  0x2b   :  { %s9053_s11 = scalar_lea.vmem %s25_s25, 50176  ;;  %p9058_p6 = scmp.lt.s32.totalorder %s25_s25, %s25_s25 }
  0x2c   :  { %p9054_p5 = scmp.ne.s32.totalorder %s25_s25, %s9053_s11  ;;  %p9059_p7 = scmp.lt.s32.totalorder %s9053_s11, %s9053_s11 }
  0x2e   :  { %p9060_p8 = por %p9059_p7, %p9058_p6 }
  0x30   :  { %p9061_p9 = pnand %p9060_p8, %p9054_p5 }
  0x32   :  { %9064 = shalt.err (!%p9061_p9)
}
  0x33   :  { %s9166_s4 = smov 512   ;;  %s9167_s27 = smov 32  }
  0x34   :  { %30 = dma.hbm_to_vmem [thread:$0]  %s9506_s1, 50176, %s25_s25, [#allocation3], %s9166_s4, %s9166_s4, %s9167_s27  }
  0x35   :  { %s9168_s14 = smov [#allocation7]   ;;  %s9169_s16 = smov [#allocation10]  }
  0x36   :  { %s46_s15 = sshll.u32 %s9168_s14, 4  ;;  %s68_s17 = sshll.u32 %s9169_s16, 4  ;;  %s47_s15 = int_to_ptr.vmem [resolvable:$true] %s46_s15  ;;  %s69_s17 = int_to_ptr.vmem [resolvable:$true] %s68_s17 }
  0x37   :  { %s9065_s20 = scalar_lea.hbm %s9508_s3, 65536 }
  0x38   :  { %p9066_p10 = scmp.ne.s32.totalorder %s9508_s3, %s9065_s20  ;;  %p9069_p11 = scmp.lt.u32.totalorder %s9065_s20, %s9508_s3 }
  0x3a   :  { %p9071_p12 = pnand %p9069_p11, %p9066_p10 }
  0x3c   :  { %9074 = shalt.err (!%p9071_p12)
}
  0x3d   :  { %s9075_s1 = scalar_lea.vmem %s47_s15, 65536  ;;  %p9080_p0 = scmp.lt.s32.totalorder %s47_s15, %s47_s15 }
  0x3e   :  { %p9076_p13 = scmp.ne.s32.totalorder %s47_s15, %s9075_s1  ;;  %p9081_p1 = scmp.lt.s32.totalorder %s9075_s1, %s9075_s1 }
  0x40   :  { %p9082_p2 = por %p9081_p1, %p9080_p0 }
  0x42   :  { %p9083_p3 = pnand %p9082_p2, %p9076_p13 }
  0x44   :  { %9086 = shalt.err (!%p9083_p3)
}
  0x45   :  { %52 = dma.hbm_to_vmem [thread:$0]  %s9508_s3, 65536, %s47_s15, [#allocation6], %s9166_s4, %s9166_s4, %s9167_s27  }
  0x46   :  { %s9087_s29 = scalar_lea.hbm %s9510_s5, 8192 }
  0x47   :  { %p9088_p4 = scmp.ne.s32.totalorder %s9510_s5, %s9087_s29  ;;  %p9091_p5 = scmp.lt.u32.totalorder %s9087_s29, %s9510_s5 }
  0x49   :  { %p9093_p6 = pnand %p9091_p5, %p9088_p4 }
  0x4b   :  { %9096 = shalt.err (!%p9093_p6)
}
  0x4c   :  { %s9097_s11 = scalar_lea.vmem %s69_s17, 8192  ;;  %p9102_p8 = scmp.lt.s32.totalorder %s69_s17, %s69_s17 }
  0x4d   :  { %p9098_p7 = scmp.ne.s32.totalorder %s69_s17, %s9097_s11  ;;  %p9103_p9 = scmp.lt.s32.totalorder %s9097_s11, %s9097_s11 }
  0x4f   :  { %p9104_p10 = por %p9103_p9, %p9102_p8 }
  0x51   :  { %p9105_p11 = pnand %p9104_p10, %p9098_p7 }
  0x53   :  { %9108 = shalt.err (!%p9105_p11)
}
  0x54   :  { %s9170_s3 = smov 64   ;;  %s9171_s4 = smov 4  }
  0x55   :  { %74 = dma.hbm_to_vmem [thread:$0]  %s9510_s5, 8192, %s69_s17, [#allocation9], %s9170_s3, %s9170_s3, %s9171_s4  }
  0x56   :  { %s9172_s13 = smov [#allocation11]   ;;  %s9109_s18 = scalar_lea.hbm %s9511_s6, 16 }
  0x57   :  { %s81_s14 = sshll.u32 %s9172_s13, 4  ;;  %p9110_p12 = scmp.ne.s32.totalorder %s9511_s6, %s9109_s18  ;;  %s82_s14 = int_to_ptr.vmem [resolvable:$true] %s81_s14 }
  0x58   :  { %p9113_p13 = scmp.lt.u32.totalorder %s9109_s18, %s9511_s6 }
  0x5a   :  { %p9115_p0 = pnand %p9113_p13, %p9110_p12 }
  0x5c   :  { %9118 = shalt.err (!%p9115_p0)
}
  0x5d   :  { %s9119_s2 = scalar_lea.vmem %s82_s14, 16  ;;  %s9123_s5 = scalar_lea.vmem %s82_s14, 32 }
  0x5e   :  { %p9120_p1 = scmp.ne.s32.totalorder %s82_s14, %s9119_s2  ;;  %p9124_p2 = scmp.lt.s32.totalorder %s82_s14, %s82_s14 }
  0x5f   :  { %p9125_p3 = scmp.lt.s32.totalorder %s9123_s5, %s9119_s2 }
  0x61   :  { %p9126_p4 = por %p9125_p3, %p9124_p2 }
  0x63   :  { %p9127_p5 = pnand %p9126_p4, %p9120_p1 }
  0x65   :  { %9130 = shalt.err (!%p9127_p5)
}
  0x66   :  { %84 = dma.hbm_to_vmem [thread:$0]  %s9511_s6, 16, %s82_s14, [#allocation12]  }
  0x67   :  { %9153 = dma.done.wait [#allocation3], 50176  }
  0x68   :  { %9154 = vsyncadd [#allocation3], 4294917120 }
  0x69   :  { %9155 = dma.done.wait [#allocation6], 65664  }
  0x6a   :  { %9156 = vsyncadd [#allocation6], 4294901632 }
  0x6b   :  { %9157 = dma.done.wait [#allocation9], 8320  }
  0x6c   :  { %9158 = vsyncadd [#allocation9], 4294958976 }
  0x6d   :  { %9159 = dma.done.wait [#allocation12], 16  }
  0x6e   :  { %9160 = vsyncadd [#allocation12], 4294967280  ;;  %v150_v0 = vld [vmem:[#allocation2] sm:$0xff]  ;;  %vm774_vm0 = vcmask 130048  }
  0x6f   :  { %v151_v1 = vld [vmem:[#allocation2 + $0x20] sm:$0xff] }
  0x70   :  { %v152_v2 = vld [vmem:[#allocation2 + $0x40] sm:$0xff]  ;;  %v7748_v3 = vcombine.high %v150_v0, %v151_v1  ;;  %v7747_v4 = vcombine.low %v150_v0, %v151_v1 }
  0x71   :  { %v153_v5 = vld [vmem:[#allocation2 + $0x60] sm:$0xff] }
  0x72   :  { %v7750_v6 = vcombine.high %v152_v2, %v153_v5  ;;  %v154_v7 = vld [vmem:[#allocation2 + $0x80] sm:$0xff]  ;;  %778 = vmatprep.subr.bf16.mxu0 %v7748_v3  ;;  %v7749_v9 = vcombine.low %v152_v2, %v153_v5 }
  0x73   :  { %v155_v8 = vld [vmem:[#allocation2 + $0xa0] sm:$0xff]  ;;  %779 = vmatpush1.bf16.msra.mxu0 %v7747_v4 }
  0x74   :  { %780 = vmatprep.subr.bf16.mxu0 %v7750_v6  ;;  %v7752_v10 = vcombine.high %v154_v7, %v155_v8  ;;  %v156_v11 = vld [vmem:[#allocation2 + $0xc0] sm:$0xff]  ;;  %v7751_v13 = vcombine.low %v154_v7, %v155_v8  ;;  %v9300_v8 = vld [vmem:[%s9505_s0 + $0x8] sm:$0xff] }
  0x75   :  { %v157_v12 = vld [vmem:[#allocation2 + $0xe0] sm:$0xff] }
  0x76   :  { %v7754_v14 = vcombine.high %v156_v11, %v157_v12  ;;  %v158_v15 = vld [vmem:[#allocation2 + $0x100] sm:$0xff]  ;;  %v7753_v19 = vcombine.low %v156_v11, %v157_v12 }
  0x77   :  { %781 = vmatpush1.bf16.msra.mxu0 %v7749_v9  ;;  %v159_v16 = vld [vmem:[#allocation2 + $0x120] sm:$0xff] }
  0x78   :  { %782 = vmatprep.subr.bf16.mxu0 %v7752_v10  ;;  %v9290_v17 = vld [vmem:[%s9505_s0] sm:$0xff]  ;;  %v7756_v20 = vcombine.high %v158_v15, %v159_v16  ;;  %v7755_v23 = vcombine.low %v158_v15, %v159_v16  ;;  %v9308_v16 = vcombine.high %v9300_v8, %v9300_v8 }
  0x79   :  { %v9294_v18 = vcombine.high %v9290_v17, %v9290_v17  ;;  %v160_v21 = vld [vmem:[#allocation2 + $0x140] sm:$0xff]  ;;  %v9304_v12 = vcombine.low %v9290_v17, %v9290_v17  ;;  %v949_v17 = vld [vmem:[#allocation7 + $0x8] sm:$0xff] }
  0x7a   :  { %v161_v22 = vld [vmem:[#allocation2 + $0x160] sm:$0xff] }
  0x7b   :  { %783 = vmatpush1.bf16.msra.mxu0 %v7751_v13  ;;  %810 = vmatprep.mubr.bf16.mxu0 %v9294_v18  ;;  %v7758_v24 = vcombine.high %v160_v21, %v161_v22  ;;  %v162_v25 = vld [vmem:[#allocation2 + $0x180] sm:$0xff]  ;;  %v7757_v27 = vcombine.low %v160_v21, %v161_v22  ;;  %v9173_v21 = vmov 0  }
  0x7c   :  { %784 = vmatprep.subr.bf16.mxu0 %v7754_v14  ;;  %v163_v26 = vld [vmem:[#allocation2 + $0x1a0] sm:$0xff]  ;;  %933 = vmatprep.mubr.bf16.mxu1 %v9173_v21 }
  0x7d   :  { %v7760_v28 = vcombine.high %v162_v25, %v163_v26  ;;  %v164_v29 = vld [vmem:[#allocation2 + $0x1c0] sm:$0xff]  ;;  %v7759_v31 = vcombine.low %v162_v25, %v163_v26  ;;  %v953_v25 = vld [vmem:[#allocation7 + $0x28] sm:$0xff] }
  0x7e   :  { %v165_v30 = vld [vmem:[#allocation2 + $0x1e0] sm:$0xff] }
  0x7f   :  { %785 = vmatpush1.bf16.msra.mxu0 %v7753_v19  ;;  %v7762_v32 = vcombine.high %v164_v29, %v165_v30  ;;  %v166_v33 = vld [vmem:[#allocation2 + $0x200] sm:$0xff]  ;;  %v7761_v35 = vcombine.low %v164_v29, %v165_v30  ;;  %v8931_v19 = vld [vmem:[%s9505_s0 + $0x18] ss:$0 sps:$4 sm:$0xff]   ;;  %v957_v29 = vld [vmem:[#allocation7 + $0x48] sm:$0xff] }
  0x80   :  { %786 = vmatprep.subr.bf16.mxu0 %v7756_v20  ;;  %v167_v34 = vld [vmem:[#allocation2 + $0x220] sm:$0xff]  ;;  %v961_v30 = vld [vmem:[#allocation7 + $0x68] sm:$0xff] }
  0x81   :  { %v168_v36 = vld [vmem:[#allocation2 + $0x240] sm:$0xff]  ;;  %v7764_v38 = vcombine.high %v166_v33, %v167_v34  ;;  %v7763_v39 = vcombine.low %v166_v33, %v167_v34 }
  0x82   :  { %v169_v37 = vld [vmem:[#allocation2 + $0x260] sm:$0xff] }
  0x83   :  { %787 = vmatpush1.bf16.msra.mxu0 %v7755_v23  ;;  %v170_v40 = vld [vmem:[#allocation2 + $0x280] sm:$0xff]  ;;  %v7766_v42 = vcombine.high %v168_v36, %v169_v37  ;;  %v7765_v43 = vcombine.low %v168_v36, %v169_v37  ;;  %v965_v37 = vld [vmem:[#allocation7 + $0x88] sm:$0xff] }
  0x84   :  { %788 = vmatprep.subr.bf16.mxu0 %v7758_v24  ;;  %v171_v41 = vld [vmem:[#allocation2 + $0x2a0] sm:$0xff] }
  0x85   :  { %v172_v44 = vld [vmem:[#allocation2 + $0x2c0] sm:$0xff]  ;;  %v7768_v46 = vcombine.high %v170_v40, %v171_v41  ;;  %v7767_v47 = vcombine.low %v170_v40, %v171_v41 }
  0x86   :  { %v173_v45 = vld [vmem:[#allocation2 + $0x2e0] sm:$0xff] }
  0x87   :  { %789 = vmatpush1.bf16.msra.mxu0 %v7757_v27  ;;  %v174_v48 = vld [vmem:[#allocation2 + $0x300] sm:$0xff]  ;;  %v7770_v50 = vcombine.high %v172_v44, %v173_v45  ;;  %v7769_v51 = vcombine.low %v172_v44, %v173_v45  ;;  %v7848_v27 = vcombine.low %v949_v17, %v953_v25  ;;  %v973_v45 = vld [vmem:[#allocation7 + $0xc8] sm:$0xff] }
  0x88   :  { %790 = vmatprep.subr.bf16.mxu0 %v7760_v28  ;;  %v175_v49 = vld [vmem:[#allocation2 + $0x320] sm:$0xff]  ;;  %v7849_v28 = vcombine.high %v949_v17, %v953_v25  ;;  %v1017_v25 = vld [vmem:[#allocation7 + $0x228] sm:$0xff] }
  0x89   :  { %v176_v52 = vld [vmem:[#allocation2 + $0x340] sm:$0xff]  ;;  %v7772_v54 = vcombine.high %v174_v48, %v175_v49  ;;  %v7771_v55 = vcombine.low %v174_v48, %v175_v49 }
  0x8a   :  { %v177_v53 = vld [vmem:[#allocation2 + $0x360] sm:$0xff] }
  0x8b   :  { %791 = vmatpush1.bf16.msra.mxu0 %v7759_v31  ;;  %v178_v56 = vld [vmem:[#allocation2 + $0x380] sm:$0xff]  ;;  %v7774_v58 = vcombine.high %v176_v52, %v177_v53  ;;  %v7773_v59 = vcombine.low %v176_v52, %v177_v53  ;;  %v7857_v31 = vcombine.high %v957_v29, %v961_v30  ;;  %v981_v53 = vld [vmem:[#allocation7 + $0x108] sm:$0xff] }
  0x8c   :  { %792 = vmatprep.subr.bf16.mxu0 %v7762_v32  ;;  %v179_v57 = vld [vmem:[#allocation2 + $0x3a0] sm:$0xff] }
  0x8d   :  { %v180_v60 = vld [vmem:[#allocation2 + $0x3c0] sm:$0xff]  ;;  %v7776_v62 = vcombine.high %v178_v56, %v179_v57  ;;  %v7775_v63 = vcombine.low %v178_v56, %v179_v57 }
  0x8e   :  { %v181_v61 = vld [vmem:[#allocation2 + $0x3e0] sm:$0xff] }
  0x8f   :  { %793 = vmatpush1.bf16.msra.mxu0 %v7761_v35  ;;  %v182_v0 = vld [vmem:[#allocation2 + $0x400] sm:$0xff]  ;;  %v7778_v2 = vcombine.high %v180_v60, %v181_v61  ;;  %v7777_v5 = vcombine.low %v180_v60, %v181_v61  ;;  %v7856_v35 = vcombine.low %v957_v29, %v961_v30  ;;  %v993_v60 = vld [vmem:[#allocation7 + $0x168] sm:$0xff] }
  0x90   :  { %794 = vmatprep.subr.bf16.mxu0 %v7764_v38  ;;  %v183_v1 = vld [vmem:[#allocation2 + $0x420] sm:$0xff]  ;;  %v969_v38 = vld [vmem:[#allocation7 + $0xa8] sm:$0xff] }
  0x91   :  { %v246_v3 = vld [vmem:[#allocation2 + $0xc00] sm:$0xff]  ;;  %v7780_v10 = vcombine.high %v182_v0, %v183_v1  ;;  %v7779_v13 = vcombine.low %v182_v0, %v183_v1 }
  0x92   :  { %v247_v4 = vld [vmem:[#allocation2 + $0xc20] sm:$0xff] }
  0x93   :  { %795 = vmatpush1.bf16.msra.mxu0 %v7763_v39  ;;  %v184_v6 = vld [vmem:[#allocation2 + $0x440] sm:$0xff]  ;;  %v7844_v9 = vcombine.high %v246_v3, %v247_v4  ;;  %v7843_v11 = vcombine.low %v246_v3, %v247_v4  ;;  %v7865_v39 = vcombine.high %v965_v37, %v969_v38  ;;  %v997_v3 = vld [vmem:[#allocation7 + $0x188] sm:$0xff] }
  0x94   :  { %796 = vmatprep.subr.bf16.mxu0 %v7766_v42  ;;  %v185_v7 = vld [vmem:[#allocation2 + $0x460] sm:$0xff]  ;;  %v1001_v4 = vld [vmem:[#allocation7 + $0x1a8] sm:$0xff] }
  0x95   :  { %901 = vmatprep.subr.bf16.mxu1 %v7844_v9  ;;  %v186_v14 = vld [vmem:[#allocation2 + $0x480] sm:$0xff]  ;;  %v7782_v20 = vcombine.high %v184_v6, %v185_v7  ;;  %v7781_v22 = vcombine.low %v184_v6, %v185_v7  ;;  %v7897_v7 = vcombine.high %v997_v3, %v1001_v4 }
  0x96   :  { %902 = vmatpush1.bf16.msra.mxu1 %v7843_v11  ;;  %v187_v15 = vld [vmem:[#allocation2 + $0x4a0] sm:$0xff] }
  0x97   :  { %797 = vmatpush1.bf16.msra.mxu0 %v7765_v43  ;;  %v188_v23 = vld [vmem:[#allocation2 + $0x4c0] sm:$0xff]  ;;  %v7784_v26 = vcombine.high %v186_v14, %v187_v15  ;;  %1757 = vmatprep.subr.bf16.mxu1 %v7849_v28  ;;  %v7783_v32 = vcombine.low %v186_v14, %v187_v15  ;;  %v7864_v43 = vcombine.low %v965_v37, %v969_v38  ;;  %v1009_v14 = vld [vmem:[#allocation7 + $0x1e8] sm:$0xff] }
  0x98   :  { %798 = vmatprep.subr.bf16.mxu0 %v7768_v46  ;;  %v189_v24 = vld [vmem:[#allocation2 + $0x4e0] sm:$0xff]  ;;  %v977_v46 = vld [vmem:[#allocation7 + $0xe8] sm:$0xff] }
  0x99   :  { %7845 = vmatmul.mubr.msk.bf16.vlgmr.msra.gmra.mrb[0].mxu1 %vm774_vm0, %v8931_v19  ;;  %v190_v33 = vld [vmem:[#allocation2 + $0x500] sm:$0xff]  ;;  %v7786_v36 = vcombine.high %v188_v23, %v189_v24  ;;  %v7785_v40 = vcombine.low %v188_v23, %v189_v24  ;;  %v1013_v24 = vld [vmem:[#allocation7 + $0x208] sm:$0xff] }
  0x9a   :  { %v191_v34 = vld [vmem:[#allocation2 + $0x520] sm:$0xff]  ;;  %1758 = vmatpush1.bf16.msra.mxu1 %v7848_v27  ;;  %v7913_v28 = vcombine.high %v1013_v24, %v1017_v25  ;;  %v7912_v30 = vcombine.low %v1013_v24, %v1017_v25 }
  0x9b   :  { %799 = vmatpush1.bf16.msra.mxu0 %v7767_v47  ;;  %1759 = vmatprep.subr.bf16.mxu1 %v7857_v31  ;;  %v192_v41 = vld [vmem:[#allocation2 + $0x540] sm:$0xff]  ;;  %v7788_v44 = vcombine.high %v190_v33, %v191_v34  ;;  %v7873_v47 = vcombine.high %v973_v45, %v977_v46  ;;  %v7787_v48 = vcombine.low %v190_v33, %v191_v34  ;;  %v1025_v33 = vld [vmem:[#allocation7 + $0x268] sm:$0xff] }
  0x9c   :  { %800 = vmatprep.subr.bf16.mxu0 %v7770_v50  ;;  %v193_v42 = vld [vmem:[#allocation2 + $0x560] sm:$0xff] }
  0x9d   :  { %v194_v49 = vld [vmem:[#allocation2 + $0x580] sm:$0xff]  ;;  %v7790_v52 = vcombine.high %v192_v41, %v193_v42  ;;  %v7789_v56 = vcombine.low %v192_v41, %v193_v42  ;;  %v1033_v41 = vld [vmem:[#allocation7 + $0x2a8] sm:$0xff] }
  0x9e   :  { %1760 = vmatpush1.bf16.msra.mxu1 %v7856_v35  ;;  %v195_v50 = vld [vmem:[#allocation2 + $0x5a0] sm:$0xff] }
  0x9f   :  { %801 = vmatpush1.bf16.msra.mxu0 %v7769_v51  ;;  %1761 = vmatprep.subr.bf16.mxu1 %v7865_v39  ;;  %v7872_v51 = vcombine.low %v973_v45, %v977_v46  ;;  %v196_v61 = vld [vmem:[#allocation2 + $0x5c0] sm:$0xff]  ;;  %v7791_v0 = vcombine.low %v194_v49, %v195_v50 }
  0xa0   :  { %802 = vmatprep.subr.bf16.mxu0 %v7772_v54  ;;  %v985_v54 = vld [vmem:[#allocation7 + $0x128] sm:$0xff]  ;;  %v199_v6 = vld [vmem:[#allocation2 + $0x620] sm:$0xff] }
  0xa1   :  { %v7880_v57 = vcombine.low %v981_v53, %v985_v54  ;;  %v200_v15 = vld [vmem:[#allocation2 + $0x640] sm:$0xff] }
  0xa2   :  { %1762 = vmatpush1.bf16.msra.mxu1 %v7864_v43  ;;  %v201_v19 = vld [vmem:[#allocation2 + $0x660] sm:$0xff] }
  0xa3   :  { %803 = vmatpush1.bf16.msra.mxu0 %v7771_v55  ;;  %1763 = vmatprep.subr.bf16.mxu1 %v7873_v47  ;;  %v7881_v55 = vcombine.high %v981_v53, %v985_v54  ;;  %v7798_v23 = vcombine.high %v200_v15, %v201_v19  ;;  %v203_v27 = vld [vmem:[#allocation2 + $0x6a0] sm:$0xff]  ;;  %v7797_v29 = vcombine.low %v200_v15, %v201_v19 }
  0xa4   :  { %804 = vmatprep.subr.bf16.mxu0 %v7774_v58  ;;  %v7792_v58 = vcombine.high %v194_v49, %v195_v50  ;;  %v204_v34 = vld [vmem:[#allocation2 + $0x6c0] sm:$0xff]  ;;  %v1041_v49 = vld [vmem:[#allocation7 + $0x2e8] sm:$0xff] }
  0xa5   :  { %v205_v35 = vld [vmem:[#allocation2 + $0x6e0] sm:$0xff] }
  0xa6   :  { %1764 = vmatpush1.bf16.msra.mxu1 %v7872_v51  ;;  %v7802_v39 = vcombine.high %v204_v34, %v205_v35  ;;  %v206_v42 = vld [vmem:[#allocation2 + $0x700] sm:$0xff]  ;;  %v7801_v45 = vcombine.low %v204_v34, %v205_v35 }
  0xa7   :  { %805 = vmatpush1.bf16.msra.mxu0 %v7773_v59  ;;  %1765 = vmatprep.subr.bf16.mxu1 %v7881_v55  ;;  %v989_v59 = vld [vmem:[#allocation7 + $0x148] sm:$0xff]  ;;  %v207_v43 = vld [vmem:[#allocation2 + $0x720] sm:$0xff] }
  0xa8   :  { %806 = vmatprep.subr.bf16.mxu0 %v7776_v62  ;;  %v197_v62 = vld [vmem:[#allocation2 + $0x5e0] sm:$0xff]  ;;  %v7888_v1 = vcombine.low %v989_v59, %v993_v60  ;;  %v7804_v47 = vcombine.high %v206_v42, %v207_v43  ;;  %v7803_v53 = vcombine.low %v206_v42, %v207_v43 }
  0xa9   :  { %v7793_v9 = vcombine.low %v196_v61, %v197_v62  ;;  %v208_v50 = vld [vmem:[#allocation2 + $0x740] sm:$0xff] }
  0xaa   :  { %1766 = vmatpush1.bf16.msra.mxu1 %v7880_v57  ;;  %v209_v51 = vld [vmem:[#allocation2 + $0x760] sm:$0xff]  ;;  %v1049_v57 = vld [vmem:[#allocation7 + $0x328] sm:$0xff] }
  0xab   :  { %807 = vmatpush1.bf16.msra.mxu0 %v7775_v63  ;;  %v7889_v63 = vcombine.high %v989_v59, %v993_v60  ;;  %v7806_v55 = vcombine.high %v208_v50, %v209_v51  ;;  %v211_v59 = vld [vmem:[#allocation2 + $0x7a0] sm:$0xff] }
  0xac   :  { %808 = vmatprep.subr.bf16.mxu0 %v7778_v2  ;;  %v7794_v2 = vcombine.high %v196_v61, %v197_v62  ;;  %v7805_v61 = vcombine.low %v208_v50, %v209_v51  ;;  %v221_v24 = vld [vmem:[#allocation2 + $0x8e0] sm:$0xff] }
  0xad   :  { %1767 = vmatprep.subr.bf16.mxu1 %v7889_v63  ;;  %v226_v35 = vld [vmem:[#allocation2 + $0x980] sm:$0xff] }
  0xae   :  { %1768 = vmatpush1.bf16.msra.mxu1 %v7888_v1  ;;  %v213_v1 = vld [vmem:[#allocation2 + $0x7e0] sm:$0xff] }
  0xaf   :  { %809 = vmatpush1.bf16.msra.mxu0 %v7777_v5  ;;  %v198_v5 = vld [vmem:[#allocation2 + $0x600] sm:$0xff]  ;;  %1769 = vmatprep.subr.bf16.mxu1 %v7897_v7 }
  0xb0   :  { %819 = vmatprep.subr.bf16.mxu0 %v7780_v10  ;;  %v7896_v10 = vcombine.low %v997_v3, %v1001_v4  ;;  %v7796_v11 = vcombine.high %v198_v5, %v199_v6  ;;  %v7795_v17 = vcombine.low %v198_v5, %v199_v6  ;;  %v214_v4 = vld [vmem:[#allocation2 + $0x800] sm:$0xff] }
  0xb1   :  { %v215_v5 = vld [vmem:[#allocation2 + $0x820] sm:$0xff] }
  0xb2   :  { %811 = vmatmul.mubr.bf16.vlgmr.msra.gmra.mrb[0].mxu0 %v9304_v12  ;;  %1770 = vmatpush1.bf16.msra.mxu1 %v7896_v10  ;;  %v7812_v7 = vcombine.high %v214_v4, %v215_v5  ;;  %v216_v10 = vld [vmem:[#allocation2 + $0x840] sm:$0xff] }
  0xb3   :  { %820 = vmatpush1.bf16.msra.mxu0 %v7779_v13  ;;  %851 = vmatprep.mubr.bf16.mxu0 %v9308_v16  ;;  %v1005_v13 = vld [vmem:[#allocation7 + $0x1c8] sm:$0xff]  ;;  %v230_v43 = vld [vmem:[#allocation2 + $0xa00] sm:$0xff] }
  0xb4   :  { %821 = vmatprep.subr.bf16.mxu0 %v7782_v20  ;;  %v7905_v20 = vcombine.high %v1005_v13, %v1009_v14  ;;  %v234_v51 = vld [vmem:[#allocation2 + $0xa80] sm:$0xff] }
  0xb6   :  { %1771 = vmatprep.subr.bf16.mxu1 %v7905_v20  ;;  %v218_v20 = vld [vmem:[#allocation2 + $0x880] sm:$0xff] }
  0xb7   :  { %822 = vmatpush1.bf16.msra.mxu0 %v7781_v22  ;;  %v7904_v22 = vcombine.low %v1005_v13, %v1009_v14  ;;  %v9324_v13 = vcombine.low %v9300_v8, %v9300_v8  ;;  %v7811_v14 = vcombine.low %v214_v4, %v215_v5  ;;  %v220_v8 = vld [vmem:[#allocation2 + $0x8c0] sm:$0xff] }
  0xb8   :  { %823 = vmatprep.subr.bf16.mxu0 %v7784_v26  ;;  %v202_v26 = vld [vmem:[#allocation2 + $0x680] sm:$0xff] }
  0xb9   :  { %1772 = vmatpush1.bf16.msra.mxu1 %v7904_v22  ;;  %v7800_v31 = vcombine.high %v202_v26, %v203_v27  ;;  %v7799_v37 = vcombine.low %v202_v26, %v203_v27  ;;  %v7818_v26 = vcombine.high %v220_v8, %v221_v24  ;;  %v222_v27 = vld [vmem:[#allocation2 + $0x900] sm:$0xff] }
  0xba   :  { %1773 = vmatprep.subr.bf16.mxu1 %v7913_v28  ;;  %v223_v28 = vld [vmem:[#allocation2 + $0x920] sm:$0xff] }
  0xbb   :  { %824 = vmatpush1.bf16.msra.mxu0 %v7783_v32  ;;  %v1021_v32 = vld [vmem:[#allocation7 + $0x248] sm:$0xff]  ;;  %v243_v4 = vld [vmem:[#allocation2 + $0xba0] sm:$0xff] }
  0xbc   :  { %825 = vmatprep.subr.bf16.mxu0 %v7786_v36  ;;  %v7921_v36 = vcombine.high %v1021_v32, %v1025_v33  ;;  %v7920_v38 = vcombine.low %v1021_v32, %v1025_v33  ;;  %v225_v32 = vld [vmem:[#allocation2 + $0x960] sm:$0xff]  ;;  %v7819_v33 = vcombine.low %v222_v27, %v223_v28 }
  0xbd   :  { %1774 = vmatpush1.bf16.msra.mxu1 %v7912_v30  ;;  %v7820_v30 = vcombine.high %v222_v27, %v223_v28  ;;  %v964_v27 = vld [vmem:[#allocation7 + $0x80] sm:$0xff] }
  0xbe   :  { %1775 = vmatprep.subr.bf16.mxu1 %v7921_v36  ;;  %v227_v36 = vld [vmem:[#allocation2 + $0x9a0] sm:$0xff]  ;;  %v968_v28 = vld [vmem:[#allocation7 + $0xa0] sm:$0xff] }
  0xbf   :  { %826 = vmatpush1.bf16.msra.mxu0 %v7785_v40  ;;  %v1029_v40 = vld [vmem:[#allocation7 + $0x288] sm:$0xff] }
  0xc0   :  { %827 = vmatprep.subr.bf16.mxu0 %v7788_v44  ;;  %v7929_v44 = vcombine.high %v1029_v40, %v1033_v41  ;;  %v7928_v46 = vcombine.low %v1029_v40, %v1033_v41  ;;  %v229_v40 = vld [vmem:[#allocation2 + $0x9e0] sm:$0xff]  ;;  %v7823_v41 = vcombine.low %v226_v35, %v227_v36 }
  0xc1   :  { %1776 = vmatpush1.bf16.msra.mxu1 %v7920_v38  ;;  %v7824_v38 = vcombine.high %v226_v35, %v227_v36  ;;  %v984_v35 = vld [vmem:[#allocation7 + $0x120] sm:$0xff] }
  0xc2   :  { %1777 = vmatprep.subr.bf16.mxu1 %v7929_v44  ;;  %v231_v44 = vld [vmem:[#allocation2 + $0xa20] sm:$0xff] }
  0xc3   :  { %828 = vmatpush1.bf16.msra.mxu0 %v7787_v48  ;;  %v1037_v48 = vld [vmem:[#allocation7 + $0x2c8] sm:$0xff] }
  0xc4   :  { %829 = vmatprep.subr.bf16.mxu0 %v7790_v52  ;;  %v7937_v52 = vcombine.high %v1037_v48, %v1041_v49  ;;  %v7936_v54 = vcombine.low %v1037_v48, %v1041_v49  ;;  %v233_v48 = vld [vmem:[#allocation2 + $0xa60] sm:$0xff]  ;;  %v7827_v49 = vcombine.low %v230_v43, %v231_v44 }
  0xc5   :  { %1778 = vmatpush1.bf16.msra.mxu1 %v7928_v46  ;;  %v7828_v46 = vcombine.high %v230_v43, %v231_v44  ;;  %v1000_v43 = vld [vmem:[#allocation7 + $0x1a0] sm:$0xff] }
  0xc6   :  { %1779 = vmatprep.subr.bf16.mxu1 %v7937_v52  ;;  %v235_v52 = vld [vmem:[#allocation2 + $0xaa0] sm:$0xff] }
  0xc7   :  { %830 = vmatpush1.bf16.msra.mxu0 %v7789_v56  ;;  %v1045_v56 = vld [vmem:[#allocation7 + $0x308] sm:$0xff] }
  0xc8   :  { %831 = vmatprep.subr.bf16.mxu0 %v7792_v58  ;;  %v210_v58 = vld [vmem:[#allocation2 + $0x780] sm:$0xff]  ;;  %v7945_v60 = vcombine.high %v1045_v56, %v1049_v57  ;;  %v7944_v62 = vcombine.low %v1045_v56, %v1049_v57  ;;  %v7831_v57 = vcombine.low %v234_v51, %v235_v52 }
  0xc9   :  { %1780 = vmatpush1.bf16.msra.mxu1 %v7936_v54  ;;  %v7808_v63 = vcombine.high %v210_v58, %v211_v59  ;;  %v7832_v54 = vcombine.high %v234_v51, %v235_v52  ;;  %v237_v56 = vld [vmem:[#allocation2 + $0xae0] sm:$0xff]  ;;  %v1016_v51 = vld [vmem:[#allocation7 + $0x220] sm:$0xff] }
  0xca   :  { %1781 = vmatprep.subr.bf16.mxu1 %v7945_v60  ;;  %v239_v60 = vld [vmem:[#allocation2 + $0xb20] sm:$0xff] }
  0xcb   :  { %832 = vmatpush1.bf16.msra.mxu0 %v7791_v0  ;;  %v212_v0 = vld [vmem:[#allocation2 + $0x7c0] sm:$0xff] }
  0xcc   :  { %833 = vmatprep.subr.bf16.mxu0 %v7794_v2  ;;  %v7807_v2 = vcombine.low %v210_v58, %v211_v59  ;;  %v7810_v3 = vcombine.high %v212_v0, %v213_v1  ;;  %v7809_v6 = vcombine.low %v212_v0, %v213_v1  ;;  %v238_v59 = vld [vmem:[#allocation2 + $0xb00] sm:$0xff] }
  0xcd   :  { %1782 = vmatpush1.bf16.msra.mxu1 %v7944_v62  ;;  %v7836_v62 = vcombine.high %v238_v59, %v239_v60  ;;  %v241_v0 = vld [vmem:[#allocation2 + $0xb60] sm:$0xff]  ;;  %v7835_v1 = vcombine.low %v238_v59, %v239_v60  ;;  %v1032_v59 = vld [vmem:[#allocation7 + $0x2a0] sm:$0xff] }
  0xcf   :  { %834 = vmatpush1.bf16.msra.mxu0 %v7793_v9  ;;  %v9320_v9 = vld [vmem:[%s9505_s0 + $0x10] sm:$0xff] }
  0xd0   :  { %835 = vmatprep.subr.bf16.mxu0 %v7796_v11  ;;  %v217_v11 = vld [vmem:[#allocation2 + $0x860] sm:$0xff]  ;;  %v9328_v15 = vcombine.high %v9320_v9, %v9320_v9 }
  0xd1   :  { %v7814_v19 = vcombine.high %v216_v10, %v217_v11  ;;  %v7813_v22 = vcombine.low %v216_v10, %v217_v11  ;;  %v245_v10 = vld [vmem:[#allocation2 + $0xbe0] sm:$0xff] }
  0xd3   :  { %836 = vmatpush1.bf16.msra.mxu0 %v7795_v17  ;;  %v219_v17 = vld [vmem:[#allocation2 + $0x8a0] sm:$0xff] }
  0xd4   :  { %837 = vmatprep.subr.bf16.mxu0 %v7798_v23  ;;  %v7816_v23 = vcombine.high %v218_v20, %v219_v17  ;;  %v7815_v25 = vcombine.low %v218_v20, %v219_v17  ;;  %v952_v20 = vld [vmem:[#allocation7 + $0x20] sm:$0xff] }
  0xd7   :  { %838 = vmatpush1.bf16.msra.mxu0 %v7797_v29  ;;  %v7817_v29 = vcombine.low %v220_v8, %v221_v24  ;;  %v960_v8 = vld [vmem:[#allocation7 + $0x60] sm:$0xff]  ;;  %v9334_v24 = vcombine.low %v9320_v9, %v9320_v9 }
  0xd8   :  { %839 = vmatprep.subr.bf16.mxu0 %v7800_v31  ;;  %v224_v31 = vld [vmem:[#allocation2 + $0x940] sm:$0xff]  ;;  %v980_v9 = vld [vmem:[#allocation7 + $0x100] sm:$0xff] }
  0xd9   :  { %v7822_v34 = vcombine.high %v224_v31, %v225_v32 }
  0xdb   :  { %840 = vmatpush1.bf16.msra.mxu0 %v7799_v37  ;;  %v7821_v37 = vcombine.low %v224_v31, %v225_v32  ;;  %v972_v31 = vld [vmem:[#allocation7 + $0xc0] sm:$0xff] }
  0xdc   :  { %841 = vmatprep.subr.bf16.mxu0 %v7802_v39  ;;  %v228_v39 = vld [vmem:[#allocation2 + $0x9c0] sm:$0xff]  ;;  %v976_v32 = vld [vmem:[#allocation7 + $0xe0] sm:$0xff] }
  0xdd   :  { %v7826_v42 = vcombine.high %v228_v39, %v229_v40  ;;  %v7870_v36 = vcombine.low %v972_v31, %v976_v32 }
  0xdf   :  { %842 = vmatpush1.bf16.msra.mxu0 %v7801_v45  ;;  %v7825_v45 = vcombine.low %v228_v39, %v229_v40  ;;  %v992_v39 = vld [vmem:[#allocation7 + $0x160] sm:$0xff]  ;;  %v7878_v40 = vcombine.low %v980_v9, %v984_v35 }
  0xe0   :  { %843 = vmatprep.subr.bf16.mxu0 %v7804_v47  ;;  %v232_v47 = vld [vmem:[#allocation2 + $0xa40] sm:$0xff] }
  0xe1   :  { %v7830_v50 = vcombine.high %v232_v47, %v233_v48 }
  0xe3   :  { %844 = vmatpush1.bf16.msra.mxu0 %v7803_v53  ;;  %v7829_v53 = vcombine.low %v232_v47, %v233_v48  ;;  %v1008_v47 = vld [vmem:[#allocation7 + $0x1e0] sm:$0xff] }
  0xe4   :  { %845 = vmatprep.subr.bf16.mxu0 %v7806_v55  ;;  %v236_v55 = vld [vmem:[#allocation2 + $0xac0] sm:$0xff] }
  0xe5   :  { %v7834_v58 = vcombine.high %v236_v55, %v237_v56 }
  0xe7   :  { %846 = vmatpush1.bf16.msra.mxu0 %v7805_v61  ;;  %v7833_v61 = vcombine.low %v236_v55, %v237_v56  ;;  %v1024_v55 = vld [vmem:[#allocation7 + $0x260] sm:$0xff] }
  0xe8   :  { %847 = vmatprep.subr.bf16.mxu0 %v7808_v63  ;;  %v240_v63 = vld [vmem:[#allocation2 + $0xb40] sm:$0xff] }
  0xe9   :  { %v7837_v5 = vcombine.low %v240_v63, %v241_v0 }
  0xeb   :  { %848 = vmatpush1.bf16.msra.mxu0 %v7807_v2  ;;  %v7838_v2 = vcombine.high %v240_v63, %v241_v0  ;;  %v1040_v63 = vld [vmem:[#allocation7 + $0x2e0] sm:$0xff] }
  0xec   :  { %849 = vmatprep.subr.bf16.mxu0 %v7810_v3  ;;  %v242_v3 = vld [vmem:[#allocation2 + $0xb80] sm:$0xff] }
  0xed   :  { %v7839_v11 = vcombine.low %v242_v3, %v243_v4 }
  0xef   :  { %850 = vmatpush1.bf16.msra.mxu0 %v7809_v6  ;;  %v7840_v6 = vcombine.high %v242_v3, %v243_v4  ;;  %v1048_v3 = vld [vmem:[#allocation7 + $0x320] sm:$0xff] }
  0xf0   :  { %860 = vmatprep.subr.bf16.mxu0 %v7812_v7  ;;  %v244_v7 = vld [vmem:[#allocation2 + $0xbc0] sm:$0xff] }
  0xf1   :  { %v7841_v17 = vcombine.low %v244_v7, %v245_v10 }
  0xf2   :  { %852 = vmatmul.mubr.bf16.vlgmr.msra.gmra.mrb[0].mxu0 %v9324_v13 }
  0xf3   :  { %861 = vmatpush1.bf16.msra.mxu0 %v7811_v14  ;;  %892 = vmatprep.mubr.bf16.mxu0 %v9328_v15  ;;  %v7842_v14 = vcombine.high %v244_v7, %v245_v10  ;;  %v1052_v7 = vld [vmem:[#allocation7 + $0x340] sm:$0xff] }
  0xf4   :  { %862 = vmatprep.subr.bf16.mxu0 %v7814_v19  ;;  %v948_v19 = vld [vmem:[#allocation7] sm:$0xff] }
  0xf5   :  { %v1056_v10 = vld [vmem:[#allocation7 + $0x360] sm:$0xff] }
  0xf7   :  { %863 = vmatpush1.bf16.msra.mxu0 %v7813_v22  ;;  %v7847_v22 = vcombine.high %v948_v19, %v952_v20 }
  0xf8   :  { %864 = vmatprep.subr.bf16.mxu0 %v7816_v23  ;;  %v956_v23 = vld [vmem:[#allocation7 + $0x40] sm:$0xff] }
  0xfb   :  { %865 = vmatpush1.bf16.msra.mxu0 %v7815_v25  ;;  %v7846_v25 = vcombine.low %v948_v19, %v952_v20  ;;  %v1057_v19 = vld [vmem:[#allocation7 + $0x368] sm:$0xff] }
  0xfc   :  { %866 = vmatprep.subr.bf16.mxu0 %v7818_v26  ;;  %v7855_v26 = vcombine.high %v956_v23, %v960_v8 }
  0xff   :  { %867 = vmatpush1.bf16.msra.mxu0 %v7817_v29  ;;  %v7854_v29 = vcombine.low %v956_v23, %v960_v8 }
 0x100   :  { %868 = vmatprep.subr.bf16.mxu0 %v7820_v30  ;;  %v7863_v30 = vcombine.high %v964_v27, %v968_v28 }
 0x103   :  { %869 = vmatpush1.bf16.msra.mxu0 %v7819_v33  ;;  %v7862_v33 = vcombine.low %v964_v27, %v968_v28  ;;  %v1064_v27 = vld [vmem:[#allocation7 + $0x3a0] sm:$0xff]  ;;  %v1061_v28 = vld [vmem:[#allocation7 + $0x388] sm:$0xff] }
 0x104   :  { %870 = vmatprep.subr.bf16.mxu0 %v7822_v34  ;;  %v7871_v34 = vcombine.high %v972_v31, %v976_v32  ;;  %v1065_v31 = vld [vmem:[#allocation7 + $0x3a8] sm:$0xff] }
 0x107   :  { %871 = vmatpush1.bf16.msra.mxu0 %v7821_v37  ;;  %v7879_v37 = vcombine.high %v980_v9, %v984_v35  ;;  %v1068_v9 = vld [vmem:[#allocation7 + $0x3c0] sm:$0xff] }
 0x108   :  { %872 = vmatprep.subr.bf16.mxu0 %v7824_v38  ;;  %v988_v38 = vld [vmem:[#allocation7 + $0x140] sm:$0xff] }
 0x109   :  { %v7886_v44 = vcombine.low %v988_v38, %v992_v39  ;;  %v1072_v35 = vld [vmem:[#allocation7 + $0x3e0] sm:$0xff] }
 0x10b   :  { %873 = vmatpush1.bf16.msra.mxu0 %v7823_v41  ;;  %v7887_v41 = vcombine.high %v988_v38, %v992_v39  ;;  %v1073_v38 = vld [vmem:[#allocation7 + $0x3e8] sm:$0xff]  ;;  %v7966_v39 = vcombine.low %v1068_v9, %v1072_v35 }
 0x10c   :  { %874 = vmatprep.subr.bf16.mxu0 %v7826_v42  ;;  %v996_v42 = vld [vmem:[#allocation7 + $0x180] sm:$0xff] }
 0x10d   :  { %v7894_v48 = vcombine.low %v996_v42, %v1000_v43 }
 0x10f   :  { %875 = vmatpush1.bf16.msra.mxu0 %v7825_v45  ;;  %v7895_v45 = vcombine.high %v996_v42, %v1000_v43  ;;  %v950_v42 = vld [vmem:[#allocation7 + $0x10] sm:$0xff] }
 0x110   :  { %876 = vmatprep.subr.bf16.mxu0 %v7828_v46  ;;  %v1004_v46 = vld [vmem:[#allocation7 + $0x1c0] sm:$0xff]  ;;  %v954_v43 = vld [vmem:[#allocation7 + $0x30] sm:$0xff] }
 0x111   :  { %v7902_v52 = vcombine.low %v1004_v46, %v1008_v47 }
 0x113   :  { %877 = vmatpush1.bf16.msra.mxu0 %v7827_v49  ;;  %v7903_v49 = vcombine.high %v1004_v46, %v1008_v47  ;;  %v1889_v46 = vld [vmem:[#allocation2 + $0x28] sm:$0xff]  ;;  %v7850_v47 = vcombine.low %v950_v42, %v954_v43 }
 0x114   :  { %878 = vmatprep.subr.bf16.mxu0 %v7830_v50  ;;  %v1012_v50 = vld [vmem:[#allocation7 + $0x200] sm:$0xff] }
 0x115   :  { %v7910_v56 = vcombine.low %v1012_v50, %v1016_v51 }
 0x117   :  { %879 = vmatpush1.bf16.msra.mxu0 %v7829_v53  ;;  %v7911_v53 = vcombine.high %v1012_v50, %v1016_v51  ;;  %v110_v50 = vlaneseq }
 0x118   :  { %880 = vmatprep.subr.bf16.mxu0 %v7832_v54  ;;  %v1020_v54 = vld [vmem:[#allocation7 + $0x240] sm:$0xff] }
 0x119   :  { %v7918_v60 = vcombine.low %v1020_v54, %v1024_v55  ;;  %v9337_v51 = vshrl.u32 %v110_v50, 7 }
 0x11b   :  { %881 = vmatpush1.bf16.msra.mxu0 %v7831_v57  ;;  %v7919_v57 = vcombine.high %v1020_v54, %v1024_v55  ;;  %v9343_v54 = vsub.s32 1, %v9337_v51 }
 0x11c   :  { %882 = vmatprep.subr.bf16.mxu0 %v7834_v58  ;;  %v1028_v58 = vld [vmem:[#allocation7 + $0x280] sm:$0xff] }
 0x11d   :  { %v7926_v0 = vcombine.low %v1028_v58, %v1032_v59 }
 0x11f   :  { %883 = vmatpush1.bf16.msra.mxu0 %v7833_v61  ;;  %v7927_v61 = vcombine.high %v1028_v58, %v1032_v59 }
 0x120   :  { %884 = vmatprep.subr.bf16.mxu0 %v7836_v62  ;;  %v1036_v62 = vld [vmem:[#allocation7 + $0x2c0] sm:$0xff] }
 0x121   :  { %v7934_v4 = vcombine.low %v1036_v62, %v1040_v63 }
 0x123   :  { %885 = vmatpush1.bf16.msra.mxu0 %v7835_v1  ;;  %v7935_v1 = vcombine.high %v1036_v62, %v1040_v63 }
 0x124   :  { %886 = vmatprep.subr.bf16.mxu0 %v7838_v2  ;;  %v1044_v2 = vld [vmem:[#allocation7 + $0x300] sm:$0xff] }
 0x127   :  { %887 = vmatpush1.bf16.msra.mxu0 %v7837_v5  ;;  %v7943_v5 = vcombine.high %v1044_v2, %v1048_v3 }
 0x128   :  { %888 = vmatprep.subr.bf16.mxu0 %v7840_v6  ;;  %v7942_v6 = vcombine.low %v1044_v2, %v1048_v3 }
 0x12b   :  { %889 = vmatpush1.bf16.msra.mxu0 %v7839_v11  ;;  %v1053_v11 = vld [vmem:[#allocation7 + $0x348] sm:$0xff] }
 0x12c   :  { %890 = vmatprep.subr.bf16.mxu0 %v7842_v14  ;;  %v7951_v14 = vcombine.high %v1052_v7, %v1056_v10  ;;  %v7953_v23 = vcombine.high %v1053_v11, %v1057_v19 }
 0x12e   :  { %1783 = vmatprep.subr.bf16.mxu1 %v7953_v23  ;;  %v1892_v23 = vld [vmem:[#allocation2 + $0x88] sm:$0xff] }
 0x12f   :  { %891 = vmatpush1.bf16.msra.mxu0 %v7841_v17  ;;  %v7950_v17 = vcombine.low %v1052_v7, %v1056_v10  ;;  %v1890_v7 = vld [vmem:[#allocation2 + $0x48] sm:$0xff] }
 0x130   :  { %1716 = vmatprep.subr.bf16.mxu0 %v7847_v22  ;;  %v7952_v22 = vcombine.low %v1053_v11, %v1057_v19  ;;  %v1891_v10 = vld [vmem:[#allocation2 + $0x68] sm:$0xff] }
 0x132   :  { %893 = vmatmul.mubr.bf16.vlgmr.msra.gmra.mrb[0].mxu0 %v9334_v24  ;;  %1784 = vmatpush1.bf16.msra.mxu1 %v7952_v22  ;;  %v970_v22 = vld [vmem:[#allocation7 + $0xb0] sm:$0xff] }
 0x133   :  { %1717 = vmatpush1.bf16.msra.mxu0 %v7846_v25 }
 0x134   :  { %1718 = vmatprep.subr.bf16.mxu0 %v7855_v26  ;;  %v1060_v26 = vld [vmem:[#allocation7 + $0x380] sm:$0xff] }
 0x135   :  { %v7958_v32 = vcombine.low %v1060_v26, %v1064_v27 }
 0x137   :  { %1719 = vmatpush1.bf16.msra.mxu0 %v7854_v29 }
 0x138   :  { %1720 = vmatprep.subr.bf16.mxu0 %v7863_v30  ;;  %v7959_v30 = vcombine.high %v1060_v26, %v1064_v27  ;;  %v7976_v26 = vcombine.low %v1890_v7, %v1891_v10 }
 0x13b   :  { %1721 = vmatpush1.bf16.msra.mxu0 %v7862_v33  ;;  %v7960_v33 = vcombine.low %v1061_v28, %v1065_v31 }
 0x13c   :  { %1722 = vmatprep.subr.bf16.mxu0 %v7871_v34  ;;  %v7961_v34 = vcombine.high %v1061_v28, %v1065_v31  ;;  %v1894_v31 = vld [vmem:[#allocation2 + $0xc8] sm:$0xff] }
 0x13e   :  { %1785 = vmatprep.subr.bf16.mxu1 %v7961_v34 }
 0x13f   :  { %1723 = vmatpush1.bf16.msra.mxu0 %v7870_v36  ;;  %v1069_v36 = vld [vmem:[#allocation7 + $0x3c8] sm:$0xff]  ;;  %1786 = vmatpush1.bf16.msra.mxu1 %v7960_v33 }
 0x140   :  { %1724 = vmatprep.subr.bf16.mxu0 %v7879_v37  ;;  %v7967_v37 = vcombine.high %v1068_v9, %v1072_v35 }
 0x143   :  { %1725 = vmatpush1.bf16.msra.mxu0 %v7878_v40  ;;  %v7968_v40 = vcombine.low %v1069_v36, %v1073_v38 }
 0x144   :  { %1726 = vmatprep.subr.bf16.mxu0 %v7887_v41  ;;  %v7969_v41 = vcombine.high %v1069_v36, %v1073_v38  ;;  %v982_v36 = vld [vmem:[#allocation7 + $0x110] sm:$0xff]  ;;  %v1896_v38 = vld [vmem:[#allocation2 + $0x108] sm:$0xff] }
 0x146   :  { %1787 = vmatprep.subr.bf16.mxu1 %v7969_v41 }
 0x147   :  { %1727 = vmatpush1.bf16.msra.mxu0 %v7886_v44  ;;  %v1888_v44 = vld [vmem:[#allocation2 + $0x8] sm:$0xff]  ;;  %1788 = vmatpush1.bf16.msra.mxu1 %v7968_v40 }
 0x148   :  { %1728 = vmatprep.subr.bf16.mxu0 %v7895_v45  ;;  %v7851_v45 = vcombine.high %v950_v42, %v954_v43 }
 0x14a   :  { %1798 = vmatprep.subr.bf16.mxu1 %v7851_v45  ;;  %v994_v45 = vld [vmem:[#allocation7 + $0x170] sm:$0xff] }
 0x14b   :  { %1729 = vmatpush1.bf16.msra.mxu0 %v7894_v48  ;;  %v7974_v48 = vcombine.low %v1888_v44, %v1889_v46 }
 0x14c   :  { %1730 = vmatprep.subr.bf16.mxu0 %v7903_v49  ;;  %v7975_v49 = vcombine.high %v1888_v44, %v1889_v46  ;;  %v990_v44 = vld [vmem:[#allocation7 + $0x150] sm:$0xff]  ;;  %v1898_v46 = vld [vmem:[#allocation2 + $0x148] sm:$0xff] }
 0x14d   :  { %v7891_v50 = vcombine.high %v990_v44, %v994_v45 }
 0x14f   :  { %1731 = vmatpush1.bf16.msra.mxu0 %v7902_v52  ;;  %v9340_v52 = vsub.s32 0, %v9337_v51 }
 0x150   :  { %1732 = vmatprep.subr.bf16.mxu0 %v7911_v53  ;;  %v248_v53 = vld [vmem:[#allocation5] sm:$0x3] }
 0x151   :  { %v253_v55 = vrot.slane %v248_v53, %v9340_v52 }
 0x153   :  { %1733 = vmatpush1.bf16.msra.mxu0 %v7910_v56  ;;  %v257_v56 = vrot.slane %v248_v53, %v9343_v54 }
 0x154   :  { %1734 = vmatprep.subr.bf16.mxu0 %v7919_v57 }
 0x157   :  { %1735 = vmatpush1.bf16.msra.mxu0 %v7918_v60 }
 0x158   :  { %1736 = vmatprep.subr.bf16.mxu0 %v7927_v61 }
 0x15b   :  { %1737 = vmatpush1.bf16.msra.mxu0 %v7926_v0 }
 0x15c   :  { %1738 = vmatprep.subr.bf16.mxu0 %v7935_v1 }
 0x15f   :  { %1739 = vmatpush1.bf16.msra.mxu0 %v7934_v4 }
 0x160   :  { %1740 = vmatprep.subr.bf16.mxu0 %v7943_v5  ;;  %v958_v5 = vld [vmem:[#allocation7 + $0x50] sm:$0xff] }
 0x163   :  { %1741 = vmatpush1.bf16.msra.mxu0 %v7942_v6  ;;  %v962_v6 = vld [vmem:[#allocation7 + $0x70] sm:$0xff] }
 0x164   :  { %1742 = vmatprep.subr.bf16.mxu0 %v7951_v14  ;;  %v7859_v19 = vcombine.high %v958_v5, %v962_v6 }
 0x167   :  { %1743 = vmatpush1.bf16.msra.mxu0 %v7950_v17  ;;  %v966_v17 = vld [vmem:[#allocation7 + $0x90] sm:$0xff] }
 0x168   :  { %1744 = vmatprep.subr.bf16.mxu0 %v7959_v30  ;;  %v7867_v27 = vcombine.high %v966_v17, %v970_v22  ;;  %v978_v30 = vld [vmem:[#allocation7 + $0xf0] sm:$0xff]  ;;  %v7866_v33 = vcombine.low %v966_v17, %v970_v22  ;;  %v1905_v17 = vld [vmem:[#allocation2 + $0x228] sm:$0xff] }
 0x16b   :  { %1745 = vmatpush1.bf16.msra.mxu0 %v7958_v32  ;;  %v1895_v32 = vld [vmem:[#allocation2 + $0xe8] sm:$0xff] }
 0x16c   :  { %v935_v20 = vpop.f32.mrb[0].mxu1  ;;  %1746 = vmatprep.subr.bf16.mxu0 %v7967_v37  ;;  %v7981_v35 = vcombine.high %v1894_v31, %v1895_v32  ;;  %v986_v37 = vld [vmem:[#allocation7 + $0x130] sm:$0xff]  ;;  %v7980_v41 = vcombine.low %v1894_v31, %v1895_v32 }
 0x16d   :  { %v937_v8 = vpop.f32.mrb[1].mxu1  ;;  %v7883_v42 = vcombine.high %v982_v36, %v986_v37 }
 0x16e   :  { %v939_v25 = vpop.f32.mrb[2].mxu1 }
 0x16f   :  { %v940_v29 = vpop.f32.mrb[3].mxu1  ;;  %1747 = vmatpush1.bf16.msra.mxu0 %v7966_v39  ;;  %v7858_v25 = vcombine.low %v958_v5, %v962_v6  ;;  %v1897_v39 = vld [vmem:[#allocation2 + $0x128] sm:$0xff] }
 0x170   :  { %2488 = vmatprep.subr.bf16.mxu0 %v7975_v49  ;;  %v974_v29 = vld [vmem:[#allocation7 + $0xd0] sm:$0xff]  ;;  %v7983_v43 = vcombine.high %v1896_v38, %v1897_v39  ;;  %v7982_v49 = vcombine.low %v1896_v38, %v1897_v39 }
 0x171   :  { %v7875_v9 = vcombine.high %v974_v29, %v978_v30  ;;  %v7874_v40 = vcombine.low %v974_v29, %v978_v30 }
 0x205   :  { %v894_v57 = vpop.f32.mrb[0].mxu0 }
 0x206   :  { %v8808_v58 = vadd.f32 %v894_v57, %v253_v55  ;;  %v896_v59 = vpop.f32.mrb[1].mxu0  ;;  %v998_v55 = vld [vmem:[#allocation7 + $0x190] sm:$0xff]  ;;  %v1900_v57 = vld [vmem:[#allocation2 + $0x188] sm:$0xff] }
 0x207   :  { %v8810_v60 = vadd.f32 %v896_v59, %v257_v56  ;;  %v898_v61 = vpop.f32.mrb[2].mxu0  ;;  %v1002_v56 = vld [vmem:[#allocation7 + $0x1b0] sm:$0xff]  ;;  %v7890_v59 = vcombine.low %v990_v44, %v994_v45 }
 0x208   :  { %v8809_v62 = vadd.f32 %v8808_v58, %v935_v20  ;;  %v899_v63 = vpop.f32.mrb[3].mxu0  ;;  %v7977_v20 = vcombine.high %v1890_v7, %v1891_v10  ;;  %v1901_v58 = vld [vmem:[#allocation2 + $0x1a8] sm:$0xff]  ;;  %v7899_v61 = vcombine.high %v998_v55, %v1002_v56  ;;  %v1014_v7 = vld [vmem:[#allocation7 + $0x210] sm:$0xff] }
 0x209   :  { %v8811_v0 = vadd.f32 %v8810_v60, %v937_v8  ;;  %v1893_v8 = vld [vmem:[#allocation2 + $0xa8] sm:$0xff]  ;;  %v1006_v63 = vld [vmem:[#allocation7 + $0x1d0] sm:$0xff] }
 0x20a   :  { %v942_v1 = vmul.f32 0.01, %v8809_v62  ;;  %v7979_v28 = vcombine.high %v1892_v23, %v1893_v8  ;;  %v7978_v34 = vcombine.low %v1892_v23, %v1893_v8  ;;  %v1018_v10 = vld [vmem:[#allocation7 + $0x230] sm:$0xff] }
 0x20b   :  { %v943_v2 = vmul.f32 0.01, %v8811_v0  ;;  %v7915_v23 = vcombine.high %v1014_v7, %v1018_v10  ;;  %v7914_v29 = vcombine.low %v1014_v7, %v1018_v10 }
 0x20c   :  { %v944_v3 = vmax.f32 %v8809_v62, %v942_v1  ;;  %v7987_v62 = vcombine.high %v1900_v57, %v1901_v58  ;;  %v1902_v1 = vld [vmem:[#allocation2 + $0x1c8] sm:$0xff] }
 0x20d   :  { %v945_v4 = vmax.f32 %v8811_v0, %v943_v2  ;;  %v1010_v0 = vld [vmem:[#allocation7 + $0x1f0] sm:$0xff]  ;;  %v1903_v2 = vld [vmem:[#allocation2 + $0x1e8] sm:$0xff] }
 0x20e   :  { %v9349_v14 = vpack.c.bf16 %v944_v3, %v944_v3  ;;  %v7898_v3 = vcombine.low %v998_v55, %v1002_v56  ;;  %v7907_v5 = vcombine.high %v1006_v63, %v1010_v0  ;;  %v7989_v6 = vcombine.high %v1902_v1, %v1903_v2 }
 0x20f   :  { %v9347_v11 = vpack.c.bf16 %v945_v4, %v945_v4  ;;  %v7986_v4 = vcombine.low %v1900_v57, %v1901_v58  ;;  %v7988_v22 = vcombine.low %v1902_v1, %v1903_v2 }
 0x211   :  { %1748 = vmatprep.mubr.bf16.mxu0 %v9347_v11  ;;  %1789 = vmatprep.mubr.bf16.mxu1 %v9347_v11 }
 0x212   :  { %1749 = vmatmul.mubr.bf16.vlgmr.msra.gmra.mrb[4].mxu0 %v9349_v14  ;;  %1790 = vmatmul.mubr.bf16.vlgmr.msra.gmra.mrb[4].mxu1 %v9349_v14 }
 0x213   :  { %1799 = vmatpush1.bf16.msra.mxu1 %v7850_v47  ;;  %2489 = vmatpush1.bf16.msra.mxu0 %v7974_v48  ;;  %v1899_v47 = vld [vmem:[#allocation2 + $0x168] sm:$0xff]  ;;  %v7882_v48 = vcombine.low %v982_v36, %v986_v37 }
 0x214   :  { %1830 = vmatprep.mubr.bf16.mxu1 %v9347_v11  ;;  %1800 = vmatprep.subr.bf16.mxu1 %v7859_v19  ;;  %v7985_v53 = vcombine.high %v1898_v46, %v1899_v47  ;;  %v7984_v60 = vcombine.low %v1898_v46, %v1899_v47  ;;  %v1904_v19 = vld [vmem:[#allocation2 + $0x208] sm:$0xff] }
 0x215   :  { %2490 = vmatprep.subr.bf16.mxu0 %v7977_v20  ;;  %2520 = vmatprep.mubr.bf16.mxu0 %v9294_v18  ;;  %v7906_v20 = vcombine.low %v1006_v63, %v1010_v0  ;;  %v7991_v8 = vcombine.high %v1904_v19, %v1905_v17  ;;  %v7990_v30 = vcombine.low %v1904_v19, %v1905_v17 }
 0x217   :  { %1801 = vmatpush1.bf16.msra.mxu1 %v7858_v25  ;;  %2491 = vmatpush1.bf16.msra.mxu0 %v7976_v26  ;;  %v1022_v25 = vld [vmem:[#allocation7 + $0x250] sm:$0xff] }
 0x218   :  { %1802 = vmatprep.subr.bf16.mxu1 %v7867_v27  ;;  %2492 = vmatprep.subr.bf16.mxu0 %v7979_v28  ;;  %v1026_v26 = vld [vmem:[#allocation7 + $0x270] sm:$0xff]  ;;  %v1906_v27 = vld [vmem:[#allocation2 + $0x248] sm:$0xff] }
 0x219   :  { %v1907_v28 = vld [vmem:[#allocation2 + $0x268] sm:$0xff]  ;;  %v7923_v31 = vcombine.high %v1022_v25, %v1026_v26  ;;  %v7922_v36 = vcombine.low %v1022_v25, %v1026_v26 }
 0x21a   :  { %v7993_v32 = vcombine.high %v1906_v27, %v1907_v28  ;;  %v7992_v37 = vcombine.low %v1906_v27, %v1907_v28 }
 0x21b   :  { %1803 = vmatpush1.bf16.msra.mxu1 %v7866_v33  ;;  %2493 = vmatpush1.bf16.msra.mxu0 %v7978_v34  ;;  %v1030_v33 = vld [vmem:[#allocation7 + $0x290] sm:$0xff] }
 0x21c   :  { %1804 = vmatprep.subr.bf16.mxu1 %v7875_v9  ;;  %2494 = vmatprep.subr.bf16.mxu0 %v7981_v35  ;;  %v1034_v34 = vld [vmem:[#allocation7 + $0x2b0] sm:$0xff]  ;;  %v1908_v9 = vld [vmem:[#allocation2 + $0x288] sm:$0xff] }
 0x21d   :  { %v1909_v35 = vld [vmem:[#allocation2 + $0x2a8] sm:$0xff]  ;;  %v7931_v38 = vcombine.high %v1030_v33, %v1034_v34  ;;  %v7930_v44 = vcombine.low %v1030_v33, %v1034_v34 }
 0x21e   :  { %v7995_v39 = vcombine.high %v1908_v9, %v1909_v35  ;;  %v7994_v45 = vcombine.low %v1908_v9, %v1909_v35 }
 0x21f   :  { %1805 = vmatpush1.bf16.msra.mxu1 %v7874_v40  ;;  %2495 = vmatpush1.bf16.msra.mxu0 %v7980_v41  ;;  %v1038_v40 = vld [vmem:[#allocation7 + $0x2d0] sm:$0xff] }
 0x220   :  { %1806 = vmatprep.subr.bf16.mxu1 %v7883_v42  ;;  %2496 = vmatprep.subr.bf16.mxu0 %v7983_v43  ;;  %v1042_v41 = vld [vmem:[#allocation7 + $0x2f0] sm:$0xff]  ;;  %v1910_v42 = vld [vmem:[#allocation2 + $0x2c8] sm:$0xff] }
 0x221   :  { %v1911_v43 = vld [vmem:[#allocation2 + $0x2e8] sm:$0xff]  ;;  %v7939_v46 = vcombine.high %v1038_v40, %v1042_v41  ;;  %v7938_v55 = vcombine.low %v1038_v40, %v1042_v41 }
 0x222   :  { %v7997_v47 = vcombine.high %v1910_v42, %v1911_v43  ;;  %v7996_v56 = vcombine.low %v1910_v42, %v1911_v43 }
 0x223   :  { %1807 = vmatpush1.bf16.msra.mxu1 %v7882_v48  ;;  %2497 = vmatpush1.bf16.msra.mxu0 %v7982_v49  ;;  %v1046_v48 = vld [vmem:[#allocation7 + $0x310] sm:$0xff] }
 0x224   :  { %1808 = vmatprep.subr.bf16.mxu1 %v7891_v50  ;;  %2498 = vmatprep.subr.bf16.mxu0 %v7985_v53  ;;  %v1050_v49 = vld [vmem:[#allocation7 + $0x330] sm:$0xff]  ;;  %v1912_v50 = vld [vmem:[#allocation2 + $0x308] sm:$0xff] }
 0x225   :  { %v1913_v53 = vld [vmem:[#allocation2 + $0x328] sm:$0xff]  ;;  %v7947_v57 = vcombine.high %v1046_v48, %v1050_v49  ;;  %v7946_v63 = vcombine.low %v1046_v48, %v1050_v49 }
 0x226   :  { %v7999_v58 = vcombine.high %v1912_v50, %v1913_v53  ;;  %v7998_v0 = vcombine.low %v1912_v50, %v1913_v53 }
 0x227   :  { %1809 = vmatpush1.bf16.msra.mxu1 %v7890_v59  ;;  %2499 = vmatpush1.bf16.msra.mxu0 %v7984_v60  ;;  %v1054_v59 = vld [vmem:[#allocation7 + $0x350] sm:$0xff] }
 0x228   :  { %1810 = vmatprep.subr.bf16.mxu1 %v7899_v61  ;;  %2500 = vmatprep.subr.bf16.mxu0 %v7987_v62  ;;  %v1058_v60 = vld [vmem:[#allocation7 + $0x370] sm:$0xff]  ;;  %v1914_v61 = vld [vmem:[#allocation2 + $0x348] sm:$0xff] }
 0x229   :  { %v1915_v62 = vld [vmem:[#allocation2 + $0x368] sm:$0xff]  ;;  %v7955_v1 = vcombine.high %v1054_v59, %v1058_v60  ;;  %v7954_v7 = vcombine.low %v1054_v59, %v1058_v60 }
 0x22a   :  { %v8001_v2 = vcombine.high %v1914_v61, %v1915_v62  ;;  %v8000_v10 = vcombine.low %v1914_v61, %v1915_v62  ;;  %v983_v62 = vld [vmem:[#allocation7 + $0x118] sm:$0xff] }
 0x22b   :  { %1811 = vmatpush1.bf16.msra.mxu1 %v7898_v3  ;;  %2501 = vmatpush1.bf16.msra.mxu0 %v7986_v4  ;;  %v1062_v3 = vld [vmem:[#allocation7 + $0x390] sm:$0xff] }
 0x22c   :  { %1812 = vmatprep.subr.bf16.mxu1 %v7907_v5  ;;  %2502 = vmatprep.subr.bf16.mxu0 %v7989_v6  ;;  %v1066_v4 = vld [vmem:[#allocation7 + $0x3b0] sm:$0xff]  ;;  %v1916_v5 = vld [vmem:[#allocation2 + $0x388] sm:$0xff] }
 0x22d   :  { %v1917_v6 = vld [vmem:[#allocation2 + $0x3a8] sm:$0xff]  ;;  %v7963_v19 = vcombine.high %v1062_v3, %v1066_v4  ;;  %v7962_v25 = vcombine.low %v1062_v3, %v1066_v4 }
 0x22e   :  { %v8003_v17 = vcombine.high %v1916_v5, %v1917_v6  ;;  %v8002_v26 = vcombine.low %v1916_v5, %v1917_v6  ;;  %v991_v6 = vld [vmem:[#allocation7 + $0x158] sm:$0xff] }
 0x22f   :  { %1813 = vmatpush1.bf16.msra.mxu1 %v7906_v20  ;;  %2503 = vmatpush1.bf16.msra.mxu0 %v7988_v22  ;;  %v1070_v20 = vld [vmem:[#allocation7 + $0x3d0] sm:$0xff] }
 0x230   :  { %1814 = vmatprep.subr.bf16.mxu1 %v7915_v23  ;;  %2504 = vmatprep.subr.bf16.mxu0 %v7991_v8  ;;  %v1074_v22 = vld [vmem:[#allocation7 + $0x3f0] sm:$0xff]  ;;  %v1918_v23 = vld [vmem:[#allocation2 + $0x3c8] sm:$0xff] }
 0x231   :  { %v1919_v8 = vld [vmem:[#allocation2 + $0x3e8] sm:$0xff]  ;;  %v7971_v27 = vcombine.high %v1070_v20, %v1074_v22  ;;  %v7970_v33 = vcombine.low %v1070_v20, %v1074_v22 }
 0x232   :  { %v8005_v28 = vcombine.high %v1918_v23, %v1919_v8  ;;  %v8004_v34 = vcombine.low %v1918_v23, %v1919_v8  ;;  %v999_v8 = vld [vmem:[#allocation7 + $0x198] sm:$0xff] }
 0x233   :  { %1815 = vmatpush1.bf16.msra.mxu1 %v7914_v29  ;;  %2505 = vmatpush1.bf16.msra.mxu0 %v7990_v30  ;;  %v951_v29 = vld [vmem:[#allocation7 + $0x18] sm:$0xff] }
 0x234   :  { %1816 = vmatprep.subr.bf16.mxu1 %v7923_v31  ;;  %2506 = vmatprep.subr.bf16.mxu0 %v7993_v32  ;;  %v955_v30 = vld [vmem:[#allocation7 + $0x38] sm:$0xff]  ;;  %v1920_v31 = vld [vmem:[#allocation2 + $0x408] sm:$0xff] }
 0x235   :  { %v1921_v32 = vld [vmem:[#allocation2 + $0x428] sm:$0xff]  ;;  %v7853_v9 = vcombine.high %v951_v29, %v955_v30  ;;  %v7852_v40 = vcombine.low %v951_v29, %v955_v30 }
 0x236   :  { %v8007_v35 = vcombine.high %v1920_v31, %v1921_v32  ;;  %v8006_v41 = vcombine.low %v1920_v31, %v1921_v32  ;;  %v1007_v32 = vld [vmem:[#allocation7 + $0x1d8] sm:$0xff] }
 0x237   :  { %1817 = vmatpush1.bf16.msra.mxu1 %v7922_v36  ;;  %2507 = vmatpush1.bf16.msra.mxu0 %v7992_v37  ;;  %v959_v36 = vld [vmem:[#allocation7 + $0x58] sm:$0xff] }
 0x238   :  { %1818 = vmatprep.subr.bf16.mxu1 %v7931_v38  ;;  %2508 = vmatprep.subr.bf16.mxu0 %v7995_v39  ;;  %v963_v37 = vld [vmem:[#allocation7 + $0x78] sm:$0xff]  ;;  %v1922_v38 = vld [vmem:[#allocation2 + $0x448] sm:$0xff] }
 0x239   :  { %v1923_v39 = vld [vmem:[#allocation2 + $0x468] sm:$0xff]  ;;  %v7861_v42 = vcombine.high %v959_v36, %v963_v37  ;;  %v7860_v48 = vcombine.low %v959_v36, %v963_v37 }
 0x23a   :  { %v8009_v43 = vcombine.high %v1922_v38, %v1923_v39  ;;  %v8008_v49 = vcombine.low %v1922_v38, %v1923_v39  ;;  %v1015_v39 = vld [vmem:[#allocation7 + $0x218] sm:$0xff] }
 0x23b   :  { %1819 = vmatpush1.bf16.msra.mxu1 %v7930_v44  ;;  %2509 = vmatpush1.bf16.msra.mxu0 %v7994_v45  ;;  %v967_v44 = vld [vmem:[#allocation7 + $0x98] sm:$0xff] }
 0x23c   :  { %1820 = vmatprep.subr.bf16.mxu1 %v7939_v46  ;;  %2510 = vmatprep.subr.bf16.mxu0 %v7997_v47  ;;  %v971_v45 = vld [vmem:[#allocation7 + $0xb8] sm:$0xff]  ;;  %v1924_v46 = vld [vmem:[#allocation2 + $0x488] sm:$0xff] }
 0x23d   :  { %v1925_v47 = vld [vmem:[#allocation2 + $0x4a8] sm:$0xff]  ;;  %v7869_v50 = vcombine.high %v967_v44, %v971_v45  ;;  %v7868_v59 = vcombine.low %v967_v44, %v971_v45 }
 0x23e   :  { %v8011_v53 = vcombine.high %v1924_v46, %v1925_v47  ;;  %v8010_v60 = vcombine.low %v1924_v46, %v1925_v47  ;;  %v1023_v47 = vld [vmem:[#allocation7 + $0x258] sm:$0xff] }
 0x23f   :  { %1821 = vmatpush1.bf16.msra.mxu1 %v7938_v55  ;;  %2511 = vmatpush1.bf16.msra.mxu0 %v7996_v56  ;;  %v975_v55 = vld [vmem:[#allocation7 + $0xd8] sm:$0xff] }
 0x240   :  { %1822 = vmatprep.subr.bf16.mxu1 %v7947_v57  ;;  %2512 = vmatprep.subr.bf16.mxu0 %v7999_v58  ;;  %v979_v56 = vld [vmem:[#allocation7 + $0xf8] sm:$0xff]  ;;  %v1926_v57 = vld [vmem:[#allocation2 + $0x4c8] sm:$0xff] }
 0x241   :  { %v1927_v58 = vld [vmem:[#allocation2 + $0x4e8] sm:$0xff]  ;;  %v7877_v61 = vcombine.high %v975_v55, %v979_v56 }
 0x242   :  { %v8012_v3 = vcombine.low %v1926_v57, %v1927_v58 }
 0x243   :  { %1823 = vmatpush1.bf16.msra.mxu1 %v7946_v63  ;;  %2513 = vmatpush1.bf16.msra.mxu0 %v7998_v0  ;;  %v987_v63 = vld [vmem:[#allocation7 + $0x138] sm:$0xff]  ;;  %v1928_v0 = vld [vmem:[#allocation2 + $0x508] sm:$0xff] }
 0x244   :  { %1824 = vmatprep.subr.bf16.mxu1 %v7955_v1  ;;  %2514 = vmatprep.subr.bf16.mxu0 %v8001_v2  ;;  %v1929_v1 = vld [vmem:[#allocation2 + $0x528] sm:$0xff]  ;;  %v7876_v2 = vcombine.low %v975_v55, %v979_v56  ;;  %v7885_v4 = vcombine.high %v983_v62, %v987_v63 }
 0x245   :  { %v8015_v5 = vcombine.high %v1928_v0, %v1929_v1  ;;  %v8014_v20 = vcombine.low %v1928_v0, %v1929_v1  ;;  %v1039_v1 = vld [vmem:[#allocation7 + $0x2d8] sm:$0xff] }
 0x247   :  { %1825 = vmatpush1.bf16.msra.mxu1 %v7954_v7  ;;  %2515 = vmatpush1.bf16.msra.mxu0 %v8000_v10  ;;  %v995_v7 = vld [vmem:[#allocation7 + $0x178] sm:$0xff]  ;;  %v1930_v10 = vld [vmem:[#allocation2 + $0x548] sm:$0xff] }
 0x248   :  { %1826 = vmatprep.subr.bf16.mxu1 %v7963_v19  ;;  %2516 = vmatprep.subr.bf16.mxu0 %v8003_v17  ;;  %v1931_v19 = vld [vmem:[#allocation2 + $0x568] sm:$0xff]  ;;  %v7884_v17 = vcombine.low %v983_v62, %v987_v63  ;;  %v7893_v22 = vcombine.high %v991_v6, %v995_v7 }
 0x249   :  { %v8017_v23 = vcombine.high %v1930_v10, %v1931_v19  ;;  %v8016_v29 = vcombine.low %v1930_v10, %v1931_v19  ;;  %v1047_v19 = vld [vmem:[#allocation7 + $0x318] sm:$0xff] }
 0x24b   :  { %1827 = vmatpush1.bf16.msra.mxu1 %v7962_v25  ;;  %2517 = vmatpush1.bf16.msra.mxu0 %v8002_v26  ;;  %v1003_v25 = vld [vmem:[#allocation7 + $0x1b8] sm:$0xff]  ;;  %v1932_v26 = vld [vmem:[#allocation2 + $0x588] sm:$0xff] }
 0x24c   :  { %1828 = vmatprep.subr.bf16.mxu1 %v7971_v27  ;;  %2518 = vmatprep.subr.bf16.mxu0 %v8005_v28  ;;  %v1933_v27 = vld [vmem:[#allocation2 + $0x5a8] sm:$0xff]  ;;  %v7892_v28 = vcombine.low %v991_v6, %v995_v7  ;;  %v7901_v30 = vcombine.high %v999_v8, %v1003_v25 }
 0x24d   :  { %v8019_v31 = vcombine.high %v1932_v26, %v1933_v27  ;;  %v8018_v36 = vcombine.low %v1932_v26, %v1933_v27  ;;  %v1055_v27 = vld [vmem:[#allocation7 + $0x358] sm:$0xff] }
 0x24f   :  { %1829 = vmatpush1.bf16.msra.mxu1 %v7970_v33  ;;  %2519 = vmatpush1.bf16.msra.mxu0 %v8004_v34  ;;  %v1011_v33 = vld [vmem:[#allocation7 + $0x1f8] sm:$0xff]  ;;  %v1934_v34 = vld [vmem:[#allocation2 + $0x5c8] sm:$0xff] }
 0x250   :  { %1839 = vmatprep.subr.bf16.mxu1 %v7853_v9  ;;  %2529 = vmatprep.subr.bf16.mxu0 %v8007_v35  ;;  %v1935_v9 = vld [vmem:[#allocation2 + $0x5e8] sm:$0xff]  ;;  %v7900_v35 = vcombine.low %v999_v8, %v1003_v25  ;;  %v7909_v37 = vcombine.high %v1007_v32, %v1011_v33 }
 0x251   :  { %v8021_v38 = vcombine.high %v1934_v34, %v1935_v9  ;;  %v8020_v44 = vcombine.low %v1934_v34, %v1935_v9  ;;  %v1063_v9 = vld [vmem:[#allocation7 + $0x398] sm:$0xff] }
 0x252   :  { %1831 = vmatmul.mubr.bf16.vlgmr.msra.gmra.mrb[8].mxu1 %v9349_v14  ;;  %2521 = vmatmul.mubr.bf16.vlgmr.msra.gmra.mrb[8].mxu0 %v9304_v12 }
 0x253   :  { %1840 = vmatpush1.bf16.msra.mxu1 %v7852_v40  ;;  %1871 = vmatprep.mubr.bf16.mxu1 %v9347_v11  ;;  %v8013_v11 = vcombine.high %v1926_v57, %v1927_v58  ;;  %v1019_v40 = vld [vmem:[#allocation7 + $0x238] sm:$0xff] }
 0x254   :  { %2530 = vmatpush1.bf16.msra.mxu0 %v8006_v41  ;;  %1841 = vmatprep.subr.bf16.mxu1 %v7861_v42  ;;  %v1936_v41 = vld [vmem:[#allocation2 + $0x608] sm:$0xff]  ;;  %v7917_v45 = vcombine.high %v1015_v39, %v1019_v40  ;;  %v1031_v58 = vld [vmem:[#allocation7 + $0x298] sm:$0xff] }
 0x255   :  { %2531 = vmatprep.subr.bf16.mxu0 %v8009_v43  ;;  %2561 = vmatprep.mubr.bf16.mxu0 %v9308_v16  ;;  %v1937_v42 = vld [vmem:[#allocation2 + $0x628] sm:$0xff]  ;;  %v7908_v43 = vcombine.low %v1007_v32, %v1011_v33 }
 0x256   :  { %v8023_v46 = vcombine.high %v1936_v41, %v1937_v42  ;;  %v8022_v55 = vcombine.low %v1936_v41, %v1937_v42  ;;  %v1071_v42 = vld [vmem:[#allocation7 + $0x3d8] sm:$0xff] }
 0x257   :  { %1842 = vmatpush1.bf16.msra.mxu1 %v7860_v48  ;;  %v1027_v48 = vld [vmem:[#allocation7 + $0x278] sm:$0xff] }
 0x258   :  { %2532 = vmatpush1.bf16.msra.mxu0 %v8008_v49  ;;  %1843 = vmatprep.subr.bf16.mxu1 %v7869_v50  ;;  %v1938_v49 = vld [vmem:[#allocation2 + $0x648] sm:$0xff]  ;;  %v7925_v56 = vcombine.high %v1023_v47, %v1027_v48 }
 0x259   :  { %2533 = vmatprep.subr.bf16.mxu0 %v8011_v53  ;;  %v1939_v50 = vld [vmem:[#allocation2 + $0x668] sm:$0xff]  ;;  %v7916_v53 = vcombine.low %v1015_v39, %v1019_v40 }
 0x25a   :  { %v8025_v57 = vcombine.high %v1938_v49, %v1939_v50  ;;  %v8024_v62 = vcombine.low %v1938_v49, %v1939_v50  ;;  %v1984_v50 = vld [vmem:[#allocation2 + $0xc08] sm:$0xff] }
 0x25b   :  { %1844 = vmatpush1.bf16.msra.mxu1 %v7868_v59  ;;  %v1035_v59 = vld [vmem:[#allocation7 + $0x2b8] sm:$0xff] }
 0x25c   :  { %2534 = vmatpush1.bf16.msra.mxu0 %v8010_v60  ;;  %1845 = vmatprep.subr.bf16.mxu1 %v7877_v61  ;;  %v1940_v60 = vld [vmem:[#allocation2 + $0x688] sm:$0xff]  ;;  %v7933_v63 = vcombine.high %v1031_v58, %v1035_v59 }
 0x25d   :  { %2535 = vmatprep.subr.bf16.mxu0 %v8013_v11  ;;  %v1941_v61 = vld [vmem:[#allocation2 + $0x6a8] sm:$0xff]  ;;  %v7924_v11 = vcombine.low %v1023_v47, %v1027_v48 }
 0x25e   :  { %v8027_v0 = vcombine.high %v1940_v60, %v1941_v61  ;;  %v8026_v6 = vcombine.low %v1940_v60, %v1941_v61  ;;  %v1954_v61 = vld [vmem:[#allocation2 + $0x848] sm:$0xff] }
 0x25f   :  { %1846 = vmatpush1.bf16.msra.mxu1 %v7876_v2  ;;  %v1043_v2 = vld [vmem:[#allocation7 + $0x2f8] sm:$0xff] }
 0x260   :  { %2536 = vmatpush1.bf16.msra.mxu0 %v8012_v3  ;;  %1847 = vmatprep.subr.bf16.mxu1 %v7885_v4  ;;  %v1942_v3 = vld [vmem:[#allocation2 + $0x6c8] sm:$0xff]  ;;  %v7941_v7 = vcombine.high %v1039_v1, %v1043_v2 }
 0x261   :  { %2537 = vmatprep.subr.bf16.mxu0 %v8015_v5  ;;  %v1943_v4 = vld [vmem:[#allocation2 + $0x6e8] sm:$0xff]  ;;  %v7932_v5 = vcombine.low %v1031_v58, %v1035_v59 }
 0x262   :  { %v8029_v10 = vcombine.high %v1942_v3, %v1943_v4  ;;  %v8028_v8 = vcombine.low %v1942_v3, %v1943_v4 }
 0x263   :  { %1848 = vmatpush1.bf16.msra.mxu1 %v7884_v17  ;;  %v1051_v17 = vld [vmem:[#allocation7 + $0x338] sm:$0xff] }
 0x264   :  { %2538 = vmatpush1.bf16.msra.mxu0 %v8014_v20  ;;  %1849 = vmatprep.subr.bf16.mxu1 %v7893_v22  ;;  %v1944_v20 = vld [vmem:[#allocation2 + $0x708] sm:$0xff]  ;;  %v7949_v25 = vcombine.high %v1047_v19, %v1051_v17 }
 0x265   :  { %2539 = vmatprep.subr.bf16.mxu0 %v8017_v23  ;;  %v1945_v22 = vld [vmem:[#allocation2 + $0x728] sm:$0xff]  ;;  %v7940_v23 = vcombine.low %v1039_v1, %v1043_v2 }
 0x266   :  { %v8031_v26 = vcombine.high %v1944_v20, %v1945_v22  ;;  %v8030_v32 = vcombine.low %v1944_v20, %v1945_v22  ;;  %v1956_v1 = vld [vmem:[#allocation2 + $0x888] sm:$0xff] }
 0x267   :  { %1850 = vmatpush1.bf16.msra.mxu1 %v7892_v28  ;;  %v1059_v28 = vld [vmem:[#allocation7 + $0x378] sm:$0xff]  ;;  %v1957_v2 = vld [vmem:[#allocation2 + $0x8a8] sm:$0xff] }
 0x268   :  { %2540 = vmatpush1.bf16.msra.mxu0 %v8016_v29  ;;  %1851 = vmatprep.subr.bf16.mxu1 %v7901_v30  ;;  %v1946_v29 = vld [vmem:[#allocation2 + $0x748] sm:$0xff]  ;;  %v7957_v33 = vcombine.high %v1055_v27, %v1059_v28  ;;  %v8043_v4 = vcombine.high %v1956_v1, %v1957_v2 }
 0x269   :  { %2541 = vmatprep.subr.bf16.mxu0 %v8019_v31  ;;  %v1947_v30 = vld [vmem:[#allocation2 + $0x768] sm:$0xff]  ;;  %v7948_v31 = vcombine.low %v1047_v19, %v1051_v17  ;;  %v9368_v17 = vld [vmem:[%s9505_s0 + $0x18] ss:$0 sps:$4 sm:$0xff]  }
 0x26a   :  { %v8033_v34 = vcombine.high %v1946_v29, %v1947_v30  ;;  %v8032_v39 = vcombine.low %v1946_v29, %v1947_v30  ;;  %v1961_v19 = vld [vmem:[#allocation2 + $0x928] sm:$0xff] }
 0x26b   :  { %1852 = vmatpush1.bf16.msra.mxu1 %v7900_v35  ;;  %v1067_v35 = vld [vmem:[#allocation7 + $0x3b8] sm:$0xff] }
 0x26c   :  { %2542 = vmatpush1.bf16.msra.mxu0 %v8018_v36  ;;  %1853 = vmatprep.subr.bf16.mxu1 %v7909_v37  ;;  %v1948_v36 = vld [vmem:[#allocation2 + $0x788] sm:$0xff]  ;;  %v7965_v40 = vcombine.high %v1063_v9, %v1067_v35 }
 0x26d   :  { %2543 = vmatprep.subr.bf16.mxu0 %v8021_v38  ;;  %v1949_v37 = vld [vmem:[#allocation2 + $0x7a8] sm:$0xff]  ;;  %v7956_v38 = vcombine.low %v1055_v27, %v1059_v28 }
 0x26e   :  { %v8035_v41 = vcombine.high %v1948_v36, %v1949_v37  ;;  %v8034_v47 = vcombine.low %v1948_v36, %v1949_v37  ;;  %v1964_v27 = vld [vmem:[#allocation2 + $0x988] sm:$0xff] }
 0x26f   :  { %1854 = vmatpush1.bf16.msra.mxu1 %v7908_v43  ;;  %v1075_v43 = vld [vmem:[#allocation7 + $0x3f8] sm:$0xff]  ;;  %v1965_v28 = vld [vmem:[#allocation2 + $0x9a8] sm:$0xff] }
 0x270   :  { %2544 = vmatpush1.bf16.msra.mxu0 %v8020_v44  ;;  %1855 = vmatprep.subr.bf16.mxu1 %v7917_v45  ;;  %v1950_v44 = vld [vmem:[#allocation2 + $0x7c8] sm:$0xff]  ;;  %v7973_v48 = vcombine.high %v1071_v42, %v1075_v43  ;;  %v8051_v30 = vcombine.high %v1964_v27, %v1965_v28 }
 0x271   :  { %2545 = vmatprep.subr.bf16.mxu0 %v8023_v46  ;;  %v1951_v45 = vld [vmem:[#allocation2 + $0x7e8] sm:$0xff]  ;;  %v7964_v46 = vcombine.low %v1063_v9, %v1067_v35 }
 0x272   :  { %v8037_v49 = vcombine.high %v1950_v44, %v1951_v45  ;;  %v8036_v58 = vcombine.low %v1950_v44, %v1951_v45  ;;  %v1968_v9 = vld [vmem:[#allocation2 + $0xa08] sm:$0xff] }
 0x273   :  { %1856 = vmatpush1.bf16.msra.mxu1 %v7916_v53  ;;  %v1985_v53 = vld [vmem:[#allocation2 + $0xc28] sm:$0xff] }
 0x274   :  { %2546 = vmatpush1.bf16.msra.mxu0 %v8022_v55  ;;  %1857 = vmatprep.subr.bf16.mxu1 %v7925_v56  ;;  %v1952_v55 = vld [vmem:[#allocation2 + $0x808] sm:$0xff]  ;;  %v8071_v59 = vcombine.high %v1984_v50, %v1985_v53 }
 0x275   :  { %2547 = vmatprep.subr.bf16.mxu0 %v8025_v57  ;;  %v1953_v56 = vld [vmem:[#allocation2 + $0x828] sm:$0xff]  ;;  %v7972_v57 = vcombine.low %v1071_v42, %v1075_v43 }
 0x276   :  { %v8039_v60 = vcombine.high %v1952_v55, %v1953_v56  ;;  %v1969_v35 = vld [vmem:[#allocation2 + $0xa28] sm:$0xff] }
 0x277   :  { %1858 = vmatpush1.bf16.msra.mxu1 %v7924_v11  ;;  %v1955_v11 = vld [vmem:[#allocation2 + $0x868] sm:$0xff]  ;;  %v8055_v37 = vcombine.high %v1968_v9, %v1969_v35 }
 0x278   :  { %2548 = vmatpush1.bf16.msra.mxu0 %v8024_v62  ;;  %1859 = vmatprep.subr.bf16.mxu1 %v7933_v63  ;;  %v8070_v62 = vcombine.low %v1984_v50, %v1985_v53  ;;  %v8038_v63 = vcombine.low %v1952_v55, %v1953_v56  ;;  %v8040_v3 = vcombine.low %v1954_v61, %v1955_v11  ;;  %v1972_v42 = vld [vmem:[#allocation2 + $0xa88] sm:$0xff] }
 0x279   :  { %2549 = vmatprep.subr.bf16.mxu0 %v8027_v0  ;;  %v8041_v0 = vcombine.high %v1954_v61, %v1955_v11  ;;  %v1973_v43 = vld [vmem:[#allocation2 + $0xaa8] sm:$0xff] }
 0x27a   :  { %v8059_v45 = vcombine.high %v1972_v42, %v1973_v43  ;;  %v1976_v50 = vld [vmem:[#allocation2 + $0xb08] sm:$0xff] }
 0x27b   :  { %1860 = vmatpush1.bf16.msra.mxu1 %v7932_v5  ;;  %v1958_v5 = vld [vmem:[#allocation2 + $0x8c8] sm:$0xff] }
 0x27c   :  { %2550 = vmatpush1.bf16.msra.mxu0 %v8026_v6  ;;  %1861 = vmatprep.subr.bf16.mxu1 %v7941_v7  ;;  %v1959_v6 = vld [vmem:[#allocation2 + $0x8e8] sm:$0xff]  ;;  %v8042_v7 = vcombine.low %v1956_v1, %v1957_v2 }
 0x27d   :  { %2551 = vmatprep.subr.bf16.mxu0 %v8029_v10  ;;  %v8045_v10 = vcombine.high %v1958_v5, %v1959_v6  ;;  %v8044_v20 = vcombine.low %v1958_v5, %v1959_v6  ;;  %v1977_v53 = vld [vmem:[#allocation2 + $0xb28] sm:$0xff]  ;;  %v3599_v5 = vld [vmem:[#allocation2 + $0x30] sm:$0xff] }
 0x27e   :  { %v8063_v56 = vcombine.high %v1976_v50, %v1977_v53  ;;  %v1980_v61 = vld [vmem:[#allocation2 + $0xb88] sm:$0xff] }
 0x27f   :  { %1862 = vmatpush1.bf16.msra.mxu1 %v7940_v23  ;;  %v1962_v23 = vld [vmem:[#allocation2 + $0x948] sm:$0xff] }
 0x280   :  { %2552 = vmatpush1.bf16.msra.mxu0 %v8028_v8  ;;  %1863 = vmatprep.subr.bf16.mxu1 %v7949_v25  ;;  %v1963_v8 = vld [vmem:[#allocation2 + $0x968] sm:$0xff] }
 0x281   :  { %2553 = vmatprep.subr.bf16.mxu0 %v8031_v26  ;;  %v8049_v26 = vcombine.high %v1962_v23, %v1963_v8  ;;  %v8048_v29 = vcombine.low %v1962_v23, %v1963_v8  ;;  %v1981_v11 = vld [vmem:[#allocation2 + $0xba8] sm:$0xff]  ;;  %v3603_v23 = vld [vmem:[#allocation2 + $0xb0] sm:$0xff] }
 0x282   :  { %v1983_v1 = vld [vmem:[#allocation2 + $0xbe8] sm:$0xff]  ;;  %v8066_v2 = vcombine.low %v1980_v61, %v1981_v11 }
 0x283   :  { %1864 = vmatpush1.bf16.msra.mxu1 %v7948_v31  ;;  %v1966_v31 = vld [vmem:[#allocation2 + $0x9c8] sm:$0xff] }
 0x284   :  { %2554 = vmatpush1.bf16.msra.mxu0 %v8030_v32  ;;  %1865 = vmatprep.subr.bf16.mxu1 %v7957_v33  ;;  %v1967_v32 = vld [vmem:[#allocation2 + $0x9e8] sm:$0xff]  ;;  %v8050_v33 = vcombine.low %v1964_v27, %v1965_v28  ;;  %v3605_v27 = vld [vmem:[#allocation2 + $0xf0] sm:$0xff] }
 0x285   :  { %2555 = vmatprep.subr.bf16.mxu0 %v8033_v34  ;;  %v8053_v34 = vcombine.high %v1966_v31, %v1967_v32  ;;  %v8052_v36 = vcombine.low %v1966_v31, %v1967_v32  ;;  %v3607_v31 = vld [vmem:[#allocation2 + $0x130] sm:$0xff] }
 0x287   :  { %1866 = vmatpush1.bf16.msra.mxu1 %v7956_v38  ;;  %v1970_v38 = vld [vmem:[#allocation2 + $0xa48] sm:$0xff] }
 0x288   :  { %2556 = vmatpush1.bf16.msra.mxu0 %v8032_v39  ;;  %1867 = vmatprep.subr.bf16.mxu1 %v7965_v40  ;;  %v1971_v39 = vld [vmem:[#allocation2 + $0xa68] sm:$0xff]  ;;  %v8054_v40 = vcombine.low %v1968_v9, %v1969_v35  ;;  %v3609_v9 = vld [vmem:[#allocation2 + $0x170] sm:$0xff] }
 0x289   :  { %2557 = vmatprep.subr.bf16.mxu0 %v8035_v41  ;;  %v8057_v41 = vcombine.high %v1970_v38, %v1971_v39  ;;  %v8056_v44 = vcombine.low %v1970_v38, %v1971_v39  ;;  %v3611_v38 = vld [vmem:[#allocation2 + $0x1b0] sm:$0xff] }
 0x28b   :  { %1868 = vmatpush1.bf16.msra.mxu1 %v7964_v46  ;;  %v1974_v46 = vld [vmem:[#allocation2 + $0xac8] sm:$0xff] }
 0x28c   :  { %2558 = vmatpush1.bf16.msra.mxu0 %v8034_v47  ;;  %1869 = vmatprep.subr.bf16.mxu1 %v7973_v48  ;;  %v1975_v47 = vld [vmem:[#allocation2 + $0xae8] sm:$0xff]  ;;  %v8058_v48 = vcombine.low %v1972_v42, %v1973_v43  ;;  %v3612_v43 = vld [vmem:[#allocation2 + $0x1d0] sm:$0xff] }
 0x28d   :  { %2559 = vmatprep.subr.bf16.mxu0 %v8037_v49  ;;  %v8061_v49 = vcombine.high %v1974_v46, %v1975_v47  ;;  %v8060_v55 = vcombine.low %v1974_v46, %v1975_v47 }
 0x28f   :  { %1870 = vmatpush1.bf16.msra.mxu1 %v7972_v57  ;;  %v1978_v57 = vld [vmem:[#allocation2 + $0xb48] sm:$0xff] }
 0x290   :  { %2560 = vmatpush1.bf16.msra.mxu0 %v8036_v58  ;;  %2611 = vmatprep.subr.bf16.mxu1 %v8071_v59  ;;  %v1979_v58 = vld [vmem:[#allocation2 + $0xb68] sm:$0xff]  ;;  %v8062_v59 = vcombine.low %v1976_v50, %v1977_v53  ;;  %v3615_v50 = vld [vmem:[#allocation2 + $0x230] sm:$0xff] }
 0x291   :  { %2570 = vmatprep.subr.bf16.mxu0 %v8039_v60  ;;  %v8065_v60 = vcombine.high %v1978_v57, %v1979_v58 }
 0x292   :  { %1872 = vmatmul.mubr.bf16.vlgmr.msra.gmra.mrb[12].mxu1 %v9349_v14  ;;  %v1960_v14 = vld [vmem:[#allocation2 + $0x908] sm:$0xff] }
 0x293   :  { %2562 = vmatmul.mubr.bf16.vlgmr.msra.gmra.mrb[8].mxu0 %v9324_v13  ;;  %2612 = vmatpush1.bf16.msra.mxu1 %v8070_v62  ;;  %v8047_v22 = vcombine.high %v1960_v14, %v1961_v19  ;;  %v8046_v25 = vcombine.low %v1960_v14, %v1961_v19  ;;  %v8064_v62 = vcombine.low %v1978_v57, %v1979_v58  ;;  %v3601_v14 = vld [vmem:[#allocation2 + $0x70] sm:$0xff]  ;;  %v2658_v58 = vld [vmem:[#allocation7 + $0x400] sm:$0xff] }
 0x294   :  { %2571 = vmatpush1.bf16.msra.mxu0 %v8038_v63  ;;  %2643 = vmatprep.mubr.bf16.mxu1 %v9173_v21  ;;  %v8067_v63 = vcombine.high %v1980_v61, %v1981_v11  ;;  %v3617_v57 = vld [vmem:[#allocation2 + $0x270] sm:$0xff] }
 0x295   :  { %2572 = vmatprep.subr.bf16.mxu0 %v8041_v0  ;;  %2602 = vmatprep.mubr.bf16.mxu0 %v9328_v15  ;;  %v1982_v0 = vld [vmem:[#allocation2 + $0xbc8] sm:$0xff] }
 0x296   :  { %v8068_v6 = vcombine.low %v1982_v0, %v1983_v1 }
 0x298   :  { %2573 = vmatpush1.bf16.msra.mxu0 %v8040_v3  ;;  %v8069_v3 = vcombine.high %v1982_v0, %v1983_v1  ;;  %v3619_v0 = vld [vmem:[#allocation2 + $0x2b0] sm:$0xff]  ;;  %v2666_v1 = vld [vmem:[#allocation7 + $0x440] sm:$0xff] }
 0x299   :  { %2574 = vmatprep.subr.bf16.mxu0 %v8043_v4  ;;  %v3598_v4 = vld [vmem:[#allocation2 + $0x10] sm:$0xff] }
 0x29a   :  { %8072 = vmatmul.mubr.msk.bf16.vlgmr.msra.gmra.mrb[16].mxu1 %vm774_vm0, %v9368_v17  ;;  %v8201_v19 = vcombine.low %v3598_v4, %v3599_v5 }
 0x29c   :  { %2575 = vmatpush1.bf16.msra.mxu0 %v8042_v7  ;;  %v8202_v7 = vcombine.high %v3598_v4, %v3599_v5 }
 0x29d   :  { %2576 = vmatprep.subr.bf16.mxu0 %v8045_v10  ;;  %v3600_v10 = vld [vmem:[#allocation2 + $0x50] sm:$0xff] }
 0x29e   :  { %v8203_v8 = vcombine.low %v3600_v10, %v3601_v14 }
 0x2a0   :  { %2577 = vmatpush1.bf16.msra.mxu0 %v8044_v20  ;;  %v8204_v20 = vcombine.high %v3600_v10, %v3601_v14  ;;  %v3621_v10 = vld [vmem:[#allocation2 + $0x2f0] sm:$0xff]  ;;  %v2674_v14 = vld [vmem:[#allocation7 + $0x480] sm:$0xff] }
 0x2a1   :  { %2578 = vmatprep.subr.bf16.mxu0 %v8047_v22  ;;  %v3602_v22 = vld [vmem:[#allocation2 + $0x90] sm:$0xff] }
 0x2a2   :  { %v8205_v28 = vcombine.low %v3602_v22, %v3603_v23 }
 0x2a4   :  { %2579 = vmatpush1.bf16.msra.mxu0 %v8046_v25  ;;  %v8206_v25 = vcombine.high %v3602_v22, %v3603_v23 }
 0x2a5   :  { %2580 = vmatprep.subr.bf16.mxu0 %v8049_v26  ;;  %v3604_v26 = vld [vmem:[#allocation2 + $0xd0] sm:$0xff] }
 0x2a6   :  { %v8207_v32 = vcombine.low %v3604_v26, %v3605_v27 }
 0x2a8   :  { %2581 = vmatpush1.bf16.msra.mxu0 %v8048_v29  ;;  %v8208_v29 = vcombine.high %v3604_v26, %v3605_v27  ;;  %v3623_v26 = vld [vmem:[#allocation2 + $0x330] sm:$0xff]  ;;  %v2682_v27 = vld [vmem:[#allocation7 + $0x4c0] sm:$0xff] }
 0x2a9   :  { %2582 = vmatprep.subr.bf16.mxu0 %v8051_v30  ;;  %v3606_v30 = vld [vmem:[#allocation2 + $0x110] sm:$0xff] }
 0x2aa   :  { %v8209_v35 = vcombine.low %v3606_v30, %v3607_v31 }
 0x2ac   :  { %2583 = vmatpush1.bf16.msra.mxu0 %v8050_v33  ;;  %v8210_v33 = vcombine.high %v3606_v30, %v3607_v31 }
 0x2ad   :  { %2584 = vmatprep.subr.bf16.mxu0 %v8053_v34  ;;  %v3608_v34 = vld [vmem:[#allocation2 + $0x150] sm:$0xff] }
 0x2ae   :  { %v8211_v39 = vcombine.low %v3608_v34, %v3609_v9 }
 0x2b0   :  { %2585 = vmatpush1.bf16.msra.mxu0 %v8052_v36  ;;  %v8212_v36 = vcombine.high %v3608_v34, %v3609_v9  ;;  %v3625_v34 = vld [vmem:[#allocation2 + $0x370] sm:$0xff]  ;;  %v2690_v9 = vld [vmem:[#allocation7 + $0x500] sm:$0xff] }
 0x2b1   :  { %2586 = vmatprep.subr.bf16.mxu0 %v8055_v37  ;;  %v3610_v37 = vld [vmem:[#allocation2 + $0x190] sm:$0xff] }
 0x2b2   :  { %v8213_v47 = vcombine.low %v3610_v37, %v3611_v38 }
 0x2b4   :  { %2587 = vmatpush1.bf16.msra.mxu0 %v8054_v40 }
 0x2b5   :  { %2588 = vmatprep.subr.bf16.mxu0 %v8057_v41  ;;  %v8214_v41 = vcombine.high %v3610_v37, %v3611_v38 }
 0x2b8   :  { %2589 = vmatpush1.bf16.msra.mxu0 %v8056_v44  ;;  %v3613_v44 = vld [vmem:[#allocation2 + $0x1f0] sm:$0xff] }
 0x2b9   :  { %2590 = vmatprep.subr.bf16.mxu0 %v8059_v45  ;;  %v8215_v53 = vcombine.low %v3612_v43, %v3613_v44 }
 0x2bc   :  { %2591 = vmatpush1.bf16.msra.mxu0 %v8058_v48  ;;  %v8216_v48 = vcombine.high %v3612_v43, %v3613_v44  ;;  %v3627_v43 = vld [vmem:[#allocation2 + $0x3b0] sm:$0xff]  ;;  %v2698_v44 = vld [vmem:[#allocation7 + $0x540] sm:$0xff] }
 0x2bd   :  { %2592 = vmatprep.subr.bf16.mxu0 %v8061_v49  ;;  %v3614_v49 = vld [vmem:[#allocation2 + $0x210] sm:$0xff] }
 0x2c0   :  { %2593 = vmatpush1.bf16.msra.mxu0 %v8060_v55  ;;  %v8218_v55 = vcombine.high %v3614_v49, %v3615_v50 }
 0x2c1   :  { %2594 = vmatprep.subr.bf16.mxu0 %v8063_v56  ;;  %v3616_v56 = vld [vmem:[#allocation2 + $0x250] sm:$0xff] }
 0x2c4   :  { %2595 = vmatpush1.bf16.msra.mxu0 %v8062_v59  ;;  %v2662_v59 = vld [vmem:[#allocation7 + $0x420] sm:$0xff] }
 0x2c5   :  { %2596 = vmatprep.subr.bf16.mxu0 %v8065_v60  ;;  %v8217_v60 = vcombine.low %v3614_v49, %v3615_v50  ;;  %v8073_v61 = vcombine.low %v2658_v58, %v2662_v59  ;;  %v8074_v11 = vcombine.high %v2658_v58, %v2662_v59  ;;  %v3628_v50 = vld [vmem:[#allocation2 + $0x3d0] sm:$0xff] }
 0x2c7   :  { %3426 = vmatprep.subr.bf16.mxu1 %v8074_v11  ;;  %v3631_v11 = vld [vmem:[#allocation2 + $0x430] sm:$0xff] }
 0x2c8   :  { %2597 = vmatpush1.bf16.msra.mxu0 %v8064_v62  ;;  %v8220_v62 = vcombine.high %v3616_v56, %v3617_v57  ;;  %3427 = vmatpush1.bf16.msra.mxu1 %v8073_v61  ;;  %v3630_v61 = vld [vmem:[#allocation2 + $0x410] sm:$0xff] }
 0x2c9   :  { %2598 = vmatprep.subr.bf16.mxu0 %v8067_v63  ;;  %v3618_v63 = vld [vmem:[#allocation2 + $0x290] sm:$0xff] }
 0x2cc   :  { %2599 = vmatpush1.bf16.msra.mxu0 %v8066_v2  ;;  %v2670_v2 = vld [vmem:[#allocation7 + $0x460] sm:$0xff] }
 0x2cd   :  { %2600 = vmatprep.subr.bf16.mxu0 %v8069_v3  ;;  %v8219_v3 = vcombine.low %v3616_v56, %v3617_v57  ;;  %v8081_v4 = vcombine.low %v2666_v1, %v2670_v2  ;;  %v8082_v5 = vcombine.high %v2666_v1, %v2670_v2  ;;  %v2710_v56 = vld [vmem:[#allocation7 + $0x5a0] sm:$0xff] }
 0x2cf   :  { %3428 = vmatprep.subr.bf16.mxu1 %v8082_v5  ;;  %v3633_v5 = vld [vmem:[#allocation2 + $0x470] sm:$0xff] }
 0x2d0   :  { %2601 = vmatpush1.bf16.msra.mxu0 %v8068_v6  ;;  %v8222_v6 = vcombine.high %v3618_v63, %v3619_v0  ;;  %3429 = vmatpush1.bf16.msra.mxu1 %v8081_v4  ;;  %v3632_v4 = vld [vmem:[#allocation2 + $0x450] sm:$0xff] }
 0x2d1   :  { %4198 = vmatprep.subr.bf16.mxu0 %v8202_v7  ;;  %v3620_v7 = vld [vmem:[#allocation2 + $0x2d0] sm:$0xff] }
 0x2d3   :  { %2603 = vmatmul.mubr.bf16.vlgmr.msra.gmra.mrb[8].mxu0 %v9334_v24 }
 0x2d4   :  { %4199 = vmatpush1.bf16.msra.mxu0 %v8201_v19  ;;  %4230 = vmatprep.mubr.bf16.mxu0 %v9294_v18  ;;  %v2678_v19 = vld [vmem:[#allocation7 + $0x4a0] sm:$0xff] }
 0x2d5   :  { %4200 = vmatprep.subr.bf16.mxu0 %v8204_v20  ;;  %v8221_v20 = vcombine.low %v3618_v63, %v3619_v0  ;;  %v8089_v22 = vcombine.low %v2674_v14, %v2678_v19  ;;  %v8090_v23 = vcombine.high %v2674_v14, %v2678_v19  ;;  %v2718_v63 = vld [vmem:[#allocation7 + $0x5e0] sm:$0xff] }
 0x2d7   :  { %3430 = vmatprep.subr.bf16.mxu1 %v8090_v23  ;;  %v3635_v23 = vld [vmem:[#allocation2 + $0x4b0] sm:$0xff] }
 0x2d8   :  { %4201 = vmatpush1.bf16.msra.mxu0 %v8203_v8  ;;  %v8224_v8 = vcombine.high %v3620_v7, %v3621_v10  ;;  %3431 = vmatpush1.bf16.msra.mxu1 %v8089_v22  ;;  %v3634_v22 = vld [vmem:[#allocation2 + $0x490] sm:$0xff] }
 0x2d9   :  { %4202 = vmatprep.subr.bf16.mxu0 %v8206_v25  ;;  %v3622_v25 = vld [vmem:[#allocation2 + $0x310] sm:$0xff] }
 0x2dc   :  { %4203 = vmatpush1.bf16.msra.mxu0 %v8205_v28  ;;  %v2686_v28 = vld [vmem:[#allocation7 + $0x4e0] sm:$0xff] }
 0x2dd   :  { %4204 = vmatprep.subr.bf16.mxu0 %v8208_v29  ;;  %v8223_v29 = vcombine.low %v3620_v7, %v3621_v10  ;;  %v8097_v30 = vcombine.low %v2682_v27, %v2686_v28  ;;  %v8098_v31 = vcombine.high %v2682_v27, %v2686_v28  ;;  %v2726_v7 = vld [vmem:[#allocation7 + $0x620] sm:$0xff]  ;;  %v8233_v10 = vcombine.low %v3630_v61, %v3631_v11 }
 0x2de   :  { %v8235_v27 = vcombine.low %v3632_v4, %v3633_v5 }
 0x2df   :  { %3432 = vmatprep.subr.bf16.mxu1 %v8098_v31  ;;  %v8238_v31 = vcombine.high %v3634_v22, %v3635_v23 }
 0x2e0   :  { %4205 = vmatpush1.bf16.msra.mxu0 %v8207_v32  ;;  %v8226_v32 = vcombine.high %v3622_v25, %v3623_v26  ;;  %3433 = vmatpush1.bf16.msra.mxu1 %v8097_v30  ;;  %v2742_v30 = vld [vmem:[#allocation7 + $0x6a0] sm:$0xff] }
 0x2e1   :  { %4206 = vmatprep.subr.bf16.mxu0 %v8210_v33  ;;  %v3624_v33 = vld [vmem:[#allocation2 + $0x350] sm:$0xff] }
 0x2e4   :  { %4207 = vmatpush1.bf16.msra.mxu0 %v8209_v35  ;;  %v2694_v35 = vld [vmem:[#allocation7 + $0x520] sm:$0xff] }
 0x2e5   :  { %v9374_v40 = vpop.f32.mrb[4].mxu0  ;;  %4208 = vmatprep.subr.bf16.mxu0 %v8212_v36  ;;  %v8225_v36 = vcombine.low %v3622_v25, %v3623_v26  ;;  %v8105_v37 = vcombine.low %v2690_v9, %v2694_v35  ;;  %v8106_v38 = vcombine.high %v2690_v9, %v2694_v35  ;;  %v2734_v25 = vld [vmem:[#allocation7 + $0x660] sm:$0xff]  ;;  %v3636_v9 = vld [vmem:[#allocation2 + $0x4d0] sm:$0xff] }
 0x2e6   :  { %v9376_v42 = vpop.f32.mrb[5].mxu0  ;;  %v2738_v26 = vld [vmem:[#allocation7 + $0x680] sm:$0xff]  ;;  %v3637_v35 = vld [vmem:[#allocation2 + $0x4f0] sm:$0xff] }
 0x2e7   :  { %v1754_v45 = vpop.f32.mrb[6].mxu0  ;;  %3434 = vmatprep.subr.bf16.mxu1 %v8106_v38 }
 0x2e8   :  { %4209 = vmatpush1.bf16.msra.mxu0 %v8211_v39  ;;  %v1755_v46 = vpop.f32.mrb[7].mxu0  ;;  %v8228_v39 = vcombine.high %v3624_v33, %v3625_v34  ;;  %3435 = vmatpush1.bf16.msra.mxu1 %v8105_v37  ;;  %v2702_v45 = vld [vmem:[#allocation7 + $0x560] sm:$0xff]  ;;  %v8237_v37 = vcombine.low %v3634_v22, %v3635_v23 }
 0x2e9   :  { %4210 = vmatprep.subr.bf16.mxu0 %v8214_v41  ;;  %v3626_v41 = vld [vmem:[#allocation2 + $0x390] sm:$0xff]  ;;  %v8227_v46 = vcombine.low %v3624_v33, %v3625_v34  ;;  %v2746_v33 = vld [vmem:[#allocation7 + $0x6c0] sm:$0xff] }
 0x2ea   :  { %v8230_v49 = vcombine.high %v3626_v41, %v3627_v43  ;;  %v8229_v57 = vcombine.low %v3626_v41, %v3627_v43  ;;  %v2750_v34 = vld [vmem:[#allocation7 + $0x6e0] sm:$0xff]  ;;  %v3638_v41 = vld [vmem:[#allocation2 + $0x510] sm:$0xff] }
 0x2eb   :  { %v8162_v38 = vcombine.high %v2746_v33, %v2750_v34  ;;  %v3639_v43 = vld [vmem:[#allocation2 + $0x530] sm:$0xff]  ;;  %v2778_v22 = vld [vmem:[#allocation7 + $0x7c0] sm:$0xff] }
 0x2ec   :  { %4211 = vmatpush1.bf16.msra.mxu0 %v8213_v47  ;;  %v8113_v47 = vcombine.low %v2698_v44, %v2702_v45  ;;  %v2782_v23 = vld [vmem:[#allocation7 + $0x7e0] sm:$0xff] }
 0x2ed   :  { %4212 = vmatprep.subr.bf16.mxu0 %v8216_v48  ;;  %v8114_v48 = vcombine.high %v2698_v44, %v2702_v45  ;;  %v8161_v44 = vcombine.low %v2746_v33, %v2750_v34  ;;  %v8239_v45 = vcombine.low %v3636_v9, %v3637_v35  ;;  %v3650_v34 = vld [vmem:[#allocation2 + $0x690] sm:$0xff] }
 0x2ef   :  { %3436 = vmatprep.subr.bf16.mxu1 %v8114_v48  ;;  %v3641_v48 = vld [vmem:[#allocation2 + $0x570] sm:$0xff] }
 0x2f0   :  { %4213 = vmatpush1.bf16.msra.mxu0 %v8215_v53  ;;  %v3629_v53 = vld [vmem:[#allocation2 + $0x3f0] sm:$0xff]  ;;  %3437 = vmatpush1.bf16.msra.mxu1 %v8113_v47 }
 0x2f1   :  { %4214 = vmatprep.subr.bf16.mxu0 %v8218_v55  ;;  %v2706_v55 = vld [vmem:[#allocation7 + $0x580] sm:$0xff]  ;;  %v8231_v0 = vcombine.low %v3628_v50, %v3629_v53  ;;  %v3640_v47 = vld [vmem:[#allocation2 + $0x550] sm:$0xff] }
 0x2f2   :  { %v8121_v58 = vcombine.low %v2706_v55, %v2710_v56  ;;  %v8122_v59 = vcombine.high %v2706_v55, %v2710_v56  ;;  %v8244_v55 = vcombine.high %v3640_v47, %v3641_v48 }
 0x2f4   :  { %4215 = vmatpush1.bf16.msra.mxu0 %v8217_v60  ;;  %v8232_v60 = vcombine.high %v3628_v50, %v3629_v53  ;;  %3438 = vmatprep.subr.bf16.mxu1 %v8122_v59  ;;  %v2754_v50 = vld [vmem:[#allocation7 + $0x700] sm:$0xff]  ;;  %v3643_v59 = vld [vmem:[#allocation2 + $0x5b0] sm:$0xff] }
 0x2f5   :  { %4216 = vmatprep.subr.bf16.mxu0 %v8220_v62  ;;  %3439 = vmatpush1.bf16.msra.mxu1 %v8121_v58  ;;  %v2714_v62 = vld [vmem:[#allocation7 + $0x5c0] sm:$0xff]  ;;  %v3642_v58 = vld [vmem:[#allocation2 + $0x590] sm:$0xff] }
 0x2f6   :  { %v8129_v1 = vcombine.low %v2714_v62, %v2718_v63  ;;  %v8130_v2 = vcombine.high %v2714_v62, %v2718_v63  ;;  %v2758_v53 = vld [vmem:[#allocation7 + $0x720] sm:$0xff]  ;;  %v8246_v62 = vcombine.high %v3642_v58, %v3643_v59 }
 0x2f7   :  { %v8169_v56 = vcombine.low %v2754_v50, %v2758_v53 }
 0x2f8   :  { %4217 = vmatpush1.bf16.msra.mxu0 %v8219_v3  ;;  %v8234_v3 = vcombine.high %v3630_v61, %v3631_v11  ;;  %3440 = vmatprep.subr.bf16.mxu1 %v8130_v2  ;;  %v2762_v61 = vld [vmem:[#allocation7 + $0x740] sm:$0xff] }
 0x2f9   :  { %4218 = vmatprep.subr.bf16.mxu0 %v8222_v6  ;;  %3441 = vmatpush1.bf16.msra.mxu1 %v8129_v1  ;;  %v2722_v6 = vld [vmem:[#allocation7 + $0x600] sm:$0xff]  ;;  %v3645_v1 = vld [vmem:[#allocation2 + $0x5f0] sm:$0xff] }
 0x2fa   :  { %v8137_v14 = vcombine.low %v2722_v6, %v2726_v7  ;;  %v8138_v19 = vcombine.high %v2722_v6, %v2726_v7  ;;  %v2766_v11 = vld [vmem:[#allocation7 + $0x760] sm:$0xff] }
 0x2fb   :  { %v8178_v63 = vcombine.high %v2762_v61, %v2766_v11  ;;  %v8177_v2 = vcombine.low %v2762_v61, %v2766_v11 }
 0x2fc   :  { %4219 = vmatpush1.bf16.msra.mxu0 %v8221_v20  ;;  %v8236_v20 = vcombine.high %v3632_v4, %v3633_v5  ;;  %3442 = vmatprep.subr.bf16.mxu1 %v8138_v19  ;;  %v2770_v4 = vld [vmem:[#allocation7 + $0x780] sm:$0xff] }
 0x2fd   :  { %4220 = vmatprep.subr.bf16.mxu0 %v8224_v8  ;;  %3443 = vmatpush1.bf16.msra.mxu1 %v8137_v14  ;;  %v2730_v8 = vld [vmem:[#allocation7 + $0x640] sm:$0xff]  ;;  %v3647_v14 = vld [vmem:[#allocation2 + $0x630] sm:$0xff] }
 0x2fe   :  { %v8145_v28 = vcombine.low %v2730_v8, %v2734_v25  ;;  %v2774_v5 = vld [vmem:[#allocation7 + $0x7a0] sm:$0xff] }
 0x2ff   :  { %v8186_v7 = vcombine.high %v2770_v4, %v2774_v5  ;;  %v8185_v19 = vcombine.low %v2770_v4, %v2774_v5 }
 0x300   :  { %4221 = vmatpush1.bf16.msra.mxu0 %v8223_v29  ;;  %v8146_v29 = vcombine.high %v2730_v8, %v2734_v25  ;;  %v8194_v25 = vcombine.high %v2778_v22, %v2782_v23 }
 0x301   :  { %4222 = vmatprep.subr.bf16.mxu0 %v8226_v32  ;;  %v8154_v32 = vcombine.high %v2738_v26, %v2742_v30 }
 0x302   :  { %3444 = vmatprep.subr.bf16.mxu1 %v8146_v29 }
 0x303   :  { %3445 = vmatpush1.bf16.msra.mxu1 %v8145_v28  ;;  %v8193_v28 = vcombine.low %v2778_v22, %v2782_v23 }
 0x304   :  { %4223 = vmatpush1.bf16.msra.mxu0 %v8225_v36  ;;  %v8153_v36 = vcombine.low %v2738_v26, %v2742_v30  ;;  %3446 = vmatprep.subr.bf16.mxu1 %v8154_v32  ;;  %v3648_v26 = vld [vmem:[#allocation2 + $0x650] sm:$0xff] }
 0x305   :  { %4224 = vmatprep.subr.bf16.mxu0 %v8228_v39  ;;  %v8240_v39 = vcombine.high %v3636_v9, %v3637_v35  ;;  %v9380_v30 = vld [vmem:[#allocation7 + $0x408] sm:$0xff] }
 0x306   :  { %v3651_v9 = vld [vmem:[#allocation2 + $0x6b0] sm:$0xff] }
 0x307   :  { %3447 = vmatpush1.bf16.msra.mxu1 %v8153_v36 }
 0x308   :  { %4225 = vmatpush1.bf16.msra.mxu0 %v8227_v46  ;;  %3448 = vmatprep.subr.bf16.mxu1 %v8162_v38  ;;  %v8242_v46 = vcombine.high %v3638_v41, %v3639_v43  ;;  %v3652_v38 = vld [vmem:[#allocation2 + $0x6d0] sm:$0xff] }
 0x309   :  { %4226 = vmatprep.subr.bf16.mxu0 %v8230_v49  ;;  %v8241_v49 = vcombine.low %v3638_v41, %v3639_v43  ;;  %v8253_v41 = vcombine.low %v3650_v34, %v3651_v9 }
 0x30b   :  { %3449 = vmatpush1.bf16.msra.mxu1 %v8161_v44  ;;  %v3654_v44 = vld [vmem:[#allocation2 + $0x710] sm:$0xff] }
 0x30c   :  { %4227 = vmatpush1.bf16.msra.mxu0 %v8229_v57  ;;  %v8170_v57 = vcombine.high %v2754_v50, %v2758_v53 }
 0x30d   :  { %4228 = vmatprep.subr.bf16.mxu0 %v8232_v60  ;;  %v8243_v60 = vcombine.low %v3640_v47, %v3641_v48  ;;  %v3656_v48 = vld [vmem:[#allocation2 + $0x750] sm:$0xff] }
 0x30e   :  { %3450 = vmatprep.subr.bf16.mxu1 %v8170_v57 }
 0x30f   :  { %3451 = vmatpush1.bf16.msra.mxu1 %v8169_v56  ;;  %v3659_v56 = vld [vmem:[#allocation2 + $0x7b0] sm:$0xff] }
 0x310   :  { %4229 = vmatpush1.bf16.msra.mxu0 %v8231_v0  ;;  %v3644_v0 = vld [vmem:[#allocation2 + $0x5d0] sm:$0xff]  ;;  %3452 = vmatprep.subr.bf16.mxu1 %v8178_v63 }
 0x311   :  { %4239 = vmatprep.subr.bf16.mxu0 %v8234_v3  ;;  %v8245_v3 = vcombine.low %v3642_v58, %v3643_v59  ;;  %v8248_v6 = vcombine.high %v3644_v0, %v3645_v1  ;;  %v3660_v59 = vld [vmem:[#allocation2 + $0x7d0] sm:$0xff] }
 0x312   :  { %v3663_v63 = vld [vmem:[#allocation2 + $0x830] sm:$0xff] }
 0x313   :  { %4231 = vmatmul.mubr.bf16.vlgmr.msra.gmra.mrb[12].mxu0 %v9304_v12  ;;  %3453 = vmatpush1.bf16.msra.mxu1 %v8177_v2  ;;  %v3664_v2 = vld [vmem:[#allocation2 + $0x850] sm:$0xff] }
 0x314   :  { %4240 = vmatpush1.bf16.msra.mxu0 %v8233_v10  ;;  %4271 = vmatprep.mubr.bf16.mxu0 %v9308_v16  ;;  %v3646_v10 = vld [vmem:[#allocation2 + $0x610] sm:$0xff] }
 0x315   :  { %4241 = vmatprep.subr.bf16.mxu0 %v8236_v20  ;;  %3454 = vmatprep.subr.bf16.mxu1 %v8186_v7  ;;  %v8247_v20 = vcombine.low %v3644_v0, %v3645_v1  ;;  %v8250_v8 = vcombine.high %v3646_v10, %v3647_v14  ;;  %v8249_v29 = vcombine.low %v3646_v10, %v3647_v14  ;;  %v3667_v7 = vld [vmem:[#allocation2 + $0x8b0] sm:$0xff] }
 0x317   :  { %3455 = vmatpush1.bf16.msra.mxu1 %v8185_v19  ;;  %v3668_v19 = vld [vmem:[#allocation2 + $0x8d0] sm:$0xff] }
 0x318   :  { %4242 = vmatpush1.bf16.msra.mxu0 %v8235_v27  ;;  %v3649_v27 = vld [vmem:[#allocation2 + $0x670] sm:$0xff]  ;;  %3456 = vmatprep.subr.bf16.mxu1 %v8194_v25 }
 0x319   :  { %4243 = vmatprep.subr.bf16.mxu0 %v8238_v31  ;;  %v9382_v31 = vld [vmem:[#allocation7 + $0x428] sm:$0xff]  ;;  %v8252_v32 = vcombine.high %v3648_v26, %v3649_v27  ;;  %v8251_v36 = vcombine.low %v3648_v26, %v3649_v27 }
 0x31a   :  { %v8076_v33 = vcombine.high %v9380_v30, %v9382_v31  ;;  %v8075_v35 = vcombine.low %v9380_v30, %v9382_v31  ;;  %v3671_v25 = vld [vmem:[#allocation2 + $0x930] sm:$0xff] }
 0x31b   :  { %3457 = vmatpush1.bf16.msra.mxu1 %v8193_v28  ;;  %v3672_v28 = vld [vmem:[#allocation2 + $0x950] sm:$0xff] }
 0x31c   :  { %4244 = vmatpush1.bf16.msra.mxu0 %v8237_v37  ;;  %3467 = vmatprep.subr.bf16.mxu1 %v8076_v33  ;;  %v8254_v37 = vcombine.high %v3650_v34, %v3651_v9  ;;  %v3674_v34 = vld [vmem:[#allocation2 + $0x990] sm:$0xff] }
 0x31d   :  { %4245 = vmatprep.subr.bf16.mxu0 %v8240_v39  ;;  %v3653_v39 = vld [vmem:[#allocation2 + $0x6f0] sm:$0xff] }
 0x31e   :  { %v8256_v43 = vcombine.high %v3652_v38, %v3653_v39  ;;  %v3675_v9 = vld [vmem:[#allocation2 + $0x9b0] sm:$0xff] }
 0x320   :  { %4246 = vmatpush1.bf16.msra.mxu0 %v8239_v45  ;;  %v3655_v45 = vld [vmem:[#allocation2 + $0x730] sm:$0xff] }
 0x321   :  { %4247 = vmatprep.subr.bf16.mxu0 %v8242_v46  ;;  %v8255_v46 = vcombine.low %v3652_v38, %v3653_v39  ;;  %v8258_v47 = vcombine.high %v3654_v44, %v3655_v45  ;;  %v8257_v50 = vcombine.low %v3654_v44, %v3655_v45  ;;  %v3676_v38 = vld [vmem:[#allocation2 + $0x9d0] sm:$0xff] }
 0x322   :  { %v3677_v39 = vld [vmem:[#allocation2 + $0x9f0] sm:$0xff] }
 0x323   :  { %v3678_v44 = vld [vmem:[#allocation2 + $0xa10] sm:$0xff] }
 0x324   :  { %4248 = vmatpush1.bf16.msra.mxu0 %v8241_v49  ;;  %v3657_v49 = vld [vmem:[#allocation2 + $0x770] sm:$0xff] }
 0x325   :  { %4249 = vmatprep.subr.bf16.mxu0 %v8244_v55  ;;  %v8260_v53 = vcombine.high %v3656_v48, %v3657_v49  ;;  %v3658_v55 = vld [vmem:[#allocation2 + $0x790] sm:$0xff]  ;;  %v8259_v57 = vcombine.low %v3656_v48, %v3657_v49 }
 0x326   :  { %v8262_v58 = vcombine.high %v3658_v55, %v3659_v56  ;;  %v8261_v61 = vcombine.low %v3658_v55, %v3659_v56  ;;  %v3679_v45 = vld [vmem:[#allocation2 + $0xa30] sm:$0xff] }
 0x327   :  { %v3680_v49 = vld [vmem:[#allocation2 + $0xa50] sm:$0xff]  ;;  %v8281_v56 = vcombine.low %v3678_v44, %v3679_v45 }
 0x328   :  { %4250 = vmatpush1.bf16.msra.mxu0 %v8243_v60  ;;  %v3661_v60 = vld [vmem:[#allocation2 + $0x7f0] sm:$0xff] }
 0x329   :  { %4251 = vmatprep.subr.bf16.mxu0 %v8246_v62  ;;  %v8264_v11 = vcombine.high %v3660_v59, %v3661_v60  ;;  %v3662_v62 = vld [vmem:[#allocation2 + $0x810] sm:$0xff]  ;;  %v8263_v0 = vcombine.low %v3660_v59, %v3661_v60 }
 0x32a   :  { %v8266_v1 = vcombine.high %v3662_v62, %v3663_v63  ;;  %v8265_v4 = vcombine.low %v3662_v62, %v3663_v63  ;;  %v3682_v59 = vld [vmem:[#allocation2 + $0xa90] sm:$0xff] }
 0x32b   :  { %v3683_v60 = vld [vmem:[#allocation2 + $0xab0] sm:$0xff] }
 0x32c   :  { %4252 = vmatpush1.bf16.msra.mxu0 %v8245_v3  ;;  %v3665_v3 = vld [vmem:[#allocation2 + $0x870] sm:$0xff] }
 0x32d   :  { %4253 = vmatprep.subr.bf16.mxu0 %v8248_v6  ;;  %v8268_v5 = vcombine.high %v3664_v2, %v3665_v3  ;;  %v3666_v6 = vld [vmem:[#allocation2 + $0x890] sm:$0xff]  ;;  %v8267_v10 = vcombine.low %v3664_v2, %v3665_v3 }
 0x32e   :  { %v8270_v14 = vcombine.high %v3666_v6, %v3667_v7  ;;  %v8269_v22 = vcombine.low %v3666_v6, %v3667_v7  ;;  %v3684_v62 = vld [vmem:[#allocation2 + $0xad0] sm:$0xff] }
 0x32f   :  { %v3685_v63 = vld [vmem:[#allocation2 + $0xaf0] sm:$0xff] }
 0x330   :  { %4254 = vmatpush1.bf16.msra.mxu0 %v8247_v20  ;;  %v3669_v20 = vld [vmem:[#allocation2 + $0x8f0] sm:$0xff] }
 0x331   :  { %4255 = vmatprep.subr.bf16.mxu0 %v8250_v8  ;;  %v8272_v23 = vcombine.high %v3668_v19, %v3669_v20  ;;  %v3670_v8 = vld [vmem:[#allocation2 + $0x910] sm:$0xff]  ;;  %v8271_v26 = vcombine.low %v3668_v19, %v3669_v20 }
 0x332   :  { %v8274_v27 = vcombine.high %v3670_v8, %v3671_v25  ;;  %v3686_v2 = vld [vmem:[#allocation2 + $0xb10] sm:$0xff] }
 0x333   :  { %v3687_v3 = vld [vmem:[#allocation2 + $0xb30] sm:$0xff] }
 0x334   :  { %4256 = vmatpush1.bf16.msra.mxu0 %v8249_v29  ;;  %v3673_v29 = vld [vmem:[#allocation2 + $0x970] sm:$0xff] }
 0x335   :  { %4257 = vmatprep.subr.bf16.mxu0 %v8252_v32  ;;  %v8273_v32 = vcombine.low %v3670_v8, %v3671_v25  ;;  %v8276_v33 = vcombine.high %v3672_v28, %v3673_v29  ;;  %v3688_v6 = vld [vmem:[#allocation2 + $0xb50] sm:$0xff] }
 0x336   :  { %v3689_v7 = vld [vmem:[#allocation2 + $0xb70] sm:$0xff] }
 0x337   :  { %v3690_v19 = vld [vmem:[#allocation2 + $0xb90] sm:$0xff] }
 0x338   :  { %4258 = vmatpush1.bf16.msra.mxu0 %v8251_v36  ;;  %v8275_v36 = vcombine.low %v3672_v28, %v3673_v29  ;;  %v3691_v20 = vld [vmem:[#allocation2 + $0xbb0] sm:$0xff] }
 0x339   :  { %4259 = vmatprep.subr.bf16.mxu0 %v8254_v37  ;;  %v8278_v37 = vcombine.high %v3674_v34, %v3675_v9  ;;  %v3692_v8 = vld [vmem:[#allocation2 + $0xbd0] sm:$0xff] }
 0x33a   :  { %v3693_v25 = vld [vmem:[#allocation2 + $0xbf0] sm:$0xff] }
 0x33b   :  { %v3694_v28 = vld [vmem:[#allocation2 + $0xc10] sm:$0xff] }
 0x33c   :  { %4260 = vmatpush1.bf16.msra.mxu0 %v8253_v41  ;;  %v8277_v41 = vcombine.low %v3674_v34, %v3675_v9  ;;  %v3695_v29 = vld [vmem:[#allocation2 + $0xc30] sm:$0xff]  ;;  %v5308_v34 = vld [vmem:[#allocation2 + $0x18] sm:$0xff] }
 0x33d   :  { %4261 = vmatprep.subr.bf16.mxu0 %v8256_v43  ;;  %v8280_v43 = vcombine.high %v3676_v38, %v3677_v39  ;;  %v5309_v9 = vld [vmem:[#allocation2 + $0x38] sm:$0xff] }
 0x340   :  { %4262 = vmatpush1.bf16.msra.mxu0 %v8255_v46  ;;  %v8279_v46 = vcombine.low %v3676_v38, %v3677_v39  ;;  %v5310_v38 = vld [vmem:[#allocation2 + $0x58] sm:$0xff] }
 0x341   :  { %4263 = vmatprep.subr.bf16.mxu0 %v8258_v47  ;;  %v8282_v47 = vcombine.high %v3678_v44, %v3679_v45  ;;  %v5311_v39 = vld [vmem:[#allocation2 + $0x78] sm:$0xff] }
 0x342   :  { %v5312_v44 = vld [vmem:[#allocation2 + $0x98] sm:$0xff] }
 0x343   :  { %v5313_v45 = vld [vmem:[#allocation2 + $0xb8] sm:$0xff] }
 0x344   :  { %4264 = vmatpush1.bf16.msra.mxu0 %v8257_v50  ;;  %v3681_v50 = vld [vmem:[#allocation2 + $0xa70] sm:$0xff] }
 0x345   :  { %4265 = vmatprep.subr.bf16.mxu0 %v8260_v53 }
 0x348   :  { %4266 = vmatpush1.bf16.msra.mxu0 %v8259_v57 }
 0x349   :  { %4267 = vmatprep.subr.bf16.mxu0 %v8262_v58  ;;  %v8284_v58 = vcombine.high %v3680_v49, %v3681_v50 }
 0x34c   :  { %4268 = vmatpush1.bf16.msra.mxu0 %v8261_v61  ;;  %v8283_v61 = vcombine.low %v3680_v49, %v3681_v50  ;;  %v8433_v49 = vcombine.high %v5312_v44, %v5313_v45  ;;  %v5314_v50 = vld [vmem:[#allocation2 + $0xd8] sm:$0xff] }
 0x34d   :  { %4269 = vmatprep.subr.bf16.mxu0 %v8264_v11  ;;  %v8286_v11 = vcombine.high %v3682_v59, %v3683_v60 }
 0x350   :  { %4270 = vmatpush1.bf16.msra.mxu0 %v8263_v0  ;;  %v8285_v0 = vcombine.low %v3682_v59, %v3683_v60 }
 0x351   :  { %4280 = vmatprep.subr.bf16.mxu0 %v8266_v1  ;;  %v8288_v1 = vcombine.high %v3684_v62, %v3685_v63 }
 0x353   :  { %4272 = vmatmul.mubr.bf16.vlgmr.msra.gmra.mrb[12].mxu0 %v9324_v13 }
 0x354   :  { %4281 = vmatpush1.bf16.msra.mxu0 %v8265_v4  ;;  %4312 = vmatprep.mubr.bf16.mxu0 %v9328_v15  ;;  %v8287_v4 = vcombine.low %v3684_v62, %v3685_v63 }
 0x355   :  { %4282 = vmatprep.subr.bf16.mxu0 %v8268_v5  ;;  %v8290_v5 = vcombine.high %v3686_v2, %v3687_v3 }
 0x358   :  { %4283 = vmatpush1.bf16.msra.mxu0 %v8267_v10  ;;  %v8289_v10 = vcombine.low %v3686_v2, %v3687_v3 }
 0x359   :  { %4284 = vmatprep.subr.bf16.mxu0 %v8270_v14  ;;  %v8292_v14 = vcombine.high %v3688_v6, %v3689_v7 }
 0x35c   :  { %4285 = vmatpush1.bf16.msra.mxu0 %v8269_v22  ;;  %v8291_v22 = vcombine.low %v3688_v6, %v3689_v7  ;;  %v5319_v6 = vld [vmem:[#allocation2 + $0x178] sm:$0xff] }
 0x35d   :  { %4286 = vmatprep.subr.bf16.mxu0 %v8272_v23  ;;  %v8294_v23 = vcombine.high %v3690_v19, %v3691_v20 }
 0x360   :  { %4287 = vmatpush1.bf16.msra.mxu0 %v8271_v26  ;;  %v8293_v26 = vcombine.low %v3690_v19, %v3691_v20 }
 0x361   :  { %4288 = vmatprep.subr.bf16.mxu0 %v8274_v27  ;;  %v8296_v27 = vcombine.high %v3692_v8, %v3693_v25 }
 0x364   :  { %4289 = vmatpush1.bf16.msra.mxu0 %v8273_v32  ;;  %v8295_v32 = vcombine.low %v3692_v8, %v3693_v25  ;;  %v2671_v8 = vld [vmem:[#allocation7 + $0x468] sm:$0xff]  ;;  %v5320_v25 = vld [vmem:[#allocation2 + $0x198] sm:$0xff] }
 0x365   :  { %4290 = vmatprep.subr.bf16.mxu0 %v8276_v33  ;;  %v8298_v33 = vcombine.high %v3694_v28, %v3695_v29 }
 0x368   :  { %4291 = vmatpush1.bf16.msra.mxu0 %v8275_v36  ;;  %v8297_v36 = vcombine.low %v3694_v28, %v3695_v29  ;;  %v2675_v29 = vld [vmem:[#allocation7 + $0x488] sm:$0xff] }
 0x369   :  { %4292 = vmatprep.subr.bf16.mxu0 %v8278_v37  ;;  %v8429_v37 = vcombine.high %v5308_v34, %v5309_v9 }
 0x36c   :  { %4293 = vmatpush1.bf16.msra.mxu0 %v8277_v41  ;;  %v8428_v41 = vcombine.low %v5308_v34, %v5309_v9  ;;  %v5322_v34 = vld [vmem:[#allocation2 + $0x1d8] sm:$0xff] }
 0x36d   :  { %4294 = vmatprep.subr.bf16.mxu0 %v8280_v43  ;;  %v9390_v48 = vpop.f32.mrb[16].mxu1  ;;  %v8431_v43 = vcombine.high %v5310_v38, %v5311_v39  ;;  %v5323_v9 = vld [vmem:[#allocation2 + $0x1f8] sm:$0xff] }
 0x36e   :  { %v9392_v53 = vpop.f32.mrb[17].mxu1 }
 0x36f   :  { %v2649_v55 = vpop.f32.mrb[18].mxu1 }
 0x370   :  { %4295 = vmatpush1.bf16.msra.mxu0 %v8279_v46  ;;  %v2650_v57 = vpop.f32.mrb[19].mxu1  ;;  %v8430_v46 = vcombine.low %v5310_v38, %v5311_v39  ;;  %v5315_v55 = vld [vmem:[#allocation2 + $0xf8] sm:$0xff]  ;;  %v8443_v39 = vcombine.high %v5322_v34, %v5323_v9 }
 0x371   :  { %4296 = vmatprep.subr.bf16.mxu0 %v8282_v47  ;;  %v1986_v47 = vld [vmem:[#allocation5 + $0x2] sm:$0x3]  ;;  %v8432_v57 = vcombine.low %v5312_v44, %v5313_v45  ;;  %v8435_v59 = vcombine.high %v5314_v50, %v5315_v55  ;;  %v5324_v44 = vld [vmem:[#allocation2 + $0x218] sm:$0xff] }
 0x372   :  { %v5325_v45 = vld [vmem:[#allocation2 + $0x238] sm:$0xff] }
 0x373   :  { %v8445_v31 = vcombine.high %v5324_v44, %v5325_v45 }
 0x374   :  { %4297 = vmatpush1.bf16.msra.mxu0 %v8281_v56  ;;  %v1991_v56 = vrot.slane %v1986_v47, %v9340_v52 }
 0x375   :  { %4298 = vmatprep.subr.bf16.mxu0 %v8284_v58  ;;  %v1995_v58 = vrot.slane %v1986_v47, %v9343_v54  ;;  %v8442_v47 = vcombine.low %v5322_v34, %v5323_v9 }
 0x378   :  { %4299 = vmatpush1.bf16.msra.mxu0 %v8283_v61  ;;  %v5316_v61 = vld [vmem:[#allocation2 + $0x118] sm:$0xff] }
 0x379   :  { %4300 = vmatprep.subr.bf16.mxu0 %v8286_v11 }
 0x37c   :  { %4301 = vmatpush1.bf16.msra.mxu0 %v8285_v0  ;;  %v8434_v0 = vcombine.low %v5314_v50, %v5315_v55  ;;  %v5326_v50 = vld [vmem:[#allocation2 + $0x258] sm:$0xff] }
 0x37d   :  { %4302 = vmatprep.subr.bf16.mxu0 %v8288_v1  ;;  %v5327_v55 = vld [vmem:[#allocation2 + $0x278] sm:$0xff] }
 0x380   :  { %4303 = vmatpush1.bf16.msra.mxu0 %v8287_v4 }
 0x381   :  { %4304 = vmatprep.subr.bf16.mxu0 %v8290_v5  ;;  %v5318_v5 = vld [vmem:[#allocation2 + $0x158] sm:$0xff] }
 0x382   :  { %v8439_v20 = vcombine.high %v5318_v5, %v5319_v6 }
 0x384   :  { %4305 = vmatpush1.bf16.msra.mxu0 %v8289_v10 }
 0x385   :  { %4306 = vmatprep.subr.bf16.mxu0 %v8292_v14 }
 0x388   :  { %4307 = vmatpush1.bf16.msra.mxu0 %v8291_v22 }
 0x389   :  { %4308 = vmatprep.subr.bf16.mxu0 %v8294_v23  ;;  %v2667_v23 = vld [vmem:[#allocation7 + $0x448] sm:$0xff] }
 0x38c   :  { %4309 = vmatpush1.bf16.msra.mxu0 %v8293_v26  ;;  %v5321_v26 = vld [vmem:[#allocation2 + $0x1b8] sm:$0xff] }
 0x38d   :  { %4310 = vmatprep.subr.bf16.mxu0 %v8296_v27  ;;  %v8438_v27 = vcombine.low %v5318_v5, %v5319_v6 }
 0x390   :  { %4311 = vmatpush1.bf16.msra.mxu0 %v8295_v32  ;;  %v8441_v32 = vcombine.high %v5320_v25, %v5321_v26 }
 0x391   :  { %4321 = vmatprep.subr.bf16.mxu0 %v8298_v33  ;;  %v2679_v33 = vld [vmem:[#allocation7 + $0x4a8] sm:$0xff] }
 0x392   :  { %v8092_v38 = vcombine.high %v2675_v29, %v2679_v33 }
 0x393   :  { %4313 = vmatmul.mubr.bf16.vlgmr.msra.gmra.mrb[12].mxu0 %v9334_v24 }
 0x394   :  { %4322 = vmatpush1.bf16.msra.mxu0 %v8297_v36  ;;  %4353 = vmatprep.mubr.bf16.mxu0 %v9173_v21  ;;  %v8083_v36 = vcombine.low %v2667_v23, %v2671_v8 }
 0x395   :  { %5908 = vmatprep.subr.bf16.mxu0 %v8429_v37  ;;  %v8440_v37 = vcombine.low %v5320_v25, %v5321_v26 }
 0x39f   :  { %8299 = vmatmul.mubr.msk.bf16.vlgmr.msra.gmra.mrb[12].mxu0 %vm774_vm0, %v9368_v17  ;;  %v5317_v17 = vld [vmem:[#allocation2 + $0x138] sm:$0xff] }
 0x3a0   :  { %5909 = vmatpush1.bf16.msra.mxu0 %v8428_v41  ;;  %5940 = vmatprep.mubr.bf16.mxu0 %v9294_v18  ;;  %v8437_v3 = vcombine.high %v5316_v61, %v5317_v17  ;;  %v8436_v14 = vcombine.low %v5316_v61, %v5317_v17  ;;  %v2683_v41 = vld [vmem:[#allocation7 + $0x4c8] sm:$0xff]  ;;  %v5328_v17 = vld [vmem:[#allocation2 + $0x298] sm:$0xff] }
 0x3a1   :  { %5910 = vmatprep.subr.bf16.mxu0 %v8431_v43  ;;  %v2687_v43 = vld [vmem:[#allocation7 + $0x4e8] sm:$0xff] }
 0x3a2   :  { %v8100_v30 = vcombine.high %v2683_v41, %v2687_v43  ;;  %v2703_v61 = vld [vmem:[#allocation7 + $0x568] sm:$0xff] }
 0x3a4   :  { %5911 = vmatpush1.bf16.msra.mxu0 %v8430_v46  ;;  %v8091_v46 = vcombine.low %v2675_v29, %v2679_v33  ;;  %v5334_v29 = vld [vmem:[#allocation2 + $0x358] sm:$0xff] }
 0x3a5   :  { %5912 = vmatprep.subr.bf16.mxu0 %v8433_v49  ;;  %v2695_v49 = vld [vmem:[#allocation7 + $0x528] sm:$0xff] }
 0x3a6   :  { %v2604_v60 = vpop.f32.mrb[8].mxu0 }
 0x3a7   :  { %v8822_v11 = vadd.f32 %v2604_v60, %v1991_v56  ;;  %v2606_v62 = vpop.f32.mrb[9].mxu0  ;;  %v8099_v56 = vcombine.low %v2683_v41, %v2687_v43  ;;  %v2699_v60 = vld [vmem:[#allocation7 + $0x548] sm:$0xff]  ;;  %v5337_v41 = vld [vmem:[#allocation2 + $0x3b8] sm:$0xff] }
 0x3a8   :  { %v8824_v63 = vadd.f32 %v2606_v62, %v1995_v58  ;;  %5913 = vmatpush1.bf16.msra.mxu0 %v8432_v57  ;;  %v2608_v18 = vpop.f32.mrb[10].mxu0  ;;  %v8444_v57 = vcombine.low %v5324_v44, %v5325_v45  ;;  %v8115_v5 = vcombine.low %v2699_v60, %v2703_v61 }
 0x3a9   :  { %v8823_v1 = vadd.f32 %v8822_v11, %v9390_v48  ;;  %v2609_v2 = vpop.f32.mrb[11].mxu0  ;;  %5914 = vmatprep.subr.bf16.mxu0 %v8435_v59  ;;  %v8447_v59 = vcombine.high %v5326_v50, %v5327_v55  ;;  %v5329_v11 = vld [vmem:[#allocation2 + $0x2b8] sm:$0xff]  ;;  %v8116_v18 = vcombine.high %v2699_v60, %v2703_v61 }
 0x3aa   :  { %v8825_v4 = vadd.f32 %v8824_v63, %v9392_v53  ;;  %v8084_v53 = vcombine.high %v2667_v23, %v2671_v8  ;;  %v8446_v63 = vcombine.low %v5326_v50, %v5327_v55  ;;  %v2711_v2 = vld [vmem:[#allocation7 + $0x5a8] sm:$0xff]  ;;  %v8448_v6 = vcombine.low %v5328_v17, %v5329_v11  ;;  %v5341_v60 = vld [vmem:[#allocation2 + $0x438] sm:$0xff] }
 0x3ab   :  { %v2652_v7 = vmul.f32 0.01, %v8823_v1 }
 0x3ac   :  { %v2653_v10 = vmul.f32 0.01, %v8825_v4  ;;  %5915 = vmatpush1.bf16.msra.mxu0 %v8434_v0  ;;  %v8449_v0 = vcombine.high %v5328_v17, %v5329_v11 }
 0x3ad   :  { %v2654_v19 = vmax.f32 %v8823_v1, %v2652_v7  ;;  %5916 = vmatprep.subr.bf16.mxu0 %v8437_v3  ;;  %v2707_v1 = vld [vmem:[#allocation7 + $0x588] sm:$0xff]  ;;  %v5330_v3 = vld [vmem:[#allocation2 + $0x2d8] sm:$0xff] }
 0x3ae   :  { %v2655_v22 = vmax.f32 %v8825_v4, %v2653_v10  ;;  %v5331_v4 = vld [vmem:[#allocation2 + $0x2f8] sm:$0xff]  ;;  %v8124_v7 = vcombine.high %v2707_v1, %v2711_v2  ;;  %v8123_v23 = vcombine.low %v2707_v1, %v2711_v2 }
 0x3af   :  { %v9405_v28 = vpack.c.bf16 %v2654_v19, %v2654_v19  ;;  %v8451_v10 = vcombine.high %v5330_v3, %v5331_v4  ;;  %v2719_v19 = vld [vmem:[#allocation7 + $0x5e8] sm:$0xff]  ;;  %v8450_v8 = vcombine.low %v5330_v3, %v5331_v4  ;;  %v5343_v1 = vld [vmem:[#allocation2 + $0x478] sm:$0xff] }
 0x3b0   :  { %v9403_v48 = vpack.c.bf16 %v2655_v22, %v2655_v22  ;;  %5917 = vmatpush1.bf16.msra.mxu0 %v8436_v14  ;;  %v2715_v14 = vld [vmem:[#allocation7 + $0x5c8] sm:$0xff]  ;;  %v5333_v22 = vld [vmem:[#allocation2 + $0x338] sm:$0xff] }
 0x3b1   :  { %5918 = vmatprep.subr.bf16.mxu0 %v8439_v20  ;;  %v5332_v20 = vld [vmem:[#allocation2 + $0x318] sm:$0xff]  ;;  %v8132_v25 = vcombine.high %v2715_v14, %v2719_v19  ;;  %v8131_v33 = vcombine.low %v2715_v14, %v2719_v19 }
 0x3b2   :  { %3458 = vmatprep.mubr.bf16.mxu1 %v9403_v48  ;;  %v8453_v26 = vcombine.high %v5332_v20, %v5333_v22  ;;  %v8452_v34 = vcombine.low %v5332_v20, %v5333_v22  ;;  %v5345_v14 = vld [vmem:[#allocation2 + $0x4b8] sm:$0xff] }
 0x3b3   :  { %3459 = vmatmul.mubr.bf16.vlgmr.msra.gmra.mrb[20].mxu1 %v9405_v28 }
 0x3b4   :  { %3468 = vmatpush1.bf16.msra.mxu1 %v8075_v35  ;;  %5919 = vmatpush1.bf16.msra.mxu0 %v8438_v27  ;;  %v2691_v35 = vld [vmem:[#allocation7 + $0x508] sm:$0xff] }
 0x3b5   :  { %3499 = vmatprep.mubr.bf16.mxu1 %v9403_v48  ;;  %3469 = vmatprep.subr.bf16.mxu1 %v8084_v53  ;;  %v8108_v58 = vcombine.high %v2691_v35, %v2695_v49  ;;  %v8107_v62 = vcombine.low %v2691_v35, %v2695_v49  ;;  %v2723_v27 = vld [vmem:[#allocation7 + $0x608] sm:$0xff]  ;;  %v5339_v35 = vld [vmem:[#allocation2 + $0x3f8] sm:$0xff] }
 0x3b6   :  { %5920 = vmatprep.subr.bf16.mxu0 %v8441_v32  ;;  %v2727_v53 = vld [vmem:[#allocation7 + $0x628] sm:$0xff]  ;;  %v5335_v32 = vld [vmem:[#allocation2 + $0x378] sm:$0xff] }
 0x3b7   :  { %v8140_v9 = vcombine.high %v2723_v27, %v2727_v53  ;;  %v8139_v43 = vcombine.low %v2723_v27, %v2727_v53  ;;  %v8454_v44 = vcombine.low %v5334_v29, %v5335_v32  ;;  %v5347_v27 = vld [vmem:[#allocation2 + $0x4f8] sm:$0xff] }
 0x3b8   :  { %3470 = vmatpush1.bf16.msra.mxu1 %v8083_v36  ;;  %5921 = vmatpush1.bf16.msra.mxu0 %v8440_v37  ;;  %v8455_v36 = vcombine.high %v5334_v29, %v5335_v32  ;;  %v2731_v37 = vld [vmem:[#allocation7 + $0x648] sm:$0xff] }
 0x3b9   :  { %3471 = vmatprep.subr.bf16.mxu1 %v8092_v38  ;;  %5922 = vmatprep.subr.bf16.mxu0 %v8443_v39  ;;  %v2735_v38 = vld [vmem:[#allocation7 + $0x668] sm:$0xff]  ;;  %v5336_v39 = vld [vmem:[#allocation2 + $0x398] sm:$0xff] }
 0x3ba   :  { %v8148_v45 = vcombine.high %v2731_v37, %v2735_v38  ;;  %v8147_v49 = vcombine.low %v2731_v37, %v2735_v38  ;;  %v8456_v50 = vcombine.low %v5336_v39, %v5337_v41 }
 0x3bc   :  { %3472 = vmatpush1.bf16.msra.mxu1 %v8091_v46  ;;  %5923 = vmatpush1.bf16.msra.mxu0 %v8442_v47  ;;  %v8457_v46 = vcombine.high %v5336_v39, %v5337_v41  ;;  %v2739_v47 = vld [vmem:[#allocation7 + $0x688] sm:$0xff]  ;;  %v2660_v41 = vld [vmem:[#allocation7 + $0x410] sm:$0xff] }
 0x3bd   :  { %3473 = vmatprep.subr.bf16.mxu1 %v8100_v30  ;;  %5924 = vmatprep.subr.bf16.mxu0 %v8445_v31  ;;  %v2743_v30 = vld [vmem:[#allocation7 + $0x6a8] sm:$0xff]  ;;  %v5338_v31 = vld [vmem:[#allocation2 + $0x3d8] sm:$0xff] }
 0x3be   :  { %v8156_v55 = vcombine.high %v2739_v47, %v2743_v30  ;;  %v8155_v61 = vcombine.low %v2739_v47, %v2743_v30  ;;  %v8458_v17 = vcombine.low %v5338_v31, %v5339_v35 }
 0x3c0   :  { %3474 = vmatpush1.bf16.msra.mxu1 %v8099_v56  ;;  %5925 = vmatpush1.bf16.msra.mxu0 %v8444_v57  ;;  %v8459_v56 = vcombine.high %v5338_v31, %v5339_v35  ;;  %v2747_v57 = vld [vmem:[#allocation7 + $0x6c8] sm:$0xff]  ;;  %v2668_v35 = vld [vmem:[#allocation7 + $0x450] sm:$0xff] }
 0x3c1   :  { %3475 = vmatprep.subr.bf16.mxu1 %v8108_v58  ;;  %5926 = vmatprep.subr.bf16.mxu0 %v8447_v59  ;;  %v2751_v58 = vld [vmem:[#allocation7 + $0x6e8] sm:$0xff]  ;;  %v5340_v59 = vld [vmem:[#allocation2 + $0x418] sm:$0xff] }
 0x3c2   :  { %v8164_v11 = vcombine.high %v2747_v57, %v2751_v58  ;;  %v8163_v2 = vcombine.low %v2747_v57, %v2751_v58  ;;  %v8460_v3 = vcombine.low %v5340_v59, %v5341_v60 }
 0x3c4   :  { %3476 = vmatpush1.bf16.msra.mxu1 %v8107_v62  ;;  %5927 = vmatpush1.bf16.msra.mxu0 %v8446_v63  ;;  %v8461_v62 = vcombine.high %v5340_v59, %v5341_v60  ;;  %v2755_v63 = vld [vmem:[#allocation7 + $0x708] sm:$0xff]  ;;  %v2676_v60 = vld [vmem:[#allocation7 + $0x490] sm:$0xff] }
 0x3c5   :  { %3477 = vmatprep.subr.bf16.mxu1 %v8116_v18  ;;  %5928 = vmatprep.subr.bf16.mxu0 %v8449_v0  ;;  %v2759_v18 = vld [vmem:[#allocation7 + $0x728] sm:$0xff]  ;;  %v5342_v0 = vld [vmem:[#allocation2 + $0x458] sm:$0xff] }
 0x3c6   :  { %v8172_v4 = vcombine.high %v2755_v63, %v2759_v18  ;;  %v8171_v19 = vcombine.low %v2755_v63, %v2759_v18  ;;  %v8462_v20 = vcombine.low %v5342_v0, %v5343_v1 }
 0x3c8   :  { %3478 = vmatpush1.bf16.msra.mxu1 %v8115_v5  ;;  %5929 = vmatpush1.bf16.msra.mxu0 %v8448_v6  ;;  %v8463_v5 = vcombine.high %v5342_v0, %v5343_v1  ;;  %v2763_v6 = vld [vmem:[#allocation7 + $0x748] sm:$0xff]  ;;  %v2684_v1 = vld [vmem:[#allocation7 + $0x4d0] sm:$0xff] }
 0x3c9   :  { %3479 = vmatprep.subr.bf16.mxu1 %v8124_v7  ;;  %5930 = vmatprep.subr.bf16.mxu0 %v8451_v10  ;;  %v2767_v7 = vld [vmem:[#allocation7 + $0x768] sm:$0xff]  ;;  %v5344_v10 = vld [vmem:[#allocation2 + $0x498] sm:$0xff] }
 0x3ca   :  { %v8180_v22 = vcombine.high %v2763_v6, %v2767_v7  ;;  %v8179_v53 = vcombine.low %v2763_v6, %v2767_v7  ;;  %v8464_v29 = vcombine.low %v5344_v10, %v5345_v14 }
 0x3cc   :  { %3480 = vmatpush1.bf16.msra.mxu1 %v8123_v23  ;;  %5931 = vmatpush1.bf16.msra.mxu0 %v8450_v8  ;;  %v8465_v23 = vcombine.high %v5344_v10, %v5345_v14  ;;  %v2771_v8 = vld [vmem:[#allocation7 + $0x788] sm:$0xff]  ;;  %v2692_v14 = vld [vmem:[#allocation7 + $0x510] sm:$0xff] }
 0x3cd   :  { %3481 = vmatprep.subr.bf16.mxu1 %v8132_v25  ;;  %5932 = vmatprep.subr.bf16.mxu0 %v8453_v26  ;;  %v2775_v25 = vld [vmem:[#allocation7 + $0x7a8] sm:$0xff]  ;;  %v5346_v26 = vld [vmem:[#allocation2 + $0x4d8] sm:$0xff] }
 0x3ce   :  { %v8467_v32 = vcombine.high %v5346_v26, %v5347_v27  ;;  %v8187_v37 = vcombine.low %v2771_v8, %v2775_v25  ;;  %v8466_v38 = vcombine.low %v5346_v26, %v5347_v27  ;;  %v2700_v27 = vld [vmem:[#allocation7 + $0x550] sm:$0xff] }
 0x3d0   :  { %3482 = vmatpush1.bf16.msra.mxu1 %v8131_v33  ;;  %5933 = vmatpush1.bf16.msra.mxu0 %v8452_v34  ;;  %v2779_v33 = vld [vmem:[#allocation7 + $0x7c8] sm:$0xff] }
 0x3d1   :  { %3483 = vmatprep.subr.bf16.mxu1 %v8140_v9  ;;  %5934 = vmatprep.subr.bf16.mxu0 %v8455_v36  ;;  %v2783_v34 = vld [vmem:[#allocation7 + $0x7e8] sm:$0xff]  ;;  %v5348_v9 = vld [vmem:[#allocation2 + $0x518] sm:$0xff] }
 0x3d2   :  { %v5349_v36 = vld [vmem:[#allocation2 + $0x538] sm:$0xff]  ;;  %v8196_v39 = vcombine.high %v2779_v33, %v2783_v34 }
 0x3d3   :  { %v8468_v47 = vcombine.low %v5348_v9, %v5349_v36 }
 0x3d4   :  { %3484 = vmatpush1.bf16.msra.mxu1 %v8139_v43  ;;  %5935 = vmatpush1.bf16.msra.mxu0 %v8454_v44  ;;  %v2664_v43 = vld [vmem:[#allocation7 + $0x430] sm:$0xff] }
 0x3d5   :  { %3485 = vmatprep.subr.bf16.mxu1 %v8148_v45  ;;  %5936 = vmatprep.subr.bf16.mxu0 %v8457_v46  ;;  %v5350_v44 = vld [vmem:[#allocation2 + $0x558] sm:$0xff]  ;;  %v8195_v46 = vcombine.low %v2779_v33, %v2783_v34  ;;  %v8078_v30 = vcombine.high %v2660_v41, %v2664_v43 }
 0x3d6   :  { %v5351_v45 = vld [vmem:[#allocation2 + $0x578] sm:$0xff] }
 0x3d7   :  { %v8471_v31 = vcombine.high %v5350_v44, %v5351_v45  ;;  %v8470_v57 = vcombine.low %v5350_v44, %v5351_v45  ;;  %v2716_v45 = vld [vmem:[#allocation7 + $0x5d0] sm:$0xff] }
 0x3d8   :  { %3486 = vmatpush1.bf16.msra.mxu1 %v8147_v49  ;;  %5937 = vmatpush1.bf16.msra.mxu0 %v8456_v50  ;;  %v2672_v49 = vld [vmem:[#allocation7 + $0x470] sm:$0xff] }
 0x3d9   :  { %3487 = vmatprep.subr.bf16.mxu1 %v8156_v55  ;;  %5938 = vmatprep.subr.bf16.mxu0 %v8459_v56  ;;  %v5352_v50 = vld [vmem:[#allocation2 + $0x598] sm:$0xff]  ;;  %v8077_v56 = vcombine.low %v2660_v41, %v2664_v43  ;;  %v8086_v58 = vcombine.high %v2668_v35, %v2672_v49 }
 0x3da   :  { %v5353_v55 = vld [vmem:[#allocation2 + $0x5b8] sm:$0xff] }
 0x3db   :  { %v8473_v59 = vcombine.high %v5352_v50, %v5353_v55  ;;  %v8472_v63 = vcombine.low %v5352_v50, %v5353_v55  ;;  %v2724_v55 = vld [vmem:[#allocation7 + $0x610] sm:$0xff] }
 0x3dc   :  { %3488 = vmatpush1.bf16.msra.mxu1 %v8155_v61  ;;  %5939 = vmatpush1.bf16.msra.mxu0 %v8458_v17  ;;  %v2680_v61 = vld [vmem:[#allocation7 + $0x4b0] sm:$0xff] }
 0x3dd   :  { %3489 = vmatprep.subr.bf16.mxu1 %v8164_v11  ;;  %5949 = vmatprep.subr.bf16.mxu0 %v8461_v62  ;;  %v5354_v17 = vld [vmem:[#allocation2 + $0x5d8] sm:$0xff]  ;;  %v8085_v62 = vcombine.low %v2668_v35, %v2672_v49  ;;  %v8094_v18 = vcombine.high %v2676_v60, %v2680_v61 }
 0x3de   :  { %v5355_v11 = vld [vmem:[#allocation2 + $0x5f8] sm:$0xff] }
 0x3df   :  { %5941 = vmatmul.mubr.bf16.vlgmr.msra.gmra.mrb[16].mxu0 %v9304_v12  ;;  %v8188_v12 = vcombine.high %v2771_v8, %v2775_v25  ;;  %v8475_v0 = vcombine.high %v5354_v17, %v5355_v11  ;;  %v8474_v6 = vcombine.low %v5354_v17, %v5355_v11  ;;  %v2732_v11 = vld [vmem:[#allocation7 + $0x650] sm:$0xff] }
 0x3e0   :  { %3490 = vmatpush1.bf16.msra.mxu1 %v8163_v2  ;;  %5950 = vmatpush1.bf16.msra.mxu0 %v8460_v3  ;;  %v2688_v2 = vld [vmem:[#allocation7 + $0x4f0] sm:$0xff] }
 0x3e1   :  { %3491 = vmatprep.subr.bf16.mxu1 %v8172_v4  ;;  %5951 = vmatprep.subr.bf16.mxu0 %v8463_v5  ;;  %v5356_v3 = vld [vmem:[#allocation2 + $0x618] sm:$0xff]  ;;  %v8093_v5 = vcombine.low %v2676_v60, %v2680_v61  ;;  %v8102_v7 = vcombine.high %v2684_v1, %v2688_v2 }
 0x3e2   :  { %5981 = vmatprep.mubr.bf16.mxu0 %v9308_v16  ;;  %v8469_v16 = vcombine.high %v5348_v9, %v5349_v36  ;;  %v5357_v4 = vld [vmem:[#allocation2 + $0x638] sm:$0xff] }
 0x3e3   :  { %v8477_v10 = vcombine.high %v5356_v3, %v5357_v4  ;;  %v8476_v8 = vcombine.low %v5356_v3, %v5357_v4  ;;  %v2708_v36 = vld [vmem:[#allocation7 + $0x590] sm:$0xff] }
 0x3e4   :  { %3492 = vmatpush1.bf16.msra.mxu1 %v8171_v19  ;;  %5952 = vmatpush1.bf16.msra.mxu0 %v8462_v20  ;;  %v2696_v19 = vld [vmem:[#allocation7 + $0x530] sm:$0xff] }
 0x3e5   :  { %3493 = vmatprep.subr.bf16.mxu1 %v8180_v22  ;;  %5953 = vmatprep.subr.bf16.mxu0 %v8465_v23  ;;  %v5358_v20 = vld [vmem:[#allocation2 + $0x658] sm:$0xff]  ;;  %v8101_v23 = vcombine.low %v2684_v1, %v2688_v2  ;;  %v8110_v25 = vcombine.high %v2692_v14, %v2696_v19 }
 0x3e6   :  { %v5359_v22 = vld [vmem:[#allocation2 + $0x678] sm:$0xff] }
 0x3e7   :  { %v8479_v26 = vcombine.high %v5358_v20, %v5359_v22  ;;  %v8478_v33 = vcombine.low %v5358_v20, %v5359_v22  ;;  %v2740_v4 = vld [vmem:[#allocation7 + $0x690] sm:$0xff] }
 0x3e8   :  { %3494 = vmatpush1.bf16.msra.mxu1 %v8179_v53  ;;  %5954 = vmatpush1.bf16.msra.mxu0 %v8464_v29  ;;  %v2704_v53 = vld [vmem:[#allocation7 + $0x570] sm:$0xff] }
 0x3e9   :  { %3495 = vmatprep.subr.bf16.mxu1 %v8188_v12  ;;  %5955 = vmatprep.subr.bf16.mxu0 %v8467_v32  ;;  %v5360_v29 = vld [vmem:[#allocation2 + $0x698] sm:$0xff]  ;;  %v8109_v32 = vcombine.low %v2692_v14, %v2696_v19  ;;  %v8118_v34 = vcombine.high %v2700_v27, %v2704_v53 }
 0x3ea   :  { %v5361_v12 = vld [vmem:[#allocation2 + $0x6b8] sm:$0xff] }
 0x3eb   :  { %v8481_v9 = vcombine.high %v5360_v29, %v5361_v12  ;;  %v8480_v41 = vcombine.low %v5360_v29, %v5361_v12  ;;  %v2748_v22 = vld [vmem:[#allocation7 + $0x6d0] sm:$0xff] }
 0x3ec   :  { %3496 = vmatpush1.bf16.msra.mxu1 %v8187_v37  ;;  %5956 = vmatpush1.bf16.msra.mxu0 %v8466_v38  ;;  %v2712_v37 = vld [vmem:[#allocation7 + $0x5b0] sm:$0xff] }
 0x3ed   :  { %3497 = vmatprep.subr.bf16.mxu1 %v8196_v39  ;;  %5957 = vmatprep.subr.bf16.mxu0 %v8469_v16  ;;  %v5362_v38 = vld [vmem:[#allocation2 + $0x6d8] sm:$0xff]  ;;  %v8117_v16 = vcombine.low %v2700_v27, %v2704_v53  ;;  %v8126_v43 = vcombine.high %v2708_v36, %v2712_v37 }
 0x3ee   :  { %v5363_v39 = vld [vmem:[#allocation2 + $0x6f8] sm:$0xff] }
 0x3ef   :  { %v8483_v44 = vcombine.high %v5362_v38, %v5363_v39  ;;  %v8482_v35 = vcombine.low %v5362_v38, %v5363_v39  ;;  %v2756_v12 = vld [vmem:[#allocation7 + $0x710] sm:$0xff] }
 0x3f0   :  { %3498 = vmatpush1.bf16.msra.mxu1 %v8195_v46  ;;  %5958 = vmatpush1.bf16.msra.mxu0 %v8468_v47  ;;  %v2720_v46 = vld [vmem:[#allocation7 + $0x5f0] sm:$0xff] }
 0x3f1   :  { %3508 = vmatprep.subr.bf16.mxu1 %v8078_v30  ;;  %5959 = vmatprep.subr.bf16.mxu0 %v8471_v31  ;;  %v5364_v47 = vld [vmem:[#allocation2 + $0x718] sm:$0xff]  ;;  %v8125_v31 = vcombine.low %v2708_v36, %v2712_v37  ;;  %v8134_v49 = vcombine.high %v2716_v45, %v2720_v46 }
 0x3f2   :  { %v5365_v30 = vld [vmem:[#allocation2 + $0x738] sm:$0xff] }
 0x3f3   :  { %3500 = vmatmul.mubr.bf16.vlgmr.msra.gmra.mrb[4].mxu1 %v9405_v28  ;;  %v8485_v50 = vcombine.high %v5364_v47, %v5365_v30  ;;  %v8484_v60 = vcombine.low %v5364_v47, %v5365_v30  ;;  %v2764_v39 = vld [vmem:[#allocation7 + $0x750] sm:$0xff] }
 0x3f4   :  { %3509 = vmatpush1.bf16.msra.mxu1 %v8077_v56  ;;  %3540 = vmatprep.mubr.bf16.mxu1 %v9403_v48  ;;  %v2728_v56 = vld [vmem:[#allocation7 + $0x630] sm:$0xff] }
 0x3f5   :  { %5960 = vmatpush1.bf16.msra.mxu0 %v8470_v57  ;;  %3510 = vmatprep.subr.bf16.mxu1 %v8086_v58  ;;  %v5366_v57 = vld [vmem:[#allocation2 + $0x758] sm:$0xff]  ;;  %v8142_v61 = vcombine.high %v2724_v55, %v2728_v56 }
 0x3f6   :  { %5961 = vmatprep.subr.bf16.mxu0 %v8473_v59  ;;  %v5367_v58 = vld [vmem:[#allocation2 + $0x778] sm:$0xff]  ;;  %v8133_v59 = vcombine.low %v2716_v45, %v2720_v46 }
 0x3f7   :  { %v8487_v17 = vcombine.high %v5366_v57, %v5367_v58  ;;  %v8486_v1 = vcombine.low %v5366_v57, %v5367_v58  ;;  %v2772_v30 = vld [vmem:[#allocation7 + $0x790] sm:$0xff] }
 0x3f8   :  { %3511 = vmatpush1.bf16.msra.mxu1 %v8085_v62  ;;  %v2736_v62 = vld [vmem:[#allocation7 + $0x670] sm:$0xff] }
 0x3f9   :  { %5962 = vmatpush1.bf16.msra.mxu0 %v8472_v63  ;;  %3512 = vmatprep.subr.bf16.mxu1 %v8094_v18  ;;  %v5368_v63 = vld [vmem:[#allocation2 + $0x798] sm:$0xff]  ;;  %v8150_v2 = vcombine.high %v2732_v11, %v2736_v62 }
 0x3fa   :  { %5963 = vmatprep.subr.bf16.mxu0 %v8475_v0  ;;  %v5369_v18 = vld [vmem:[#allocation2 + $0x7b8] sm:$0xff]  ;;  %v8141_v0 = vcombine.low %v2724_v55, %v2728_v56 }
 0x3fb   :  { %v8489_v3 = vcombine.high %v5368_v63, %v5369_v18  ;;  %v8488_v14 = vcombine.low %v5368_v63, %v5369_v18  ;;  %v2780_v57 = vld [vmem:[#allocation7 + $0x7d0] sm:$0xff]  ;;  %v2665_v63 = vld [vmem:[#allocation7 + $0x438] sm:$0xff] }
 0x3fc   :  { %3513 = vmatpush1.bf16.msra.mxu1 %v8093_v5  ;;  %v2744_v5 = vld [vmem:[#allocation7 + $0x6b0] sm:$0xff] }
 0x3fd   :  { %5964 = vmatpush1.bf16.msra.mxu0 %v8474_v6  ;;  %3514 = vmatprep.subr.bf16.mxu1 %v8102_v7  ;;  %v5370_v6 = vld [vmem:[#allocation2 + $0x7d8] sm:$0xff]  ;;  %v8158_v19 = vcombine.high %v2740_v4, %v2744_v5 }
 0x3fe   :  { %5965 = vmatprep.subr.bf16.mxu0 %v8477_v10  ;;  %v5371_v7 = vld [vmem:[#allocation2 + $0x7f8] sm:$0xff]  ;;  %v8149_v10 = vcombine.low %v2732_v11, %v2736_v62  ;;  %v2661_v62 = vld [vmem:[#allocation7 + $0x418] sm:$0xff] }
 0x3ff   :  { %v8491_v20 = vcombine.high %v5370_v6, %v5371_v7  ;;  %v8490_v27 = vcombine.low %v5370_v6, %v5371_v7  ;;  %v2784_v58 = vld [vmem:[#allocation7 + $0x7f0] sm:$0xff]  ;;  %v2673_v6 = vld [vmem:[#allocation7 + $0x478] sm:$0xff] }
 0x400   :  { %3515 = vmatpush1.bf16.msra.mxu1 %v8101_v23  ;;  %v2752_v23 = vld [vmem:[#allocation7 + $0x6f0] sm:$0xff] }
 0x401   :  { %5966 = vmatpush1.bf16.msra.mxu0 %v8476_v8  ;;  %3516 = vmatprep.subr.bf16.mxu1 %v8110_v25  ;;  %v5372_v8 = vld [vmem:[#allocation2 + $0x818] sm:$0xff]  ;;  %v8166_v53 = vcombine.high %v2748_v22, %v2752_v23 }
 0x402   :  { %5967 = vmatprep.subr.bf16.mxu0 %v8479_v26  ;;  %v5373_v25 = vld [vmem:[#allocation2 + $0x838] sm:$0xff]  ;;  %v8157_v26 = vcombine.low %v2740_v4, %v2744_v5  ;;  %v2669_v5 = vld [vmem:[#allocation7 + $0x458] sm:$0xff] }
 0x403   :  { %v8493_v29 = vcombine.high %v5372_v8, %v5373_v25  ;;  %v8492_v36 = vcombine.low %v5372_v8, %v5373_v25  ;;  %v5382_v18 = vld [vmem:[#allocation2 + $0x958] sm:$0xff]  ;;  %v2681_v8 = vld [vmem:[#allocation7 + $0x4b8] sm:$0xff] }
 0x404   :  { %3517 = vmatpush1.bf16.msra.mxu1 %v8109_v32  ;;  %v2760_v32 = vld [vmem:[#allocation7 + $0x730] sm:$0xff] }
 0x405   :  { %5968 = vmatpush1.bf16.msra.mxu0 %v8478_v33  ;;  %3518 = vmatprep.subr.bf16.mxu1 %v8118_v34  ;;  %v5374_v33 = vld [vmem:[#allocation2 + $0x858] sm:$0xff]  ;;  %v8174_v37 = vcombine.high %v2756_v12, %v2760_v32 }
 0x406   :  { %5969 = vmatprep.subr.bf16.mxu0 %v8481_v9  ;;  %v5375_v34 = vld [vmem:[#allocation2 + $0x878] sm:$0xff]  ;;  %v8165_v9 = vcombine.low %v2748_v22, %v2752_v23  ;;  %v2677_v23 = vld [vmem:[#allocation7 + $0x498] sm:$0xff] }
 0x407   :  { %v8495_v38 = vcombine.high %v5374_v33, %v5375_v34  ;;  %v8494_v45 = vcombine.low %v5374_v33, %v5375_v34  ;;  %v5384_v7 = vld [vmem:[#allocation2 + $0x998] sm:$0xff]  ;;  %v2689_v33 = vld [vmem:[#allocation7 + $0x4f8] sm:$0xff] }
 0x408   :  { %3519 = vmatpush1.bf16.msra.mxu1 %v8117_v16  ;;  %v2768_v16 = vld [vmem:[#allocation7 + $0x770] sm:$0xff] }
 0x409   :  { %5970 = vmatpush1.bf16.msra.mxu0 %v8480_v41  ;;  %3520 = vmatprep.subr.bf16.mxu1 %v8126_v43  ;;  %v5376_v41 = vld [vmem:[#allocation2 + $0x898] sm:$0xff]  ;;  %v8182_v46 = vcombine.high %v2764_v39, %v2768_v16 }
 0x40a   :  { %5971 = vmatprep.subr.bf16.mxu0 %v8483_v44  ;;  %v5377_v43 = vld [vmem:[#allocation2 + $0x8b8] sm:$0xff]  ;;  %v8173_v44 = vcombine.low %v2756_v12, %v2760_v32  ;;  %v2685_v32 = vld [vmem:[#allocation7 + $0x4d8] sm:$0xff] }
 0x40b   :  { %v8497_v47 = vcombine.high %v5376_v41, %v5377_v43  ;;  %v8496_v55 = vcombine.low %v5376_v41, %v5377_v43  ;;  %v5386_v25 = vld [vmem:[#allocation2 + $0x9d8] sm:$0xff] }
 0x40c   :  { %3521 = vmatpush1.bf16.msra.mxu1 %v8125_v31  ;;  %v2776_v31 = vld [vmem:[#allocation7 + $0x7b0] sm:$0xff] }
 0x40d   :  { %5972 = vmatpush1.bf16.msra.mxu0 %v8482_v35  ;;  %3522 = vmatprep.subr.bf16.mxu1 %v8134_v49  ;;  %v5378_v35 = vld [vmem:[#allocation2 + $0x8d8] sm:$0xff]  ;;  %v8190_v56 = vcombine.high %v2772_v30, %v2776_v31 }
 0x40e   :  { %5973 = vmatprep.subr.bf16.mxu0 %v8485_v50  ;;  %v5379_v49 = vld [vmem:[#allocation2 + $0x8f8] sm:$0xff]  ;;  %v8181_v50 = vcombine.low %v2764_v39, %v2768_v16  ;;  %v2697_v16 = vld [vmem:[#allocation7 + $0x538] sm:$0xff] }
 0x40f   :  { %v5388_v34 = vld [vmem:[#allocation2 + $0xa18] sm:$0xff] }
 0x410   :  { %3523 = vmatpush1.bf16.msra.mxu1 %v8133_v59  ;;  %v5380_v59 = vld [vmem:[#allocation2 + $0x918] sm:$0xff] }
 0x411   :  { %5974 = vmatpush1.bf16.msra.mxu0 %v8484_v60  ;;  %3524 = vmatprep.subr.bf16.mxu1 %v8142_v61  ;;  %v5381_v60 = vld [vmem:[#allocation2 + $0x938] sm:$0xff]  ;;  %v8189_v61 = vcombine.low %v2772_v30, %v2776_v31  ;;  %v2701_v30 = vld [vmem:[#allocation7 + $0x558] sm:$0xff] }
 0x412   :  { %5975 = vmatprep.subr.bf16.mxu0 %v8487_v17  ;;  %v8498_v17 = vcombine.low %v5378_v35, %v5379_v49  ;;  %v8501_v11 = vcombine.high %v5380_v59, %v5381_v60  ;;  %v5390_v41 = vld [vmem:[#allocation2 + $0xa58] sm:$0xff]  ;;  %v2705_v31 = vld [vmem:[#allocation7 + $0x578] sm:$0xff] }
 0x413   :  { %v5391_v43 = vld [vmem:[#allocation2 + $0xa78] sm:$0xff] }
 0x414   :  { %3525 = vmatpush1.bf16.msra.mxu1 %v8141_v0  ;;  %v5383_v0 = vld [vmem:[#allocation2 + $0x978] sm:$0xff] }
 0x415   :  { %5976 = vmatpush1.bf16.msra.mxu0 %v8486_v1  ;;  %3526 = vmatprep.subr.bf16.mxu1 %v8150_v2  ;;  %v8197_v1 = vcombine.low %v2780_v57, %v2784_v58  ;;  %v8500_v2 = vcombine.low %v5380_v59, %v5381_v60  ;;  %v8503_v4 = vcombine.high %v5382_v18, %v5383_v0  ;;  %v5394_v59 = vld [vmem:[#allocation2 + $0xad8] sm:$0xff] }
 0x416   :  { %5977 = vmatprep.subr.bf16.mxu0 %v8489_v3  ;;  %v8080_v3 = vcombine.high %v2661_v62, %v2665_v63  ;;  %v5395_v60 = vld [vmem:[#allocation2 + $0xaf8] sm:$0xff] }
 0x418   :  { %3527 = vmatpush1.bf16.msra.mxu1 %v8149_v10  ;;  %v5385_v10 = vld [vmem:[#allocation2 + $0x9b8] sm:$0xff] }
 0x419   :  { %5978 = vmatpush1.bf16.msra.mxu0 %v8488_v14  ;;  %3528 = vmatprep.subr.bf16.mxu1 %v8158_v19  ;;  %v8079_v14 = vcombine.low %v2661_v62, %v2665_v63  ;;  %v8502_v19 = vcombine.low %v5382_v18, %v5383_v0  ;;  %v8505_v22 = vcombine.high %v5384_v7, %v5385_v10  ;;  %v2717_v62 = vld [vmem:[#allocation7 + $0x5d8] sm:$0xff]  ;;  %v5396_v18 = vld [vmem:[#allocation2 + $0xb18] sm:$0xff] }
 0x41a   :  { %5979 = vmatprep.subr.bf16.mxu0 %v8491_v20  ;;  %v8088_v20 = vcombine.high %v2669_v5, %v2673_v6  ;;  %v2721_v63 = vld [vmem:[#allocation7 + $0x5f8] sm:$0xff]  ;;  %v5397_v0 = vld [vmem:[#allocation2 + $0xb38] sm:$0xff] }
 0x41c   :  { %3529 = vmatpush1.bf16.msra.mxu1 %v8157_v26  ;;  %v5387_v26 = vld [vmem:[#allocation2 + $0x9f8] sm:$0xff] }
 0x41d   :  { %5980 = vmatpush1.bf16.msra.mxu0 %v8490_v27  ;;  %3530 = vmatprep.subr.bf16.mxu1 %v8166_v53  ;;  %v8087_v27 = vcombine.low %v2669_v5, %v2673_v6  ;;  %v8504_v53 = vcombine.low %v5384_v7, %v5385_v10  ;;  %v8507_v12 = vcombine.high %v5386_v25, %v5387_v26  ;;  %v2725_v5 = vld [vmem:[#allocation7 + $0x618] sm:$0xff]  ;;  %v5398_v7 = vld [vmem:[#allocation2 + $0xb58] sm:$0xff] }
 0x41e   :  { %5990 = vmatprep.subr.bf16.mxu0 %v8493_v29  ;;  %v8096_v29 = vcombine.high %v2677_v23, %v2681_v8  ;;  %v2729_v6 = vld [vmem:[#allocation7 + $0x638] sm:$0xff]  ;;  %v5399_v10 = vld [vmem:[#allocation2 + $0xb78] sm:$0xff] }
 0x420   :  { %3531 = vmatpush1.bf16.msra.mxu1 %v8165_v9  ;;  %5982 = vmatmul.mubr.bf16.vlgmr.msra.gmra.mrb[16].mxu0 %v9324_v13  ;;  %v8499_v13 = vcombine.high %v5378_v35, %v5379_v49  ;;  %v5389_v9 = vld [vmem:[#allocation2 + $0xa38] sm:$0xff] }
 0x421   :  { %5991 = vmatpush1.bf16.msra.mxu0 %v8492_v36  ;;  %3532 = vmatprep.subr.bf16.mxu1 %v8174_v37  ;;  %v8095_v36 = vcombine.low %v2677_v23, %v2681_v8  ;;  %v8506_v37 = vcombine.low %v5386_v25, %v5387_v26  ;;  %v8509_v39 = vcombine.high %v5388_v34, %v5389_v9  ;;  %v5392_v35 = vld [vmem:[#allocation2 + $0xa98] sm:$0xff]  ;;  %v2733_v23 = vld [vmem:[#allocation7 + $0x658] sm:$0xff] }
 0x422   :  { %5992 = vmatprep.subr.bf16.mxu0 %v8495_v38  ;;  %6022 = vmatprep.mubr.bf16.mxu0 %v9328_v15  ;;  %v8198_v15 = vcombine.high %v2780_v57, %v2784_v58  ;;  %v8104_v38 = vcombine.high %v2685_v32, %v2689_v33  ;;  %v5393_v49 = vld [vmem:[#allocation2 + $0xab8] sm:$0xff]  ;;  %v2709_v57 = vld [vmem:[#allocation7 + $0x598] sm:$0xff] }
 0x423   :  { %v2713_v58 = vld [vmem:[#allocation7 + $0x5b8] sm:$0xff]  ;;  %v5400_v25 = vld [vmem:[#allocation2 + $0xb98] sm:$0xff] }
 0x424   :  { %3533 = vmatpush1.bf16.msra.mxu1 %v8173_v44  ;;  %v8103_v44 = vcombine.low %v2685_v32, %v2689_v33  ;;  %v2737_v8 = vld [vmem:[#allocation7 + $0x678] sm:$0xff]  ;;  %v5401_v26 = vld [vmem:[#allocation2 + $0xbb8] sm:$0xff] }
 0x425   :  { %5993 = vmatpush1.bf16.msra.mxu0 %v8494_v45  ;;  %3534 = vmatprep.subr.bf16.mxu1 %v8182_v46  ;;  %v8508_v45 = vcombine.low %v5388_v34, %v5389_v9  ;;  %v2741_v32 = vld [vmem:[#allocation7 + $0x698] sm:$0xff]  ;;  %v5402_v34 = vld [vmem:[#allocation2 + $0xbd8] sm:$0xff] }
 0x426   :  { %5994 = vmatprep.subr.bf16.mxu0 %v8497_v47  ;;  %v8511_v47 = vcombine.high %v5390_v41, %v5391_v43  ;;  %v2745_v33 = vld [vmem:[#allocation7 + $0x6b8] sm:$0xff]  ;;  %v5403_v9 = vld [vmem:[#allocation2 + $0xbf8] sm:$0xff] }
 0x428   :  { %3535 = vmatpush1.bf16.msra.mxu1 %v8181_v50 }
 0x429   :  { %5995 = vmatpush1.bf16.msra.mxu0 %v8496_v55  ;;  %3536 = vmatprep.subr.bf16.mxu1 %v8190_v56  ;;  %v8510_v55 = vcombine.low %v5390_v41, %v5391_v43  ;;  %v8120_v56 = vcombine.high %v2701_v30, %v2705_v31  ;;  %v5404_v41 = vld [vmem:[#allocation2 + $0xc18] sm:$0xff] }
 0x42a   :  { %5996 = vmatprep.subr.bf16.mxu0 %v8499_v13  ;;  %v8513_v13 = vcombine.high %v5392_v35, %v5393_v49  ;;  %v5405_v43 = vld [vmem:[#allocation2 + $0xc38] sm:$0xff] }
 0x42c   :  { %3537 = vmatpush1.bf16.msra.mxu1 %v8189_v61  ;;  %v8119_v61 = vcombine.low %v2701_v30, %v2705_v31  ;;  %v2761_v30 = vld [vmem:[#allocation7 + $0x738] sm:$0xff]  ;;  %v8525_v31 = vcombine.high %v5404_v41, %v5405_v43 }
 0x42d   :  { %5997 = vmatpush1.bf16.msra.mxu0 %v8498_v17  ;;  %3538 = vmatprep.subr.bf16.mxu1 %v8198_v15  ;;  %v8512_v17 = vcombine.low %v5392_v35, %v5393_v49  ;;  %v8128_v15 = vcombine.high %v2709_v57, %v2713_v58 }
 0x42e   :  { %5998 = vmatprep.subr.bf16.mxu0 %v8501_v11  ;;  %v8515_v11 = vcombine.high %v5394_v59, %v5395_v60 }
 0x430   :  { %3539 = vmatpush1.bf16.msra.mxu1 %v8197_v1  ;;  %v8127_v1 = vcombine.low %v2709_v57, %v2713_v58  ;;  %v2773_v58 = vld [vmem:[#allocation7 + $0x798] sm:$0xff] }
 0x431   :  { %5999 = vmatpush1.bf16.msra.mxu0 %v8500_v2  ;;  %3549 = vmatprep.subr.bf16.mxu1 %v8080_v3  ;;  %v8514_v2 = vcombine.low %v5394_v59, %v5395_v60  ;;  %v8136_v3 = vcombine.high %v2717_v62, %v2721_v63  ;;  %v2777_v59 = vld [vmem:[#allocation7 + $0x7b8] sm:$0xff] }
 0x432   :  { %6000 = vmatprep.subr.bf16.mxu0 %v8503_v4  ;;  %v8517_v4 = vcombine.high %v5396_v18, %v5397_v0 }
 0x433   :  { %3541 = vmatmul.mubr.bf16.vlgmr.msra.gmra.mrb[8].mxu1 %v9405_v28 }
 0x434   :  { %3550 = vmatpush1.bf16.msra.mxu1 %v8079_v14  ;;  %3581 = vmatprep.mubr.bf16.mxu1 %v9403_v48  ;;  %v2693_v48 = vld [vmem:[#allocation7 + $0x518] sm:$0xff]  ;;  %v8135_v14 = vcombine.low %v2717_v62, %v2721_v63  ;;  %v4372_v63 = vld [vmem:[#allocation7 + $0x820] sm:$0xff] }
 0x435   :  { %6001 = vmatpush1.bf16.msra.mxu0 %v8502_v19  ;;  %3551 = vmatprep.subr.bf16.mxu1 %v8088_v20  ;;  %v8112_v46 = vcombine.high %v2693_v48, %v2697_v16  ;;  %v8111_v50 = vcombine.low %v2693_v48, %v2697_v16  ;;  %v8516_v19 = vcombine.low %v5396_v18, %v5397_v0  ;;  %v2749_v48 = vld [vmem:[#allocation7 + $0x6d8] sm:$0xff]  ;;  %v8998_v18 = vld [vmem:[%s9505_s0 + $0x18] ss:$0 sps:$4 sm:$0xff]   ;;  %s9174_s0 = smov [#allocation13]  }
 0x436   :  { %6002 = vmatprep.subr.bf16.mxu0 %v8505_v22  ;;  %v8144_v20 = vcombine.high %v2725_v5, %v2729_v6  ;;  %v8519_v22 = vcombine.high %v5398_v7, %v5399_v10  ;;  %v2753_v16 = vld [vmem:[#allocation7 + $0x6f8] sm:$0xff]  ;;  %s7728_s3 = sshll.u32 %s9174_s0, 4  ;;  %s7729_s3 = int_to_ptr.vmem [resolvable:$true] %s7728_s3 }
 0x437   :  { %v8167_v35 = vcombine.low %v2749_v48, %v2753_v16  ;;  %v9427_v0 = vld [vmem:[#allocation5 + $0x4] sm:$0x3]  ;;  %s9131_s4 = scalar_lea.vmem %s7729_s3, 128  ;;  %p9136_p7 = scmp.lt.s32.totalorder %s7729_s3, %s7729_s3 }
 0x438   :  { %3552 = vmatpush1.bf16.msra.mxu1 %v8087_v27  ;;  %v8143_v27 = vcombine.low %v2725_v5, %v2729_v6  ;;  %v3705_v5 = vrot.slane %v9427_v0, %v9343_v54  ;;  %p9132_p6 = scmp.ne.s32.totalorder %s7729_s3, %s9131_s4  ;;  %p9137_p8 = scmp.lt.s32.totalorder %s9131_s4, %s9131_s4 }
 0x439   :  { %6003 = vmatpush1.bf16.msra.mxu0 %v8504_v53  ;;  %3553 = vmatprep.subr.bf16.mxu1 %v8096_v29  ;;  %v8518_v53 = vcombine.low %v5398_v7, %v5399_v10  ;;  %v8152_v29 = vcombine.high %v2733_v23, %v2737_v8  ;;  %v4384_v10 = vld [vmem:[#allocation7 + $0x880] sm:$0xff] }
 0x43a   :  { %6004 = vmatprep.subr.bf16.mxu0 %v8507_v12  ;;  %v8521_v12 = vcombine.high %v5400_v25, %v5401_v26  ;;  %p9138_p9 = por %p9137_p8, %p9136_p7 }
 0x43c   :  { %3554 = vmatpush1.bf16.msra.mxu1 %v8095_v36  ;;  %v8151_v36 = vcombine.low %v2733_v23, %v2737_v8  ;;  %p9139_p10 = pnand %p9138_p9, %p9132_p6 }
 0x43d   :  { %6005 = vmatpush1.bf16.msra.mxu0 %v8506_v37  ;;  %3555 = vmatprep.subr.bf16.mxu1 %v8104_v38  ;;  %v8520_v37 = vcombine.low %v5400_v25, %v5401_v26  ;;  %v8160_v38 = vcombine.high %v2741_v32, %v2745_v33 }
 0x43e   :  { %6006 = vmatprep.subr.bf16.mxu0 %v8509_v39  ;;  %v8523_v39 = vcombine.high %v5402_v34, %v5403_v9 }
 0x440   :  { %3556 = vmatpush1.bf16.msra.mxu1 %v8103_v44  ;;  %v8159_v44 = vcombine.low %v2741_v32, %v2745_v33 }
 0x441   :  { %6007 = vmatpush1.bf16.msra.mxu0 %v8508_v45  ;;  %3557 = vmatprep.subr.bf16.mxu1 %v8112_v46  ;;  %v8522_v45 = vcombine.low %v5402_v34, %v5403_v9  ;;  %v8168_v46 = vcombine.high %v2749_v48, %v2753_v16  ;;  %v4400_v34 = vld [vmem:[#allocation7 + $0x900] sm:$0xff] }
 0x442   :  { %6008 = vmatprep.subr.bf16.mxu0 %v8511_v47  ;;  %v2757_v47 = vld [vmem:[#allocation7 + $0x718] sm:$0xff]  ;;  %v4416_v16 = vld [vmem:[#allocation7 + $0x980] sm:$0xff] }
 0x443   :  { %v8176_v49 = vcombine.high %v2757_v47, %v2761_v30 }
 0x444   :  { %3558 = vmatpush1.bf16.msra.mxu1 %v8111_v50  ;;  %v8524_v50 = vcombine.low %v5404_v41, %v5405_v43  ;;  %v4420_v41 = vld [vmem:[#allocation7 + $0x9a0] sm:$0xff] }
 0x445   :  { %6009 = vmatpush1.bf16.msra.mxu0 %v8510_v55  ;;  %3559 = vmatprep.subr.bf16.mxu1 %v8120_v56  ;;  %v2765_v55 = vld [vmem:[#allocation7 + $0x758] sm:$0xff] }
 0x446   :  { %6010 = vmatprep.subr.bf16.mxu0 %v8513_v13  ;;  %v2769_v56 = vld [vmem:[#allocation7 + $0x778] sm:$0xff]  ;;  %v8175_v13 = vcombine.low %v2757_v47, %v2761_v30  ;;  %v8348_v47 = vcombine.low %v4416_v16, %v4420_v41 }
 0x447   :  { %v8184_v57 = vcombine.high %v2765_v55, %v2769_v56  ;;  %v8183_v60 = vcombine.low %v2765_v55, %v2769_v56  ;;  %v4440_v55 = vld [vmem:[#allocation7 + $0xa40] sm:$0xff] }
 0x448   :  { %3560 = vmatpush1.bf16.msra.mxu1 %v8119_v61  ;;  %v8192_v61 = vcombine.high %v2773_v58, %v2777_v59  ;;  %v4444_v56 = vld [vmem:[#allocation7 + $0xa60] sm:$0xff] }
 0x449   :  { %6011 = vmatpush1.bf16.msra.mxu0 %v8512_v17  ;;  %3561 = vmatprep.subr.bf16.mxu1 %v8128_v15  ;;  %v2781_v17 = vld [vmem:[#allocation7 + $0x7d8] sm:$0xff] }
 0x44a   :  { %6012 = vmatprep.subr.bf16.mxu0 %v8515_v11  ;;  %v2785_v15 = vld [vmem:[#allocation7 + $0x7f8] sm:$0xff]  ;;  %v8191_v11 = vcombine.low %v2773_v58, %v2777_v59  ;;  %v4448_v58 = vld [vmem:[#allocation7 + $0xa80] sm:$0xff] }
 0x44b   :  { %v8200_v62 = vcombine.high %v2781_v17, %v2785_v15  ;;  %v4452_v59 = vld [vmem:[#allocation7 + $0xaa0] sm:$0xff] }
 0x44c   :  { %3562 = vmatpush1.bf16.msra.mxu1 %v8127_v1 }
 0x44d   :  { %6013 = vmatpush1.bf16.msra.mxu0 %v8514_v2  ;;  %3563 = vmatprep.subr.bf16.mxu1 %v8136_v3  ;;  %v4376_v2 = vld [vmem:[#allocation7 + $0x840] sm:$0xff] }
 0x44e   :  { %6014 = vmatprep.subr.bf16.mxu0 %v8517_v4  ;;  %v4380_v3 = vld [vmem:[#allocation7 + $0x860] sm:$0xff] }
 0x44f   :  { %v8309_v6 = vcombine.high %v4376_v2, %v4380_v3  ;;  %v8308_v23 = vcombine.low %v4376_v2, %v4380_v3  ;;  %v4476_v2 = vld [vmem:[#allocation7 + $0xb60] sm:$0xff] }
 0x450   :  { %3564 = vmatpush1.bf16.msra.mxu1 %v8135_v14  ;;  %v4388_v14 = vld [vmem:[#allocation7 + $0x8a0] sm:$0xff] }
 0x451   :  { %6015 = vmatpush1.bf16.msra.mxu0 %v8516_v19  ;;  %3565 = vmatprep.subr.bf16.mxu1 %v8144_v20  ;;  %v8317_v25 = vcombine.high %v4384_v10, %v4388_v14 }
 0x452   :  { %6016 = vmatprep.subr.bf16.mxu0 %v8519_v22 }
 0x454   :  { %3566 = vmatpush1.bf16.msra.mxu1 %v8143_v27  ;;  %v4392_v27 = vld [vmem:[#allocation7 + $0x8c0] sm:$0xff] }
 0x455   :  { %6017 = vmatpush1.bf16.msra.mxu0 %v8518_v53  ;;  %3567 = vmatprep.subr.bf16.mxu1 %v8152_v29  ;;  %v4396_v53 = vld [vmem:[#allocation7 + $0x8e0] sm:$0xff] }
 0x456   :  { %6018 = vmatprep.subr.bf16.mxu0 %v8521_v12  ;;  %v8316_v12 = vcombine.low %v4384_v10, %v4388_v14  ;;  %v8325_v32 = vcombine.high %v4392_v27, %v4396_v53  ;;  %v8324_v9 = vcombine.low %v4392_v27, %v4396_v53  ;;  %v4484_v10 = vld [vmem:[#allocation7 + $0xba0] sm:$0xff]  ;;  %v4369_v27 = vld [vmem:[#allocation7 + $0x808] sm:$0xff] }
 0x457   :  { %v4373_v53 = vld [vmem:[#allocation7 + $0x828] sm:$0xff] }
 0x458   :  { %3568 = vmatpush1.bf16.msra.mxu1 %v8151_v36 }
 0x459   :  { %6019 = vmatpush1.bf16.msra.mxu0 %v8520_v37  ;;  %3569 = vmatprep.subr.bf16.mxu1 %v8160_v38  ;;  %v4408_v37 = vld [vmem:[#allocation7 + $0x940] sm:$0xff] }
 0x45a   :  { %6020 = vmatprep.subr.bf16.mxu0 %v8523_v39  ;;  %v4412_v38 = vld [vmem:[#allocation7 + $0x960] sm:$0xff] }
 0x45b   :  { %v8341_v48 = vcombine.high %v4408_v37, %v4412_v38  ;;  %v8340_v43 = vcombine.low %v4408_v37, %v4412_v38  ;;  %v4389_v37 = vld [vmem:[#allocation7 + $0x8a8] sm:$0xff] }
 0x45c   :  { %3570 = vmatpush1.bf16.msra.mxu1 %v8159_v44  ;;  %v8349_v44 = vcombine.high %v4416_v16, %v4420_v41  ;;  %v4397_v16 = vld [vmem:[#allocation7 + $0x8e8] sm:$0xff] }
 0x45d   :  { %6021 = vmatpush1.bf16.msra.mxu0 %v8522_v45  ;;  %3571 = vmatprep.subr.bf16.mxu1 %v8168_v46  ;;  %v4424_v45 = vld [vmem:[#allocation7 + $0x9c0] sm:$0xff] }
 0x45e   :  { %6031 = vmatprep.subr.bf16.mxu0 %v8525_v31  ;;  %v4428_v46 = vld [vmem:[#allocation7 + $0x9e0] sm:$0xff] }
 0x45f   :  { %v8357_v30 = vcombine.high %v4424_v45, %v4428_v46  ;;  %v4432_v31 = vld [vmem:[#allocation7 + $0xa00] sm:$0xff] }
 0x460   :  { %6023 = vmatmul.mubr.bf16.vlgmr.msra.gmra.mrb[16].mxu0 %v9334_v24  ;;  %3572 = vmatpush1.bf16.msra.mxu1 %v8167_v35  ;;  %v4368_v24 = vld [vmem:[#allocation7 + $0x800] sm:$0xff] }
 0x461   :  { %3573 = vmatprep.subr.bf16.mxu1 %v8176_v49  ;;  %6032 = vmatpush1.bf16.msra.mxu0 %v8524_v50  ;;  %v8301_v1 = vcombine.high %v4368_v24, %v4372_v63  ;;  %v8300_v4 = vcombine.low %v4368_v24, %v4372_v63  ;;  %v4436_v35 = vld [vmem:[#allocation7 + $0xa20] sm:$0xff]  ;;  %v8356_v49 = vcombine.low %v4424_v45, %v4428_v46  ;;  %v4405_v45 = vld [vmem:[#allocation7 + $0x928] sm:$0xff] }
 0x462   :  { %6063 = vmatprep.mubr.bf16.mxu0 %v9173_v21  ;;  %v8199_v21 = vcombine.low %v2781_v17, %v2785_v15  ;;  %v8365_v50 = vcombine.high %v4432_v31, %v4436_v35  ;;  %v4456_v17 = vld [vmem:[#allocation7 + $0xac0] sm:$0xff] }
 0x463   :  { %v4460_v15 = vld [vmem:[#allocation7 + $0xae0] sm:$0xff] }
 0x464   :  { %3574 = vmatpush1.bf16.msra.mxu1 %v8175_v13  ;;  %v8364_v13 = vcombine.low %v4432_v31, %v4436_v35  ;;  %v4464_v24 = vld [vmem:[#allocation7 + $0xb00] sm:$0xff]  ;;  %v4413_v31 = vld [vmem:[#allocation7 + $0x968] sm:$0xff] }
 0x465   :  { %3575 = vmatprep.subr.bf16.mxu1 %v8184_v57  ;;  %v8373_v57 = vcombine.high %v4440_v55, %v4444_v56  ;;  %v4468_v63 = vld [vmem:[#allocation7 + $0xb20] sm:$0xff] }
 0x466   :  { %v8396_v3 = vcombine.low %v4464_v24, %v4468_v63 }
 0x468   :  { %3576 = vmatpush1.bf16.msra.mxu1 %v8183_v60  ;;  %v8372_v60 = vcombine.low %v4440_v55, %v4444_v56  ;;  %v4421_v55 = vld [vmem:[#allocation7 + $0x9a8] sm:$0xff] }
 0x469   :  { %3577 = vmatprep.subr.bf16.mxu1 %v8192_v61  ;;  %v8381_v61 = vcombine.high %v4448_v58, %v4452_v59 }
 0x46c   :  { %8526 = vmatmul.mubr.msk.bf16.vlgmr.msra.gmra.mrb[16].mxu0 %vm774_vm0, %v8998_v18  ;;  %3578 = vmatpush1.bf16.msra.mxu1 %v8191_v11  ;;  %v8380_v11 = vcombine.low %v4448_v58, %v4452_v59  ;;  %v8388_v18 = vcombine.low %v4456_v17, %v4460_v15  ;;  %v4429_v58 = vld [vmem:[#allocation7 + $0x9e8] sm:$0xff] }
 0x46d   :  { %3579 = vmatprep.subr.bf16.mxu1 %v8200_v62  ;;  %v8389_v62 = vcombine.high %v4456_v17, %v4460_v15  ;;  %v4437_v17 = vld [vmem:[#allocation7 + $0xa28] sm:$0xff] }
 0x470   :  { %3580 = vmatpush1.bf16.msra.mxu1 %v8199_v21  ;;  %v8397_v21 = vcombine.high %v4464_v24, %v4468_v63  ;;  %v4445_v24 = vld [vmem:[#allocation7 + $0xa68] sm:$0xff] }
 0x471   :  { %5136 = vmatprep.subr.bf16.mxu1 %v8301_v1  ;;  %v4472_v1 = vld [vmem:[#allocation7 + $0xb40] sm:$0xff] }
 0x472   :  { %v9431_v7 = vpop.f32.mrb[12].mxu0  ;;  %v8404_v14 = vcombine.low %v4472_v1, %v4476_v2 }
 0x473   :  { %3582 = vmatmul.mubr.bf16.vlgmr.msra.gmra.mrb[12].mxu1 %v9405_v28  ;;  %v4357_v19 = vpop.f32.mrb[13].mxu0  ;;  %v4404_v28 = vld [vmem:[#allocation7 + $0x920] sm:$0xff] }
 0x474   :  { %v8827_v20 = vadd.f32 %v4357_v19, %v3705_v5  ;;  %5137 = vmatpush1.bf16.msra.mxu1 %v8300_v4  ;;  %v4359_v22 = vpop.f32.mrb[14].mxu0  ;;  %v8333_v36 = vcombine.high %v4400_v34, %v4404_v28  ;;  %v8332_v39 = vcombine.low %v4400_v34, %v4404_v28  ;;  %v3701_v4 = vrot.slane %v9427_v0, %v9340_v52  ;;  %v4381_v34 = vld [vmem:[#allocation7 + $0x868] sm:$0xff] }
 0x475   :  { %v4360_v8 = vpop.f32.mrb[15].mxu0  ;;  %5138 = vmatprep.subr.bf16.mxu1 %v8309_v6  ;;  %v8405_v5 = vcombine.high %v4472_v1, %v4476_v2  ;;  %v4480_v6 = vld [vmem:[#allocation7 + $0xb80] sm:$0xff]  ;;  %v4453_v1 = vld [vmem:[#allocation7 + $0xaa8] sm:$0xff] }
 0x476   :  { %v4363_v26 = vmul.f32 0.01, %v8827_v20  ;;  %v8826_v19 = vadd.f32 %v9431_v7, %v3701_v4  ;;  %v4488_v22 = vld [vmem:[#allocation7 + $0xbc0] sm:$0xff]  ;;  %v8412_v8 = vcombine.low %v4480_v6, %v4484_v10  ;;  %v8302_v7 = vcombine.low %v4369_v27, %v4373_v53  ;;  %v4457_v4 = vld [vmem:[#allocation7 + $0xac8] sm:$0xff] }
 0x478   :  { %v4365_v29 = vmax.f32 %v8827_v20, %v4363_v26  ;;  %5139 = vmatpush1.bf16.msra.mxu1 %v8308_v23  ;;  %v8413_v20 = vcombine.high %v4480_v6, %v4484_v10  ;;  %v4492_v23 = vld [vmem:[#allocation7 + $0xbe0] sm:$0xff] }
 0x479   :  { %5140 = vmatprep.subr.bf16.mxu1 %v8317_v25  ;;  %v4362_v25 = vmul.f32 0.01, %v8826_v19  ;;  %v8421_v26 = vcombine.high %v4488_v22, %v4492_v23  ;;  %v8420_v0 = vcombine.low %v4488_v22, %v4492_v23  ;;  %v4473_v23 = vld [vmem:[#allocation7 + $0xb48] sm:$0xff] }
 0x47a   :  { %v9434_v33 = vpack.c.bf16 %v4365_v29, %v4365_v29 }
 0x47b   :  { %v4364_v29 = vmax.f32 %v8826_v19, %v4362_v25  ;;  %v4469_v19 = vld [vmem:[#allocation7 + $0xb28] sm:$0xff] }
 0x47c   :  { %5141 = vmatpush1.bf16.msra.mxu1 %v8316_v12  ;;  %5168 = vmatprep.mubr.bf16.mxu1 %v9434_v33  ;;  %v8303_v12 = vcombine.high %v4369_v27, %v4373_v53  ;;  %v4481_v27 = vld [vmem:[#allocation7 + $0xb88] sm:$0xff] }
 0x47d   :  { %5142 = vmatprep.subr.bf16.mxu1 %v8325_v32  ;;  %v4377_v32 = vld [vmem:[#allocation7 + $0x848] sm:$0xff]  ;;  %v9440_v28 = vpack.c.bf16 %v4364_v29, %v4364_v29 }
 0x47e   :  { %v8310_v38 = vcombine.low %v4377_v32, %v4381_v34  ;;  %v4485_v53 = vld [vmem:[#allocation7 + $0xba8] sm:$0xff] }
 0x47f   :  { %v8415_v29 = vcombine.high %v4481_v27, %v4485_v53 }
 0x480   :  { %5143 = vmatpush1.bf16.msra.mxu1 %v8324_v9  ;;  %v8311_v9 = vcombine.high %v4377_v32, %v4381_v34  ;;  %v4493_v32 = vld [vmem:[#allocation7 + $0xbe8] sm:$0xff]  ;;  %v8414_v34 = vcombine.low %v4481_v27, %v4485_v53  ;;  %v4470_v27 = vld [vmem:[#allocation7 + $0xb30] sm:$0xff] }
 0x481   :  { %5144 = vmatprep.subr.bf16.mxu1 %v8333_v36  ;;  %v4385_v36 = vld [vmem:[#allocation7 + $0x888] sm:$0xff] }
 0x482   :  { %v8318_v41 = vcombine.low %v4385_v36, %v4389_v37 }
 0x484   :  { %5145 = vmatpush1.bf16.msra.mxu1 %v8332_v39  ;;  %v8319_v39 = vcombine.high %v4385_v36, %v4389_v37  ;;  %v4374_v36 = vld [vmem:[#allocation7 + $0x830] sm:$0xff] }
 0x485   :  { %5146 = vmatprep.subr.bf16.mxu1 %v8341_v48  ;;  %v4393_v48 = vld [vmem:[#allocation7 + $0x8c8] sm:$0xff] }
 0x486   :  { %v8326_v46 = vcombine.low %v4393_v48, %v4397_v16 }
 0x488   :  { %5147 = vmatpush1.bf16.msra.mxu1 %v8340_v43  ;;  %v8327_v43 = vcombine.high %v4393_v48, %v4397_v16  ;;  %v4382_v48 = vld [vmem:[#allocation7 + $0x870] sm:$0xff] }
 0x489   :  { %5148 = vmatprep.subr.bf16.mxu1 %v8349_v44  ;;  %v4401_v44 = vld [vmem:[#allocation7 + $0x908] sm:$0xff] }
 0x48a   :  { %v8334_v35 = vcombine.low %v4401_v44, %v4405_v45 }
 0x48c   :  { %5149 = vmatpush1.bf16.msra.mxu1 %v8348_v47  ;;  %v8335_v47 = vcombine.high %v4401_v44, %v4405_v45  ;;  %v4390_v44 = vld [vmem:[#allocation7 + $0x8b0] sm:$0xff] }
 0x48d   :  { %5150 = vmatprep.subr.bf16.mxu1 %v8357_v30  ;;  %v4409_v30 = vld [vmem:[#allocation7 + $0x948] sm:$0xff] }
 0x48e   :  { %v8342_v56 = vcombine.low %v4409_v30, %v4413_v31 }
 0x490   :  { %5151 = vmatpush1.bf16.msra.mxu1 %v8356_v49  ;;  %v8343_v49 = vcombine.high %v4409_v30, %v4413_v31  ;;  %v4398_v30 = vld [vmem:[#allocation7 + $0x8f0] sm:$0xff] }
 0x491   :  { %5152 = vmatprep.subr.bf16.mxu1 %v8365_v50  ;;  %v4417_v50 = vld [vmem:[#allocation7 + $0x988] sm:$0xff] }
 0x492   :  { %v8350_v59 = vcombine.low %v4417_v50, %v4421_v55 }
 0x494   :  { %5153 = vmatpush1.bf16.msra.mxu1 %v8364_v13  ;;  %v8351_v13 = vcombine.high %v4417_v50, %v4421_v55  ;;  %v4406_v50 = vld [vmem:[#allocation7 + $0x930] sm:$0xff] }
 0x495   :  { %5154 = vmatprep.subr.bf16.mxu1 %v8373_v57  ;;  %v4425_v57 = vld [vmem:[#allocation7 + $0x9c8] sm:$0xff] }
 0x496   :  { %v8358_v15 = vcombine.low %v4425_v57, %v4429_v58 }
 0x498   :  { %5155 = vmatpush1.bf16.msra.mxu1 %v8372_v60  ;;  %v8359_v60 = vcombine.high %v4425_v57, %v4429_v58  ;;  %v4414_v57 = vld [vmem:[#allocation7 + $0x970] sm:$0xff] }
 0x499   :  { %5156 = vmatprep.subr.bf16.mxu1 %v8381_v61  ;;  %v4433_v61 = vld [vmem:[#allocation7 + $0xa08] sm:$0xff] }
 0x49a   :  { %v8366_v63 = vcombine.low %v4433_v61, %v4437_v17 }
 0x49c   :  { %5157 = vmatpush1.bf16.msra.mxu1 %v8380_v11  ;;  %v8367_v11 = vcombine.high %v4433_v61, %v4437_v17  ;;  %v4422_v61 = vld [vmem:[#allocation7 + $0x9b0] sm:$0xff] }
 0x49d   :  { %5158 = vmatprep.subr.bf16.mxu1 %v8389_v62  ;;  %v4441_v62 = vld [vmem:[#allocation7 + $0xa48] sm:$0xff] }
 0x49e   :  { %v8374_v2 = vcombine.low %v4441_v62, %v4445_v24 }
 0x4a0   :  { %5159 = vmatpush1.bf16.msra.mxu1 %v8388_v18  ;;  %v8375_v18 = vcombine.high %v4441_v62, %v4445_v24  ;;  %v4430_v62 = vld [vmem:[#allocation7 + $0x9f0] sm:$0xff] }
 0x4a1   :  { %5160 = vmatprep.subr.bf16.mxu1 %v8397_v21  ;;  %v4449_v21 = vld [vmem:[#allocation7 + $0xa88] sm:$0xff] }
 0x4a2   :  { %v8382_v6 = vcombine.low %v4449_v21, %v4453_v1 }
 0x4a4   :  { %5161 = vmatpush1.bf16.msra.mxu1 %v8396_v3  ;;  %v8383_v3 = vcombine.high %v4449_v21, %v4453_v1  ;;  %v4438_v21 = vld [vmem:[#allocation7 + $0xa30] sm:$0xff] }
 0x4a5   :  { %5162 = vmatprep.subr.bf16.mxu1 %v8405_v5  ;;  %v4461_v5 = vld [vmem:[#allocation7 + $0xae8] sm:$0xff] }
 0x4a6   :  { %v8391_v10 = vcombine.high %v4457_v4, %v4461_v5 }
 0x4a8   :  { %5163 = vmatpush1.bf16.msra.mxu1 %v8404_v14  ;;  %v4465_v14 = vld [vmem:[#allocation7 + $0xb08] sm:$0xff] }
 0x4a9   :  { %5164 = vmatprep.subr.bf16.mxu1 %v8413_v20  ;;  %v8390_v20 = vcombine.low %v4457_v4, %v4461_v5  ;;  %v8399_v22 = vcombine.high %v4465_v14, %v4469_v19  ;;  %v8398_v25 = vcombine.low %v4465_v14, %v4469_v19  ;;  %v4446_v4 = vld [vmem:[#allocation7 + $0xa70] sm:$0xff] }
 0x4aa   :  { %v4454_v14 = vld [vmem:[#allocation7 + $0xab0] sm:$0xff] }
 0x4ac   :  { %5165 = vmatpush1.bf16.msra.mxu1 %v8412_v8  ;;  %v4477_v8 = vld [vmem:[#allocation7 + $0xb68] sm:$0xff] }
 0x4ad   :  { %5166 = vmatprep.subr.bf16.mxu1 %v8421_v26  ;;  %v8407_v26 = vcombine.high %v4473_v23, %v4477_v8 }
 0x4b0   :  { %5167 = vmatpush1.bf16.msra.mxu1 %v8420_v0  ;;  %v8406_v0 = vcombine.low %v4473_v23, %v4477_v8  ;;  %v4462_v23 = vld [vmem:[#allocation7 + $0xaf0] sm:$0xff] }
 0x4b1   :  { %5177 = vmatprep.subr.bf16.mxu1 %v8303_v12  ;;  %v4489_v12 = vld [vmem:[#allocation7 + $0xbc8] sm:$0xff] }
 0x4b2   :  { %v8422_v37 = vcombine.low %v4489_v12, %v4493_v32 }
 0x4b3   :  { %5169 = vmatmul.mubr.bf16.vlgmr.msra.gmra.mrb[20].mxu1 %v9440_v28 }
 0x4b4   :  { %5178 = vmatpush1.bf16.msra.mxu1 %v8302_v7  ;;  %5209 = vmatprep.mubr.bf16.mxu1 %v9434_v33  ;;  %v8423_v7 = vcombine.high %v4489_v12, %v4493_v32  ;;  %v4478_v12 = vld [vmem:[#allocation7 + $0xb70] sm:$0xff] }
 0x4b5   :  { %5179 = vmatprep.subr.bf16.mxu1 %v8311_v9  ;;  %v4370_v9 = vld [vmem:[#allocation7 + $0x810] sm:$0xff] }
 0x4b6   :  { %v8304_v16 = vcombine.low %v4370_v9, %v4374_v36 }
 0x4b8   :  { %5180 = vmatpush1.bf16.msra.mxu1 %v8310_v38  ;;  %v8305_v38 = vcombine.high %v4370_v9, %v4374_v36  ;;  %v4486_v9 = vld [vmem:[#allocation7 + $0xbb0] sm:$0xff] }
 0x4b9   :  { %5181 = vmatprep.subr.bf16.mxu1 %v8319_v39  ;;  %v4378_v39 = vld [vmem:[#allocation7 + $0x850] sm:$0xff] }
 0x4ba   :  { %v8312_v45 = vcombine.low %v4378_v39, %v4382_v48 }
 0x4bc   :  { %5182 = vmatpush1.bf16.msra.mxu1 %v8318_v41  ;;  %v8313_v41 = vcombine.high %v4378_v39, %v4382_v48  ;;  %v4494_v39 = vld [vmem:[#allocation7 + $0xbf0] sm:$0xff] }
 0x4bd   :  { %5183 = vmatprep.subr.bf16.mxu1 %v8327_v43  ;;  %v4386_v43 = vld [vmem:[#allocation7 + $0x890] sm:$0xff] }
 0x4be   :  { %v8320_v31 = vcombine.low %v4386_v43, %v4390_v44 }
 0x4c0   :  { %5184 = vmatpush1.bf16.msra.mxu1 %v8326_v46  ;;  %v8321_v46 = vcombine.high %v4386_v43, %v4390_v44  ;;  %v4375_v43 = vld [vmem:[#allocation7 + $0x838] sm:$0xff] }
 0x4c1   :  { %5185 = vmatprep.subr.bf16.mxu1 %v8335_v47  ;;  %v4394_v47 = vld [vmem:[#allocation7 + $0x8d0] sm:$0xff] }
 0x4c2   :  { %v8328_v55 = vcombine.low %v4394_v47, %v4398_v30 }
 0x4c4   :  { %5186 = vmatpush1.bf16.msra.mxu1 %v8334_v35  ;;  %v8329_v35 = vcombine.high %v4394_v47, %v4398_v30  ;;  %v4383_v47 = vld [vmem:[#allocation7 + $0x878] sm:$0xff] }
 0x4c5   :  { %5187 = vmatprep.subr.bf16.mxu1 %v8343_v49  ;;  %v4402_v49 = vld [vmem:[#allocation7 + $0x910] sm:$0xff] }
 0x4c6   :  { %v8336_v58 = vcombine.low %v4402_v49, %v4406_v50 }
 0x4c8   :  { %5188 = vmatpush1.bf16.msra.mxu1 %v8342_v56  ;;  %v8337_v56 = vcombine.high %v4402_v49, %v4406_v50  ;;  %v4391_v49 = vld [vmem:[#allocation7 + $0x8b8] sm:$0xff] }
 0x4c9   :  { %5189 = vmatprep.subr.bf16.mxu1 %v8351_v13  ;;  %v4410_v13 = vld [vmem:[#allocation7 + $0x950] sm:$0xff] }
 0x4ca   :  { %v8344_v17 = vcombine.low %v4410_v13, %v4414_v57 }
 0x4cc   :  { %5190 = vmatpush1.bf16.msra.mxu1 %v8350_v59  ;;  %v8345_v59 = vcombine.high %v4410_v13, %v4414_v57  ;;  %v4399_v13 = vld [vmem:[#allocation7 + $0x8f8] sm:$0xff] }
 0x4cd   :  { %5191 = vmatprep.subr.bf16.mxu1 %v8359_v60  ;;  %v4418_v60 = vld [vmem:[#allocation7 + $0x990] sm:$0xff] }
 0x4ce   :  { %v8352_v24 = vcombine.low %v4418_v60, %v4422_v61 }
 0x4d0   :  { %5192 = vmatpush1.bf16.msra.mxu1 %v8358_v15  ;;  %v8353_v15 = vcombine.high %v4418_v60, %v4422_v61  ;;  %v4407_v60 = vld [vmem:[#allocation7 + $0x938] sm:$0xff] }
 0x4d1   :  { %5193 = vmatprep.subr.bf16.mxu1 %v8367_v11  ;;  %v4426_v11 = vld [vmem:[#allocation7 + $0x9d0] sm:$0xff] }
 0x4d2   :  { %v8360_v1 = vcombine.low %v4426_v11, %v4430_v62 }
 0x4d4   :  { %5194 = vmatpush1.bf16.msra.mxu1 %v8366_v63  ;;  %v8361_v63 = vcombine.high %v4426_v11, %v4430_v62  ;;  %v4415_v11 = vld [vmem:[#allocation7 + $0x978] sm:$0xff] }
 0x4d5   :  { %5195 = vmatprep.subr.bf16.mxu1 %v8375_v18  ;;  %v4434_v18 = vld [vmem:[#allocation7 + $0xa10] sm:$0xff] }
 0x4d6   :  { %v8368_v5 = vcombine.low %v4434_v18, %v4438_v21 }
 0x4d8   :  { %5196 = vmatpush1.bf16.msra.mxu1 %v8374_v2  ;;  %v8369_v2 = vcombine.high %v4434_v18, %v4438_v21 }
 0x4d9   :  { %5197 = vmatprep.subr.bf16.mxu1 %v8383_v3  ;;  %v4442_v3 = vld [vmem:[#allocation7 + $0xa50] sm:$0xff] }
 0x4da   :  { %v8376_v19 = vcombine.low %v4442_v3, %v4446_v4 }
 0x4dc   :  { %5198 = vmatpush1.bf16.msra.mxu1 %v8382_v6  ;;  %v8377_v6 = vcombine.high %v4442_v3, %v4446_v4 }
 0x4dd   :  { %5199 = vmatprep.subr.bf16.mxu1 %v8391_v10  ;;  %v4450_v10 = vld [vmem:[#allocation7 + $0xa90] sm:$0xff] }
 0x4de   :  { %v8384_v8 = vcombine.low %v4450_v10, %v4454_v14 }
 0x4e0   :  { %5200 = vmatpush1.bf16.msra.mxu1 %v8390_v20  ;;  %v8385_v20 = vcombine.high %v4450_v10, %v4454_v14 }
 0x4e1   :  { %5201 = vmatprep.subr.bf16.mxu1 %v8399_v22  ;;  %v4458_v22 = vld [vmem:[#allocation7 + $0xad0] sm:$0xff] }
 0x4e2   :  { %v8392_v53 = vcombine.low %v4458_v22, %v4462_v23 }
 0x4e4   :  { %5202 = vmatpush1.bf16.msra.mxu1 %v8398_v25  ;;  %v8393_v25 = vcombine.high %v4458_v22, %v4462_v23 }
 0x4e5   :  { %5203 = vmatprep.subr.bf16.mxu1 %v8407_v26  ;;  %v4466_v26 = vld [vmem:[#allocation7 + $0xb10] sm:$0xff] }
 0x4e6   :  { %v8400_v32 = vcombine.low %v4466_v26, %v4470_v27 }
 0x4e8   :  { %5204 = vmatpush1.bf16.msra.mxu1 %v8406_v0  ;;  %v8401_v0 = vcombine.high %v4466_v26, %v4470_v27 }
 0x4e9   :  { %5205 = vmatprep.subr.bf16.mxu1 %v8415_v29  ;;  %v4474_v29 = vld [vmem:[#allocation7 + $0xb50] sm:$0xff] }
 0x4ea   :  { %v8408_v36 = vcombine.low %v4474_v29, %v4478_v12 }
 0x4ec   :  { %5206 = vmatpush1.bf16.msra.mxu1 %v8414_v34  ;;  %v8409_v34 = vcombine.high %v4474_v29, %v4478_v12 }
 0x4ed   :  { %5207 = vmatprep.subr.bf16.mxu1 %v8423_v7  ;;  %v4482_v7 = vld [vmem:[#allocation7 + $0xb90] sm:$0xff] }
 0x4ee   :  { %v8416_v48 = vcombine.low %v4482_v7, %v4486_v9 }
 0x4f0   :  { %5208 = vmatpush1.bf16.msra.mxu1 %v8422_v37  ;;  %v8417_v37 = vcombine.high %v4482_v7, %v4486_v9 }
 0x4f1   :  { %5218 = vmatprep.subr.bf16.mxu1 %v8305_v38  ;;  %v4490_v38 = vld [vmem:[#allocation7 + $0xbd0] sm:$0xff] }
 0x4f2   :  { %v8424_v44 = vcombine.low %v4490_v38, %v4494_v39 }
 0x4f3   :  { %5210 = vmatmul.mubr.bf16.vlgmr.msra.gmra.mrb[4].mxu1 %v9440_v28 }
 0x4f4   :  { %5219 = vmatpush1.bf16.msra.mxu1 %v8304_v16  ;;  %5250 = vmatprep.mubr.bf16.mxu1 %v9434_v33  ;;  %v8425_v16 = vcombine.high %v4490_v38, %v4494_v39 }
 0x4f5   :  { %5220 = vmatprep.subr.bf16.mxu1 %v8313_v41  ;;  %v4371_v41 = vld [vmem:[#allocation7 + $0x818] sm:$0xff] }
 0x4f6   :  { %v8306_v30 = vcombine.low %v4371_v41, %v4375_v43 }
 0x4f8   :  { %5221 = vmatpush1.bf16.msra.mxu1 %v8312_v45  ;;  %v8307_v45 = vcombine.high %v4371_v41, %v4375_v43  ;;  %v9452_v41 = vld [vmem:[#allocation5 + $0x6] sm:$0x3] }
 0x4f9   :  { %5222 = vmatprep.subr.bf16.mxu1 %v8321_v46  ;;  %v4379_v46 = vld [vmem:[#allocation7 + $0x858] sm:$0xff] }
 0x4fa   :  { %v8314_v50 = vcombine.low %v4379_v46, %v4383_v47 }
 0x4fc   :  { %5223 = vmatpush1.bf16.msra.mxu1 %v8320_v31  ;;  %v8315_v31 = vcombine.high %v4379_v46, %v4383_v47  ;;  %v4483_v46 = vld [vmem:[#allocation7 + $0xb98] sm:$0xff] }
 0x4fd   :  { %5224 = vmatprep.subr.bf16.mxu1 %v8329_v35  ;;  %v4387_v35 = vld [vmem:[#allocation7 + $0x898] sm:$0xff] }
 0x4fe   :  { %v8322_v57 = vcombine.low %v4387_v35, %v4391_v49  ;;  %v4487_v47 = vld [vmem:[#allocation7 + $0xbb8] sm:$0xff] }
 0x500   :  { %5225 = vmatpush1.bf16.msra.mxu1 %v8328_v55  ;;  %v8323_v55 = vcombine.high %v4387_v35, %v4391_v49  ;;  %v4491_v49 = vld [vmem:[#allocation7 + $0xbd8] sm:$0xff] }
 0x501   :  { %5226 = vmatprep.subr.bf16.mxu1 %v8337_v56  ;;  %v4395_v56 = vld [vmem:[#allocation7 + $0x8d8] sm:$0xff] }
 0x502   :  { %v8330_v61 = vcombine.low %v4395_v56, %v4399_v13 }
 0x504   :  { %5227 = vmatpush1.bf16.msra.mxu1 %v8336_v58  ;;  %v8331_v58 = vcombine.high %v4395_v56, %v4399_v13 }
 0x505   :  { %5228 = vmatprep.subr.bf16.mxu1 %v8345_v59  ;;  %v4403_v59 = vld [vmem:[#allocation7 + $0x918] sm:$0xff] }
 0x508   :  { %5229 = vmatpush1.bf16.msra.mxu1 %v8344_v17  ;;  %v8339_v17 = vcombine.high %v4403_v59, %v4407_v60 }
 0x509   :  { %5230 = vmatprep.subr.bf16.mxu1 %v8353_v15  ;;  %v4411_v15 = vld [vmem:[#allocation7 + $0x958] sm:$0xff] }
 0x50a   :  { %v8347_v18 = vcombine.high %v4411_v15, %v4415_v11  ;;  %v8346_v3 = vcombine.low %v4411_v15, %v4415_v11  ;;  %v6090_v15 = vld [vmem:[#allocation7 + $0xc60] sm:$0xff] }
 0x50c   :  { %5231 = vmatpush1.bf16.msra.mxu1 %v8352_v24  ;;  %v8338_v24 = vcombine.low %v4403_v59, %v4407_v60 }
 0x50d   :  { %5232 = vmatprep.subr.bf16.mxu1 %v8361_v63 }
 0x510   :  { %5233 = vmatpush1.bf16.msra.mxu1 %v8360_v1  ;;  %v4419_v1 = vld [vmem:[#allocation7 + $0x998] sm:$0xff] }
 0x511   :  { %5234 = vmatprep.subr.bf16.mxu1 %v8369_v2  ;;  %v4423_v2 = vld [vmem:[#allocation7 + $0x9b8] sm:$0xff] }
 0x512   :  { %v8355_v4 = vcombine.high %v4419_v1, %v4423_v2  ;;  %v8354_v10 = vcombine.low %v4419_v1, %v4423_v2  ;;  %v6102_v2 = vld [vmem:[#allocation7 + $0xcc0] sm:$0xff] }
 0x514   :  { %5235 = vmatpush1.bf16.msra.mxu1 %v8368_v5  ;;  %v4427_v5 = vld [vmem:[#allocation7 + $0x9d8] sm:$0xff] }
 0x515   :  { %5236 = vmatprep.subr.bf16.mxu1 %v8377_v6  ;;  %v4431_v6 = vld [vmem:[#allocation7 + $0x9f8] sm:$0xff] }
 0x516   :  { %v8363_v14 = vcombine.high %v4427_v5, %v4431_v6  ;;  %v8362_v22 = vcombine.low %v4427_v5, %v4431_v6  ;;  %v6110_v6 = vld [vmem:[#allocation7 + $0xd00] sm:$0xff] }
 0x518   :  { %5237 = vmatpush1.bf16.msra.mxu1 %v8376_v19  ;;  %v4435_v19 = vld [vmem:[#allocation7 + $0xa18] sm:$0xff] }
 0x519   :  { %5238 = vmatprep.subr.bf16.mxu1 %v8385_v20  ;;  %v4439_v20 = vld [vmem:[#allocation7 + $0xa38] sm:$0xff] }
 0x51a   :  { %v8371_v23 = vcombine.high %v4435_v19, %v4439_v20  ;;  %v8370_v26 = vcombine.low %v4435_v19, %v4439_v20  ;;  %v6118_v20 = vld [vmem:[#allocation7 + $0xd40] sm:$0xff] }
 0x51c   :  { %5239 = vmatpush1.bf16.msra.mxu1 %v8384_v8  ;;  %v4443_v8 = vld [vmem:[#allocation7 + $0xa58] sm:$0xff] }
 0x51d   :  { %5240 = vmatprep.subr.bf16.mxu1 %v8393_v25  ;;  %v4447_v25 = vld [vmem:[#allocation7 + $0xa78] sm:$0xff] }
 0x51e   :  { %v8379_v27 = vcombine.high %v4443_v8, %v4447_v25  ;;  %v8378_v29 = vcombine.low %v4443_v8, %v4447_v25  ;;  %v6126_v8 = vld [vmem:[#allocation7 + $0xd80] sm:$0xff] }
 0x51f   :  { %v6130_v25 = vld [vmem:[#allocation7 + $0xda0] sm:$0xff] }
 0x520   :  { %5241 = vmatpush1.bf16.msra.mxu1 %v8392_v53  ;;  %v4451_v53 = vld [vmem:[#allocation7 + $0xa98] sm:$0xff] }
 0x521   :  { %5242 = vmatprep.subr.bf16.mxu1 %v8401_v0  ;;  %v4455_v0 = vld [vmem:[#allocation7 + $0xab8] sm:$0xff] }
 0x522   :  { %v8387_v12 = vcombine.high %v4451_v53, %v4455_v0  ;;  %v8386_v7 = vcombine.low %v4451_v53, %v4455_v0  ;;  %v6134_v53 = vld [vmem:[#allocation7 + $0xdc0] sm:$0xff] }
 0x523   :  { %v6138_v0 = vld [vmem:[#allocation7 + $0xde0] sm:$0xff] }
 0x524   :  { %5243 = vmatpush1.bf16.msra.mxu1 %v8400_v32  ;;  %v4459_v32 = vld [vmem:[#allocation7 + $0xad8] sm:$0xff] }
 0x525   :  { %5244 = vmatprep.subr.bf16.mxu1 %v8409_v34  ;;  %v4463_v34 = vld [vmem:[#allocation7 + $0xaf8] sm:$0xff] }
 0x526   :  { %v8395_v9 = vcombine.high %v4459_v32, %v4463_v34  ;;  %v8394_v38 = vcombine.low %v4459_v32, %v4463_v34  ;;  %v6142_v32 = vld [vmem:[#allocation7 + $0xe00] sm:$0xff] }
 0x527   :  { %v6146_v34 = vld [vmem:[#allocation7 + $0xe20] sm:$0xff] }
 0x528   :  { %5245 = vmatpush1.bf16.msra.mxu1 %v8408_v36  ;;  %v4467_v36 = vld [vmem:[#allocation7 + $0xb18] sm:$0xff] }
 0x529   :  { %5246 = vmatprep.subr.bf16.mxu1 %v8417_v37  ;;  %v4471_v37 = vld [vmem:[#allocation7 + $0xb38] sm:$0xff] }
 0x52a   :  { %v8403_v39 = vcombine.high %v4467_v36, %v4471_v37  ;;  %v8402_v43 = vcombine.low %v4467_v36, %v4471_v37  ;;  %v6150_v36 = vld [vmem:[#allocation7 + $0xe40] sm:$0xff] }
 0x52b   :  { %v6154_v37 = vld [vmem:[#allocation7 + $0xe60] sm:$0xff] }
 0x52c   :  { %5247 = vmatpush1.bf16.msra.mxu1 %v8416_v48  ;;  %v4475_v48 = vld [vmem:[#allocation7 + $0xb58] sm:$0xff] }
 0x52d   :  { %5248 = vmatprep.subr.bf16.mxu1 %v8425_v16  ;;  %v4479_v16 = vld [vmem:[#allocation7 + $0xb78] sm:$0xff] }
 0x530   :  { %5249 = vmatpush1.bf16.msra.mxu1 %v8424_v44  ;;  %v8411_v44 = vcombine.high %v4475_v48, %v4479_v16 }
 0x531   :  { %5259 = vmatprep.subr.bf16.mxu1 %v8307_v45  ;;  %v5415_v45 = vrot.slane %v9452_v41, %v9343_v54 }
 0x533   :  { %5251 = vmatmul.mubr.bf16.vlgmr.msra.gmra.mrb[8].mxu1 %v9440_v28 }
 0x534   :  { %5260 = vmatpush1.bf16.msra.mxu1 %v8306_v30  ;;  %5291 = vmatprep.mubr.bf16.mxu1 %v9434_v33  ;;  %v8410_v30 = vcombine.low %v4475_v48, %v4479_v16  ;;  %v6158_v48 = vld [vmem:[#allocation7 + $0xe80] sm:$0xff] }
 0x535   :  { %5261 = vmatprep.subr.bf16.mxu1 %v8315_v31  ;;  %v8419_v31 = vcombine.high %v4483_v46, %v4487_v47  ;;  %v6162_v16 = vld [vmem:[#allocation7 + $0xea0] sm:$0xff] }
 0x538   :  { %5262 = vmatpush1.bf16.msra.mxu1 %v8314_v50  ;;  %v4495_v50 = vld [vmem:[#allocation7 + $0xbf8] sm:$0xff] }
 0x539   :  { %5263 = vmatprep.subr.bf16.mxu1 %v8323_v55  ;;  %v8418_v55 = vcombine.low %v4483_v46, %v4487_v47  ;;  %v8427_v56 = vcombine.high %v4491_v49, %v4495_v50  ;;  %v8426_v59 = vcombine.low %v4491_v49, %v4495_v50  ;;  %v6170_v46 = vld [vmem:[#allocation7 + $0xee0] sm:$0xff]  ;;  %v8607_v47 = vcombine.low %v6158_v48, %v6162_v16 }
 0x53c   :  { %5264 = vmatpush1.bf16.msra.mxu1 %v8322_v57  ;;  %v6078_v57 = vld [vmem:[#allocation7 + $0xc00] sm:$0xff] }
 0x53d   :  { %5265 = vmatprep.subr.bf16.mxu1 %v8331_v58  ;;  %v6082_v58 = vld [vmem:[#allocation7 + $0xc20] sm:$0xff] }
 0x53e   :  { %v8528_v60 = vcombine.high %v6078_v57, %v6082_v58  ;;  %v8527_v11 = vcombine.low %v6078_v57, %v6082_v58  ;;  %v5411_v57 = vrot.slane %v9452_v41, %v9340_v52 }
 0x53f   :  { %v9448_v62 = vpop.f32.mrb[16].mxu0 }
 0x540   :  { %v9450_v33 = vpop.f32.mrb[17].mxu0  ;;  %5266 = vmatpush1.bf16.msra.mxu1 %v8330_v61 }
 0x541   :  { %v6069_v63 = vpop.f32.mrb[18].mxu0  ;;  %5267 = vmatprep.subr.bf16.mxu1 %v8339_v17  ;;  %v8829_v35 = vadd.f32 %v9450_v33, %v5415_v45  ;;  %v6086_v17 = vld [vmem:[#allocation7 + $0xc40] sm:$0xff] }
 0x542   :  { %v6070_v21 = vpop.f32.mrb[19].mxu0  ;;  %v8536_v33 = vcombine.high %v6086_v17, %v6090_v15  ;;  %v6094_v63 = vld [vmem:[#allocation7 + $0xc80] sm:$0xff] }
 0x543   :  { %v6073_v13 = vmul.f32 0.01, %v8829_v35  ;;  %v8535_v21 = vcombine.low %v6086_v17, %v6090_v15  ;;  %v6166_v45 = vld [vmem:[#allocation7 + $0xec0] sm:$0xff]  ;;  %v8828_v17 = vadd.f32 %v9448_v62, %v5411_v57  ;;  %v6167_v57 = vld [vmem:[#allocation7 + $0xec8] sm:$0xff] }
 0x544   :  { %5268 = vmatpush1.bf16.msra.mxu1 %v8338_v24  ;;  %v8615_v49 = vcombine.low %v6166_v45, %v6170_v46 }
 0x545   :  { %5269 = vmatprep.subr.bf16.mxu1 %v8347_v18  ;;  %v6075_v61 = vmax.f32 %v8829_v35, %v6073_v13  ;;  %v6098_v18 = vld [vmem:[#allocation7 + $0xca0] sm:$0xff] }
 0x546   :  { %v8544_v1 = vcombine.high %v6094_v63, %v6098_v18  ;;  %v6178_v35 = vld [vmem:[#allocation7 + $0xf20] sm:$0xff] }
 0x547   :  { %v9457_v24 = vpack.c.bf16 %v6075_v61, %v6075_v61 }
 0x548   :  { %5270 = vmatpush1.bf16.msra.mxu1 %v8346_v3  ;;  %v6106_v3 = vld [vmem:[#allocation7 + $0xce0] sm:$0xff] }
 0x549   :  { %5271 = vmatprep.subr.bf16.mxu1 %v8355_v4  ;;  %v8543_v4 = vcombine.low %v6094_v63, %v6098_v18  ;;  %v8552_v5 = vcombine.high %v6102_v2, %v6106_v3  ;;  %v6072_v18 = vmul.f32 0.01, %v8828_v17 }
 0x54c   :  { %5272 = vmatpush1.bf16.msra.mxu1 %v8354_v10  ;;  %v6114_v10 = vld [vmem:[#allocation7 + $0xd20] sm:$0xff] }
 0x54d   :  { %5273 = vmatprep.subr.bf16.mxu1 %v8363_v14  ;;  %v8551_v14 = vcombine.low %v6102_v2, %v6106_v3  ;;  %v8560_v19 = vcombine.high %v6110_v6, %v6114_v10  ;;  %v6083_v2 = vld [vmem:[#allocation7 + $0xc28] sm:$0xff]  ;;  %v6074_v3 = vmax.f32 %v8828_v17, %v6072_v18 }
 0x54e   :  { %v6179_v17 = vld [vmem:[#allocation7 + $0xf28] sm:$0xff] }
 0x550   :  { %5274 = vmatpush1.bf16.msra.mxu1 %v8362_v22  ;;  %v8559_v22 = vcombine.low %v6110_v6, %v6114_v10  ;;  %v6091_v6 = vld [vmem:[#allocation7 + $0xc68] sm:$0xff]  ;;  %v9464_v10 = vpack.c.bf16 %v6074_v3, %v6074_v3 }
 0x551   :  { %5275 = vmatprep.subr.bf16.mxu1 %v8371_v23 }
 0x554   :  { %5276 = vmatpush1.bf16.msra.mxu1 %v8370_v26 }
 0x555   :  { %5277 = vmatprep.subr.bf16.mxu1 %v8379_v27  ;;  %v8576_v27 = vcombine.high %v6126_v8, %v6130_v25 }
 0x558   :  { %5278 = vmatpush1.bf16.msra.mxu1 %v8378_v29  ;;  %v8575_v29 = vcombine.low %v6126_v8, %v6130_v25  ;;  %v6107_v8 = vld [vmem:[#allocation7 + $0xce8] sm:$0xff] }
 0x559   :  { %5279 = vmatprep.subr.bf16.mxu1 %v8387_v12  ;;  %v8584_v12 = vcombine.high %v6134_v53, %v6138_v0 }
 0x55c   :  { %5280 = vmatpush1.bf16.msra.mxu1 %v8386_v7  ;;  %v8583_v7 = vcombine.low %v6134_v53, %v6138_v0  ;;  %v6115_v53 = vld [vmem:[#allocation7 + $0xd28] sm:$0xff] }
 0x55d   :  { %5281 = vmatprep.subr.bf16.mxu1 %v8395_v9  ;;  %v8592_v9 = vcombine.high %v6142_v32, %v6146_v34 }
 0x560   :  { %5282 = vmatpush1.bf16.msra.mxu1 %v8394_v38  ;;  %v8591_v38 = vcombine.low %v6142_v32, %v6146_v34  ;;  %v6123_v32 = vld [vmem:[#allocation7 + $0xd68] sm:$0xff] }
 0x561   :  { %5283 = vmatprep.subr.bf16.mxu1 %v8403_v39  ;;  %v8600_v39 = vcombine.high %v6150_v36, %v6154_v37 }
 0x564   :  { %5284 = vmatpush1.bf16.msra.mxu1 %v8402_v43  ;;  %v8599_v43 = vcombine.low %v6150_v36, %v6154_v37  ;;  %v6131_v36 = vld [vmem:[#allocation7 + $0xda8] sm:$0xff] }
 0x565   :  { %5285 = vmatprep.subr.bf16.mxu1 %v8411_v44  ;;  %v8608_v44 = vcombine.high %v6158_v48, %v6162_v16  ;;  %v6139_v48 = vld [vmem:[#allocation7 + $0xde8] sm:$0xff] }
 0x568   :  { %5286 = vmatpush1.bf16.msra.mxu1 %v8410_v30  ;;  %v8616_v30 = vcombine.high %v6166_v45, %v6170_v46  ;;  %v6147_v45 = vld [vmem:[#allocation7 + $0xe28] sm:$0xff] }
 0x569   :  { %5287 = vmatprep.subr.bf16.mxu1 %v8419_v31  ;;  %v6174_v31 = vld [vmem:[#allocation7 + $0xf00] sm:$0xff] }
 0x56a   :  { %v8624_v50 = vcombine.high %v6174_v31, %v6178_v35  ;;  %v8623_v13 = vcombine.low %v6174_v31, %v6178_v35  ;;  %v6155_v31 = vld [vmem:[#allocation7 + $0xe68] sm:$0xff] }
 0x56c   :  { %5288 = vmatpush1.bf16.msra.mxu1 %v8418_v55  ;;  %v6182_v55 = vld [vmem:[#allocation7 + $0xf40] sm:$0xff] }
 0x56d   :  { %5289 = vmatprep.subr.bf16.mxu1 %v8427_v56  ;;  %v6186_v56 = vld [vmem:[#allocation7 + $0xf60] sm:$0xff] }
 0x56e   :  { %v8632_v58 = vcombine.high %v6182_v55, %v6186_v56  ;;  %v8631_v61 = vcombine.low %v6182_v55, %v6186_v56  ;;  %v6163_v55 = vld [vmem:[#allocation7 + $0xea8] sm:$0xff] }
 0x570   :  { %5290 = vmatpush1.bf16.msra.mxu1 %v8426_v59  ;;  %v6190_v59 = vld [vmem:[#allocation7 + $0xf80] sm:$0xff] }
 0x571   :  { %6846 = vmatprep.subr.bf16.mxu1 %v8528_v60  ;;  %v6194_v60 = vld [vmem:[#allocation7 + $0xfa0] sm:$0xff] }
 0x572   :  { %v8640_v15 = vcombine.high %v6190_v59, %v6194_v60  ;;  %v8639_v63 = vcombine.low %v6190_v59, %v6194_v60 }
 0x573   :  { %5292 = vmatmul.mubr.bf16.vlgmr.msra.gmra.mrb[12].mxu1 %v9440_v28  ;;  %v6122_v28 = vld [vmem:[#allocation7 + $0xd60] sm:$0xff] }
 0x574   :  { %6847 = vmatpush1.bf16.msra.mxu1 %v8527_v11  ;;  %6878 = vmatprep.mubr.bf16.mxu1 %v9457_v24  ;;  %v8568_v23 = vcombine.high %v6118_v20, %v6122_v28  ;;  %v8567_v26 = vcombine.low %v6118_v20, %v6122_v28  ;;  %v6198_v11 = vld [vmem:[#allocation7 + $0xfc0] sm:$0xff]  ;;  %v6099_v20 = vld [vmem:[#allocation7 + $0xca8] sm:$0xff] }
 0x575   :  { %6848 = vmatprep.subr.bf16.mxu1 %v8536_v33  ;;  %v6202_v33 = vld [vmem:[#allocation7 + $0xfe0] sm:$0xff] }
 0x576   :  { %v8647_v41 = vcombine.low %v6198_v11, %v6202_v33 }
 0x578   :  { %6849 = vmatpush1.bf16.msra.mxu1 %v8535_v21  ;;  %v8648_v21 = vcombine.high %v6198_v11, %v6202_v33  ;;  %v6183_v33 = vld [vmem:[#allocation7 + $0xf48] sm:$0xff] }
 0x579   :  { %6850 = vmatprep.subr.bf16.mxu1 %v8544_v1  ;;  %v6079_v1 = vld [vmem:[#allocation7 + $0xc08] sm:$0xff] }
 0x57a   :  { %v8529_v62 = vcombine.low %v6079_v1, %v6083_v2 }
 0x57c   :  { %6851 = vmatpush1.bf16.msra.mxu1 %v8543_v4  ;;  %v8530_v4 = vcombine.high %v6079_v1, %v6083_v2  ;;  %v6191_v1 = vld [vmem:[#allocation7 + $0xf88] sm:$0xff] }
 0x57d   :  { %6852 = vmatprep.subr.bf16.mxu1 %v8552_v5  ;;  %v6087_v5 = vld [vmem:[#allocation7 + $0xc48] sm:$0xff] }
 0x57e   :  { %v8537_v28 = vcombine.low %v6087_v5, %v6091_v6  ;;  %v6195_v2 = vld [vmem:[#allocation7 + $0xfa8] sm:$0xff] }
 0x57f   :  { %v8642_v3 = vcombine.high %v6191_v1, %v6195_v2 }
 0x580   :  { %6853 = vmatpush1.bf16.msra.mxu1 %v8551_v14  ;;  %v8538_v14 = vcombine.high %v6087_v5, %v6091_v6  ;;  %v6203_v5 = vld [vmem:[#allocation7 + $0xfe8] sm:$0xff]  ;;  %v8641_v6 = vcombine.low %v6191_v1, %v6195_v2  ;;  %v8947_v1 = vld [vmem:[#allocation10 + $0x78] sm:$0xff]  }
 0x581   :  { %6854 = vmatprep.subr.bf16.mxu1 %v8560_v19  ;;  %v6095_v19 = vld [vmem:[#allocation7 + $0xc88] sm:$0xff] }
 0x582   :  { %v8545_v25 = vcombine.low %v6095_v19, %v6099_v20 }
 0x584   :  { %6855 = vmatpush1.bf16.msra.mxu1 %v8559_v22  ;;  %v8546_v22 = vcombine.high %v6095_v19, %v6099_v20  ;;  %v6084_v19 = vld [vmem:[#allocation7 + $0xc30] sm:$0xff] }
 0x585   :  { %6856 = vmatprep.subr.bf16.mxu1 %v8568_v23  ;;  %v6103_v23 = vld [vmem:[#allocation7 + $0xcc8] sm:$0xff] }
 0x586   :  { %v8553_v0 = vcombine.low %v6103_v23, %v6107_v8 }
 0x588   :  { %6857 = vmatpush1.bf16.msra.mxu1 %v8567_v26  ;;  %v8554_v26 = vcombine.high %v6103_v23, %v6107_v8  ;;  %v6092_v23 = vld [vmem:[#allocation7 + $0xc70] sm:$0xff] }
 0x589   :  { %6858 = vmatprep.subr.bf16.mxu1 %v8576_v27  ;;  %v6111_v27 = vld [vmem:[#allocation7 + $0xd08] sm:$0xff] }
 0x58a   :  { %v8561_v34 = vcombine.low %v6111_v27, %v6115_v53 }
 0x58c   :  { %6859 = vmatpush1.bf16.msra.mxu1 %v8575_v29  ;;  %v8562_v29 = vcombine.high %v6111_v27, %v6115_v53  ;;  %v6096_v53 = vld [vmem:[#allocation7 + $0xc90] sm:$0xff] }
 0x58d   :  { %6860 = vmatprep.subr.bf16.mxu1 %v8584_v12  ;;  %v6119_v12 = vld [vmem:[#allocation7 + $0xd48] sm:$0xff] }
 0x58e   :  { %v8569_v37 = vcombine.low %v6119_v12, %v6123_v32 }
 0x590   :  { %6861 = vmatpush1.bf16.msra.mxu1 %v8583_v7  ;;  %v8570_v7 = vcombine.high %v6119_v12, %v6123_v32  ;;  %v8936_v12 = vld [vmem:[#allocation10 + $0x8] sm:$0xff]  }
 0x591   :  { %6862 = vmatprep.subr.bf16.mxu1 %v8592_v9  ;;  %v6127_v9 = vld [vmem:[#allocation7 + $0xd88] sm:$0xff] }
 0x592   :  { %v8577_v16 = vcombine.low %v6127_v9, %v6131_v36 }
 0x594   :  { %6863 = vmatpush1.bf16.msra.mxu1 %v8591_v38  ;;  %v8578_v38 = vcombine.high %v6127_v9, %v6131_v36  ;;  %v6104_v9 = vld [vmem:[#allocation7 + $0xcd0] sm:$0xff] }
 0x595   :  { %6864 = vmatprep.subr.bf16.mxu1 %v8600_v39  ;;  %v6135_v39 = vld [vmem:[#allocation7 + $0xdc8] sm:$0xff]  ;;  %v6108_v36 = vld [vmem:[#allocation7 + $0xcf0] sm:$0xff] }
 0x596   :  { %v8585_v46 = vcombine.low %v6135_v39, %v6139_v48 }
 0x598   :  { %6865 = vmatpush1.bf16.msra.mxu1 %v8599_v43  ;;  %v8586_v43 = vcombine.high %v6135_v39, %v6139_v48  ;;  %v8939_v39 = vld [vmem:[#allocation10 + $0x58] sm:$0xff]   ;;  %v8556_v48 = vcombine.high %v6104_v9, %v6108_v36 }
 0x599   :  { %6866 = vmatprep.subr.bf16.mxu1 %v8608_v44  ;;  %v6143_v44 = vld [vmem:[#allocation7 + $0xe08] sm:$0xff] }
 0x59a   :  { %v8593_v35 = vcombine.low %v6143_v44, %v6147_v45 }
 0x59c   :  { %6867 = vmatpush1.bf16.msra.mxu1 %v8607_v47  ;;  %v8594_v47 = vcombine.high %v6143_v44, %v6147_v45  ;;  %v8940_v44 = vld [vmem:[#allocation10 + $0x18] sm:$0xff]   ;;  %v8555_v45 = vcombine.low %v6104_v9, %v6108_v36  ;;  %v6196_v9 = vld [vmem:[#allocation7 + $0xfb0] sm:$0xff] }
 0x59d   :  { %6868 = vmatprep.subr.bf16.mxu1 %v8616_v30  ;;  %v6151_v30 = vld [vmem:[#allocation7 + $0xe48] sm:$0xff] }
 0x59e   :  { %v8601_v56 = vcombine.low %v6151_v30, %v6155_v31 }
 0x5a0   :  { %6869 = vmatpush1.bf16.msra.mxu1 %v8615_v49  ;;  %v8602_v49 = vcombine.high %v6151_v30, %v6155_v31  ;;  %v6120_v30 = vld [vmem:[#allocation7 + $0xd50] sm:$0xff] }
 0x5a1   :  { %6870 = vmatprep.subr.bf16.mxu1 %v8624_v50  ;;  %v6159_v50 = vld [vmem:[#allocation7 + $0xe88] sm:$0xff]  ;;  %v6124_v31 = vld [vmem:[#allocation7 + $0xd70] sm:$0xff] }
 0x5a2   :  { %v8609_v59 = vcombine.low %v6159_v50, %v6163_v55 }
 0x5a4   :  { %6871 = vmatpush1.bf16.msra.mxu1 %v8623_v13  ;;  %v8610_v13 = vcombine.high %v6159_v50, %v6163_v55  ;;  %v8943_v50 = vld [vmem:[#allocation10 + $0x68] sm:$0xff]   ;;  %v8572_v55 = vcombine.high %v6120_v30, %v6124_v31 }
 0x5a5   :  { %6872 = vmatprep.subr.bf16.mxu1 %v8632_v58  ;;  %v6171_v58 = vld [vmem:[#allocation7 + $0xee8] sm:$0xff] }
 0x5a6   :  { %v8618_v60 = vcombine.high %v6167_v57, %v6171_v58 }
 0x5a8   :  { %6873 = vmatpush1.bf16.msra.mxu1 %v8631_v61  ;;  %v6175_v61 = vld [vmem:[#allocation7 + $0xf08] sm:$0xff] }
 0x5a9   :  { %6874 = vmatprep.subr.bf16.mxu1 %v8640_v15  ;;  %v8617_v15 = vcombine.low %v6167_v57, %v6171_v58  ;;  %v8626_v11 = vcombine.high %v6175_v61, %v6179_v17  ;;  %v8625_v18 = vcombine.low %v6175_v61, %v6179_v17  ;;  %v8571_v57 = vcombine.low %v6120_v30, %v6124_v31  ;;  %v6140_v61 = vld [vmem:[#allocation7 + $0xdf0] sm:$0xff]  ;;  %v6093_v30 = vld [vmem:[#allocation7 + $0xc78] sm:$0xff] }
 0x5ac   :  { %6875 = vmatpush1.bf16.msra.mxu1 %v8639_v63  ;;  %v6187_v63 = vld [vmem:[#allocation7 + $0xf68] sm:$0xff] }
 0x5ad   :  { %6876 = vmatprep.subr.bf16.mxu1 %v8648_v21  ;;  %v8634_v21 = vcombine.high %v6183_v33, %v6187_v63 }
 0x5b0   :  { %6877 = vmatpush1.bf16.msra.mxu1 %v8647_v41  ;;  %v8633_v41 = vcombine.low %v6183_v33, %v6187_v63  ;;  %v8946_v33 = vld [vmem:[#allocation10 + $0x30] sm:$0xff]   ;;  %v6144_v63 = vld [vmem:[#allocation7 + $0xe10] sm:$0xff] }
 0x5b1   :  { %6887 = vmatprep.subr.bf16.mxu1 %v8530_v4  ;;  %v6199_v4 = vld [vmem:[#allocation7 + $0xfc8] sm:$0xff] }
 0x5b2   :  { %v8649_v20 = vcombine.low %v6199_v4, %v6203_v5 }
 0x5b3   :  { %6879 = vmatmul.mubr.bf16.vlgmr.msra.gmra.mrb[20].mxu1 %v9464_v10 }
 0x5b4   :  { %6888 = vmatpush1.bf16.msra.mxu1 %v8529_v62  ;;  %6919 = vmatprep.mubr.bf16.mxu1 %v9457_v24  ;;  %v8650_v62 = vcombine.high %v6199_v4, %v6203_v5  ;;  %v6156_v4 = vld [vmem:[#allocation7 + $0xe70] sm:$0xff] }
 0x5b5   :  { %6889 = vmatprep.subr.bf16.mxu1 %v8538_v14  ;;  %v6080_v14 = vld [vmem:[#allocation7 + $0xc10] sm:$0xff] }
 0x5b6   :  { %v8531_v8 = vcombine.low %v6080_v14, %v6084_v19 }
 0x5b8   :  { %6890 = vmatpush1.bf16.msra.mxu1 %v8537_v28  ;;  %v8532_v28 = vcombine.high %v6080_v14, %v6084_v19  ;;  %v6160_v14 = vld [vmem:[#allocation7 + $0xe90] sm:$0xff] }
 0x5b9   :  { %6891 = vmatprep.subr.bf16.mxu1 %v8546_v22  ;;  %v6088_v22 = vld [vmem:[#allocation7 + $0xc50] sm:$0xff] }
 0x5ba   :  { %v8540_v27 = vcombine.high %v6088_v22, %v6092_v23  ;;  %v8539_v32 = vcombine.low %v6088_v22, %v6092_v23  ;;  %v6164_v19 = vld [vmem:[#allocation7 + $0xeb0] sm:$0xff] }
 0x5bb   :  { %v6168_v22 = vld [vmem:[#allocation7 + $0xed0] sm:$0xff] }
 0x5bc   :  { %6892 = vmatpush1.bf16.msra.mxu1 %v8545_v25  ;;  %v8933_v25 = vld [vmem:[#allocation10 + $0x40] sm:$0xff]   ;;  %v6172_v23 = vld [vmem:[#allocation7 + $0xef0] sm:$0xff] }
 0x5bd   :  { %6893 = vmatprep.subr.bf16.mxu1 %v8554_v26  ;;  %v8934_v26 = vld [vmem:[#allocation10] sm:$0xff]   ;;  %8720 = vmatprep.subr.bf16.mxu0 %v8933_v25  ;;  %v8620_v25 = vcombine.high %v6168_v22, %v6172_v23 }
 0x5be   :  { %8721 = vmatpush3.bf16.msra.mxu0 %v8934_v26  ;;  %v6176_v26 = vld [vmem:[#allocation7 + $0xf10] sm:$0xff] }
 0x5c0   :  { %6894 = vmatpush1.bf16.msra.mxu1 %v8553_v0  ;;  %v6100_v0 = vld [vmem:[#allocation7 + $0xcb0] sm:$0xff] }
 0x5c1   :  { %6895 = vmatprep.subr.bf16.mxu1 %v8562_v29  ;;  %v8935_v29 = vld [vmem:[#allocation10 + $0x48] sm:$0xff]  }
 0x5c2   :  { %8722 = vmatprep.subr.bf16.mxu0 %v8935_v29  ;;  %v6184_v29 = vld [vmem:[#allocation7 + $0xf50] sm:$0xff] }
 0x5c3   :  { %8723 = vmatpush3.bf16.msra.mxu0 %v8936_v12  ;;  %v6188_v12 = vld [vmem:[#allocation7 + $0xf70] sm:$0xff] }
 0x5c4   :  { %6896 = vmatpush1.bf16.msra.mxu1 %v8561_v34  ;;  %v8937_v34 = vld [vmem:[#allocation10 + $0x50] sm:$0xff]   ;;  %v8635_v36 = vcombine.low %v6184_v29, %v6188_v12 }
 0x5c5   :  { %6897 = vmatprep.subr.bf16.mxu1 %v8570_v7  ;;  %v8548_v7 = vcombine.high %v6096_v53, %v6100_v0  ;;  %8724 = vmatprep.subr.bf16.mxu0 %v8937_v34  ;;  %v8636_v34 = vcombine.high %v6184_v29, %v6188_v12 }
 0x5c8   :  { %6898 = vmatpush1.bf16.msra.mxu1 %v8569_v37  ;;  %v8938_v37 = vld [vmem:[#allocation10 + $0x10] sm:$0xff]  }
 0x5c9   :  { %6899 = vmatprep.subr.bf16.mxu1 %v8578_v38  ;;  %v8547_v38 = vcombine.low %v6096_v53, %v6100_v0  ;;  %8725 = vmatpush3.bf16.msra.mxu0 %v8938_v37  ;;  %v8619_v53 = vcombine.low %v6168_v22, %v6172_v23 }
 0x5ca   :  { %8726 = vmatprep.subr.bf16.mxu0 %v8939_v39  ;;  %v6204_v39 = vld [vmem:[#allocation7 + $0xff0] sm:$0xff] }
 0x5cc   :  { %6900 = vmatpush1.bf16.msra.mxu1 %v8577_v16  ;;  %v6112_v16 = vld [vmem:[#allocation7 + $0xd10] sm:$0xff] }
 0x5cd   :  { %6901 = vmatprep.subr.bf16.mxu1 %v8586_v43  ;;  %v6116_v43 = vld [vmem:[#allocation7 + $0xd30] sm:$0xff]  ;;  %8727 = vmatpush3.bf16.msra.mxu0 %v8940_v44  ;;  %v6085_v44 = vld [vmem:[#allocation7 + $0xc38] sm:$0xff] }
 0x5d0   :  { %6902 = vmatpush1.bf16.msra.mxu1 %v8585_v46  ;;  %v8941_v46 = vld [vmem:[#allocation10 + $0x60] sm:$0xff]  }
 0x5d1   :  { %6903 = vmatprep.subr.bf16.mxu1 %v8594_v47  ;;  %v8564_v47 = vcombine.high %v6112_v16, %v6116_v43  ;;  %8728 = vmatprep.subr.bf16.mxu0 %v8941_v46 }
 0x5d4   :  { %6904 = vmatpush1.bf16.msra.mxu1 %v8593_v35  ;;  %v8942_v35 = vld [vmem:[#allocation10 + $0x20] sm:$0xff]  }
 0x5d5   :  { %6905 = vmatprep.subr.bf16.mxu1 %v8602_v49  ;;  %v8563_v49 = vcombine.low %v6112_v16, %v6116_v43  ;;  %8729 = vmatpush3.bf16.msra.mxu0 %v8942_v35  ;;  %v6081_v43 = vld [vmem:[#allocation7 + $0xc18] sm:$0xff] }
 0x5d6   :  { %8730 = vmatprep.subr.bf16.mxu0 %v8943_v50  ;;  %v8534_v46 = vcombine.high %v6081_v43, %v6085_v44  ;;  %v8533_v31 = vcombine.low %v6081_v43, %v6085_v44  ;;  %v6101_v50 = vld [vmem:[#allocation7 + $0xcb8] sm:$0xff] }
 0x5d8   :  { %6906 = vmatpush1.bf16.msra.mxu1 %v8601_v56  ;;  %v6128_v56 = vld [vmem:[#allocation7 + $0xd90] sm:$0xff] }
 0x5d9   :  { %6907 = vmatprep.subr.bf16.mxu1 %v8610_v13  ;;  %v6132_v13 = vld [vmem:[#allocation7 + $0xdb0] sm:$0xff] }
 0x5da   :  { %v8580_v58 = vcombine.high %v6128_v56, %v6132_v13  ;;  %v8579_v17 = vcombine.low %v6128_v56, %v6132_v13  ;;  %v6105_v13 = vld [vmem:[#allocation7 + $0xcd8] sm:$0xff] }
 0x5dc   :  { %6908 = vmatpush1.bf16.msra.mxu1 %v8609_v59  ;;  %v8944_v59 = vld [vmem:[#allocation10 + $0x28] sm:$0xff]  }
 0x5dd   :  { %6909 = vmatprep.subr.bf16.mxu1 %v8618_v60  ;;  %v6136_v60 = vld [vmem:[#allocation7 + $0xdd0] sm:$0xff]  ;;  %8731 = vmatpush3.bf16.msra.mxu0 %v8944_v59 }
 0x5e0   :  { %6910 = vmatpush1.bf16.msra.mxu1 %v8617_v15  ;;  %v8945_v15 = vld [vmem:[#allocation10 + $0x70] sm:$0xff]  }
 0x5e1   :  { %6911 = vmatprep.subr.bf16.mxu1 %v8626_v11  ;;  %v8588_v11 = vcombine.high %v6136_v60, %v6140_v61  ;;  %8732 = vmatprep.subr.bf16.mxu0 %v8945_v15 }
 0x5e2   :  { %8733 = vmatpush3.bf16.msra.mxu0 %v8946_v33  ;;  %v6125_v33 = vld [vmem:[#allocation7 + $0xd78] sm:$0xff] }
 0x5e3   :  { %8734 = vmatprep.subr.bf16.mxu0 %v8947_v1 }
 0x5e4   :  { %6912 = vmatpush1.bf16.msra.mxu1 %v8625_v18  ;;  %v6148_v18 = vld [vmem:[#allocation7 + $0xe30] sm:$0xff] }
 0x5e5   :  { %6913 = vmatprep.subr.bf16.mxu1 %v8634_v21  ;;  %v8587_v21 = vcombine.low %v6136_v60, %v6140_v61  ;;  %v8596_v2 = vcombine.high %v6144_v63, %v6148_v18  ;;  %v8595_v5 = vcombine.low %v6144_v63, %v6148_v18  ;;  %v6113_v60 = vld [vmem:[#allocation7 + $0xd18] sm:$0xff] }
 0x5e6   :  { %v6117_v61 = vld [vmem:[#allocation7 + $0xd38] sm:$0xff] }
 0x5e7   :  { %v8566_v15 = vcombine.high %v6113_v60, %v6117_v61  ;;  %v8565_v63 = vcombine.low %v6113_v60, %v6117_v61  ;;  %v6129_v18 = vld [vmem:[#allocation7 + $0xd98] sm:$0xff] }
 0x5e8   :  { %6914 = vmatpush1.bf16.msra.mxu1 %v8633_v41  ;;  %v8948_v41 = vld [vmem:[#allocation10 + $0x38] sm:$0xff]  }
 0x5e9   :  { %6915 = vmatprep.subr.bf16.mxu1 %v8642_v3  ;;  %v6152_v3 = vld [vmem:[#allocation7 + $0xe50] sm:$0xff]  ;;  %8735 = vmatpush3.bf16.msra.mxu0 %v8948_v41  ;;  %v6137_v41 = vld [vmem:[#allocation7 + $0xdd8] sm:$0xff] }
 0x5ec   :  { %6916 = vmatpush1.bf16.msra.mxu1 %v8641_v6  ;;  %v8604_v6 = vcombine.high %v6152_v3, %v6156_v4 }
 0x5ed   :  { %6917 = vmatprep.subr.bf16.mxu1 %v8650_v62  ;;  %v8949_v62 = vld [vmem:[#allocation10 + $0xc0] sm:$0xff]  }
 0x5ee   :  { %8742 = vmatprep.subr.bf16.mxu0 %v8949_v62  ;;  %v6149_v62 = vld [vmem:[#allocation7 + $0xe38] sm:$0xff] }
 0x5f0   :  { %6918 = vmatpush1.bf16.msra.mxu1 %v8649_v20  ;;  %v8603_v20 = vcombine.low %v6152_v3, %v6156_v4  ;;  %v6141_v3 = vld [vmem:[#allocation7 + $0xdf8] sm:$0xff] }
 0x5f1   :  { %6928 = vmatprep.subr.bf16.mxu1 %v8532_v28  ;;  %v8612_v28 = vcombine.high %v6160_v14, %v6164_v19 }
 0x5f3   :  { %6920 = vmatmul.mubr.bf16.vlgmr.msra.gmra.mrb[4].mxu1 %v9464_v10 }
 0x5f4   :  { %6929 = vmatpush1.bf16.msra.mxu1 %v8531_v8  ;;  %6960 = vmatprep.mubr.bf16.mxu1 %v9457_v24  ;;  %v8611_v8 = vcombine.low %v6160_v14, %v6164_v19  ;;  %v8589_v14 = vcombine.low %v6137_v41, %v6141_v3 }
 0x5f5   :  { %6930 = vmatprep.subr.bf16.mxu1 %v8540_v27  ;;  %v6180_v27 = vld [vmem:[#allocation7 + $0xf30] sm:$0xff] }
 0x5f6   :  { %v8628_v0 = vcombine.high %v6176_v26, %v6180_v27 }
 0x5f8   :  { %6931 = vmatpush1.bf16.msra.mxu1 %v8539_v32  ;;  %v8627_v32 = vcombine.low %v6176_v26, %v6180_v27 }
 0x5f9   :  { %6932 = vmatprep.subr.bf16.mxu1 %v8548_v7  ;;  %v6192_v7 = vld [vmem:[#allocation7 + $0xf90] sm:$0xff] }
 0x5fa   :  { %v8644_v37 = vcombine.high %v6192_v7, %v6196_v9 }
 0x5fc   :  { %6933 = vmatpush1.bf16.msra.mxu1 %v8547_v38  ;;  %v6200_v38 = vld [vmem:[#allocation7 + $0xfd0] sm:$0xff] }
 0x5fd   :  { %6934 = vmatprep.subr.bf16.mxu1 %v8556_v48  ;;  %v8643_v48 = vcombine.low %v6192_v7, %v6196_v9  ;;  %v8652_v16 = vcombine.high %v6200_v38, %v6204_v39 }
 0x600   :  { %6935 = vmatpush1.bf16.msra.mxu1 %v8555_v45  ;;  %v8651_v45 = vcombine.low %v6200_v38, %v6204_v39 }
 0x601   :  { %6936 = vmatprep.subr.bf16.mxu1 %v8564_v47  ;;  %v6089_v47 = vld [vmem:[#allocation7 + $0xc58] sm:$0xff] }
 0x602   :  { %v8542_v35 = vcombine.high %v6089_v47, %v6093_v30 }
 0x604   :  { %6937 = vmatpush1.bf16.msra.mxu1 %v8563_v49  ;;  %v6097_v49 = vld [vmem:[#allocation7 + $0xc98] sm:$0xff] }
 0x605   :  { %6938 = vmatprep.subr.bf16.mxu1 %v8572_v55  ;;  %v8541_v55 = vcombine.low %v6089_v47, %v6093_v30  ;;  %v8550_v56 = vcombine.high %v6097_v49, %v6101_v50 }
 0x608   :  { %6939 = vmatpush1.bf16.msra.mxu1 %v8571_v57  ;;  %v6109_v57 = vld [vmem:[#allocation7 + $0xcf8] sm:$0xff] }
 0x609   :  { %6940 = vmatprep.subr.bf16.mxu1 %v8580_v58  ;;  %v8549_v58 = vcombine.low %v6097_v49, %v6101_v50  ;;  %v8558_v59 = vcombine.high %v6105_v13, %v6109_v57 }
 0x60c   :  { %6941 = vmatpush1.bf16.msra.mxu1 %v8579_v17  ;;  %v8557_v17 = vcombine.low %v6105_v13, %v6109_v57 }
 0x60d   :  { %6942 = vmatprep.subr.bf16.mxu1 %v8588_v11  ;;  %v6121_v11 = vld [vmem:[#allocation7 + $0xd58] sm:$0xff] }
 0x60e   :  { %v8573_v1 = vcombine.low %v6121_v11, %v6125_v33 }
 0x610   :  { %6943 = vmatpush1.bf16.msra.mxu1 %v8587_v21  ;;  %v6133_v21 = vld [vmem:[#allocation7 + $0xdb8] sm:$0xff] }
 0x611   :  { %6944 = vmatprep.subr.bf16.mxu1 %v8596_v2  ;;  %v8582_v2 = vcombine.high %v6129_v18, %v6133_v21  ;;  %v8581_v4 = vcombine.low %v6129_v18, %v6133_v21  ;;  %v8955_v18 = vld [vmem:[#allocation10 + $0xd8] sm:$0xff]  }
 0x612   :  { %v8956_v21 = vld [vmem:[#allocation10 + $0x98] sm:$0xff]  }
 0x614   :  { %6945 = vmatpush1.bf16.msra.mxu1 %v8595_v5  ;;  %v8590_v5 = vcombine.high %v6137_v41, %v6141_v3  ;;  %v8959_v41 = vld [vmem:[#allocation10 + $0xe8] sm:$0xff]  }
 0x615   :  { %6946 = vmatprep.subr.bf16.mxu1 %v8604_v6  ;;  %v6145_v6 = vld [vmem:[#allocation7 + $0xe18] sm:$0xff]  ;;  %v8960_v3 = vld [vmem:[#allocation10 + $0xa8] sm:$0xff]  }
 0x616   :  { %v8598_v19 = vcombine.high %v6145_v6, %v6149_v62  ;;  %v8597_v22 = vcombine.low %v6145_v6, %v6149_v62  ;;  %v8963_v6 = vld [vmem:[#allocation10 + $0xf8] sm:$0xff]  }
 0x617   :  { %v8964_v62 = vld [vmem:[#allocation10 + $0xb8] sm:$0xff]  }
 0x618   :  { %6947 = vmatpush1.bf16.msra.mxu1 %v8603_v20  ;;  %v6153_v20 = vld [vmem:[#allocation7 + $0xe58] sm:$0xff] }
 0x619   :  { %6948 = vmatprep.subr.bf16.mxu1 %v8612_v28  ;;  %v6157_v28 = vld [vmem:[#allocation7 + $0xe78] sm:$0xff] }
 0x61a   :  { %v8606_v23 = vcombine.high %v6153_v20, %v6157_v28  ;;  %v8605_v26 = vcombine.low %v6153_v20, %v6157_v28  ;;  %v124_v20 = vsub.s32 3, %v9337_v51 }
 0x61c   :  { %6949 = vmatpush1.bf16.msra.mxu1 %v8611_v8  ;;  %v6161_v8 = vld [vmem:[#allocation7 + $0xe98] sm:$0xff] }
 0x61d   :  { %6950 = vmatprep.subr.bf16.mxu1 %v8620_v25  ;;  %v6165_v25 = vld [vmem:[#allocation7 + $0xeb8] sm:$0xff] }
 0x61e   :  { %v8614_v27 = vcombine.high %v6161_v8, %v6165_v25  ;;  %v8613_v29 = vcombine.low %v6161_v8, %v6165_v25 }
 0x620   :  { %6951 = vmatpush1.bf16.msra.mxu1 %v8619_v53  ;;  %v6169_v53 = vld [vmem:[#allocation7 + $0xed8] sm:$0xff] }
 0x621   :  { %6952 = vmatprep.subr.bf16.mxu1 %v8628_v0  ;;  %v6173_v0 = vld [vmem:[#allocation7 + $0xef8] sm:$0xff] }
 0x622   :  { %v8622_v12 = vcombine.high %v6169_v53, %v6173_v0  ;;  %v8621_v7 = vcombine.low %v6169_v53, %v6173_v0 }
 0x624   :  { %6953 = vmatpush1.bf16.msra.mxu1 %v8627_v32  ;;  %v6177_v32 = vld [vmem:[#allocation7 + $0xf18] sm:$0xff] }
 0x625   :  { %6954 = vmatprep.subr.bf16.mxu1 %v8636_v34  ;;  %v6181_v34 = vld [vmem:[#allocation7 + $0xf38] sm:$0xff] }
 0x626   :  { %v8630_v9 = vcombine.high %v6177_v32, %v6181_v34  ;;  %v8629_v38 = vcombine.low %v6177_v32, %v6181_v34 }
 0x628   :  { %6955 = vmatpush1.bf16.msra.mxu1 %v8635_v36  ;;  %v6185_v36 = vld [vmem:[#allocation7 + $0xf58] sm:$0xff] }
 0x629   :  { %6956 = vmatprep.subr.bf16.mxu1 %v8644_v37  ;;  %v6189_v37 = vld [vmem:[#allocation7 + $0xf78] sm:$0xff] }
 0x62a   :  { %v8638_v39 = vcombine.high %v6185_v36, %v6189_v37  ;;  %v8637_v43 = vcombine.low %v6185_v36, %v6189_v37  ;;  %v8967_v36 = vld [vmem:[#allocation10 + $0x148] sm:$0xff]  }
 0x62b   :  { %v8968_v37 = vld [vmem:[#allocation10 + $0x108] sm:$0xff]  }
 0x62c   :  { %6957 = vmatpush1.bf16.msra.mxu1 %v8643_v48  ;;  %v6193_v48 = vld [vmem:[#allocation7 + $0xf98] sm:$0xff] }
 0x62d   :  { %6958 = vmatprep.subr.bf16.mxu1 %v8652_v16  ;;  %v6197_v16 = vld [vmem:[#allocation7 + $0xfb8] sm:$0xff] }
 0x62e   :  { %v8646_v44 = vcombine.high %v6193_v48, %v6197_v16  ;;  %v8645_v47 = vcombine.low %v6193_v48, %v6197_v16  ;;  %v8971_v48 = vld [vmem:[#allocation10 + $0x158] sm:$0xff]  }
 0x62f   :  { %v8972_v16 = vld [vmem:[#allocation10 + $0x118] sm:$0xff]  }
 0x630   :  { %6959 = vmatpush1.bf16.msra.mxu1 %v8651_v45  ;;  %v6201_v45 = vld [vmem:[#allocation7 + $0xfd8] sm:$0xff] }
 0x631   :  { %6969 = vmatprep.subr.bf16.mxu1 %v8534_v46  ;;  %v6205_v46 = vld [vmem:[#allocation7 + $0xff8] sm:$0xff] }
 0x632   :  { %v8654_v30 = vcombine.high %v6201_v45, %v6205_v46 }
 0x633   :  { %6961 = vmatmul.mubr.bf16.vlgmr.msra.gmra.mrb[8].mxu1 %v9464_v10 }
 0x634   :  { %6970 = vmatpush1.bf16.msra.mxu1 %v8533_v31  ;;  %7001 = vmatprep.mubr.bf16.mxu1 %v9457_v24  ;;  %v8574_v24 = vcombine.high %v6121_v11, %v6125_v33  ;;  %v8653_v31 = vcombine.low %v6201_v45, %v6205_v46  ;;  %v8975_v45 = vld [vmem:[#allocation10 + $0x168] sm:$0xff]  }
 0x635   :  { %6971 = vmatprep.subr.bf16.mxu1 %v8542_v35  ;;  %v9473_v35 = vld [vmem:[#allocation8] sm:$0xff]  ;;  %v8976_v46 = vld [vmem:[#allocation10 + $0x128] sm:$0xff]  }
 0x636   :  { %v113_v49 = vrot.slane %v9473_v35, %v9340_v52  ;;  %v117_v50 = vrot.slane %v9473_v35, %v9343_v54  ;;  %v8952_v54 = vld [vmem:[#allocation10 + $0x88] sm:$0xff]  }
 0x638   :  { %6972 = vmatpush1.bf16.msra.mxu1 %v8541_v55  ;;  %v1880_v55 = vadd.f32 %v9374_v40, %v113_v49  ;;  %v8953_v40 = vld [vmem:[#allocation10 + $0xd0] sm:$0xff]   ;;  %v8980_v49 = vld [vmem:[#allocation10 + $0x138] sm:$0xff]  }
 0x639   :  { %6973 = vmatprep.subr.bf16.mxu1 %v8550_v56  ;;  %v1881_v56 = vadd.f32 %v9376_v42, %v117_v50  ;;  %v8954_v42 = vld [vmem:[#allocation10 + $0x90] sm:$0xff]   ;;  %v8981_v50 = vld [vmem:[#allocation10 + $0x1c0] sm:$0xff]  }
 0x63c   :  { %6974 = vmatpush1.bf16.msra.mxu1 %v8549_v58 }
 0x63d   :  { %6975 = vmatprep.subr.bf16.mxu1 %v8558_v59 }
 0x640   :  { %6976 = vmatpush1.bf16.msra.mxu1 %v8557_v17 }
 0x641   :  { %6977 = vmatprep.subr.bf16.mxu1 %v8566_v15 }
 0x644   :  { %6978 = vmatpush1.bf16.msra.mxu1 %v8565_v63  ;;  %v8950_v63 = vld [vmem:[#allocation10 + $0x80] sm:$0xff]  }
 0x645   :  { %6979 = vmatprep.subr.bf16.mxu1 %v8574_v24  ;;  %v8951_v24 = vld [vmem:[#allocation10 + $0xc8] sm:$0xff]  }
 0x648   :  { %6980 = vmatpush1.bf16.msra.mxu1 %v8573_v1  ;;  %v8957_v1 = vld [vmem:[#allocation10 + $0xe0] sm:$0xff]  }
 0x649   :  { %6981 = vmatprep.subr.bf16.mxu1 %v8582_v2  ;;  %v8958_v2 = vld [vmem:[#allocation10 + $0xa0] sm:$0xff]  }
 0x64c   :  { %6982 = vmatpush1.bf16.msra.mxu1 %v8581_v4  ;;  %v8961_v4 = vld [vmem:[#allocation10 + $0xf0] sm:$0xff]  }
 0x64d   :  { %6983 = vmatprep.subr.bf16.mxu1 %v8590_v5  ;;  %v8962_v5 = vld [vmem:[#allocation10 + $0xb0] sm:$0xff]  }
 0x650   :  { %6984 = vmatpush1.bf16.msra.mxu1 %v8589_v14  ;;  %v8965_v14 = vld [vmem:[#allocation10 + $0x140] sm:$0xff]  }
 0x651   :  { %6985 = vmatprep.subr.bf16.mxu1 %v8598_v19  ;;  %v120_v19 = vsub.s32 2, %v9337_v51 }
 0x653   :  { %v121_v28 = vrot.slane %v9473_v35, %v120_v19  ;;  %v8996_v19 = vld [vmem:[#allocation10 + $0x1b8] sm:$0xff]  }
 0x654   :  { %6986 = vmatpush1.bf16.msra.mxu1 %v8597_v22  ;;  %v125_v22 = vrot.slane %v9473_v35, %v124_v20  ;;  %v136_v20 = vsub.s32 6, %v9337_v51 }
 0x655   :  { %6987 = vmatprep.subr.bf16.mxu1 %v8606_v23 }
 0x658   :  { %6988 = vmatpush1.bf16.msra.mxu1 %v8605_v26 }
 0x659   :  { %6989 = vmatprep.subr.bf16.mxu1 %v8614_v27 }
 0x65c   :  { %6990 = vmatpush1.bf16.msra.mxu1 %v8613_v29 }
 0x65d   :  { %6991 = vmatprep.subr.bf16.mxu1 %v8622_v12 }
 0x660   :  { %6992 = vmatpush1.bf16.msra.mxu1 %v8621_v7  ;;  %v8966_v7 = vld [vmem:[#allocation10 + $0x100] sm:$0xff]  }
 0x661   :  { %6993 = vmatprep.subr.bf16.mxu1 %v8630_v9 }
 0x664   :  { %6994 = vmatpush1.bf16.msra.mxu1 %v8629_v38  ;;  %v8969_v38 = vld [vmem:[#allocation10 + $0x150] sm:$0xff]  }
 0x665   :  { %6995 = vmatprep.subr.bf16.mxu1 %v8638_v39  ;;  %v8970_v39 = vld [vmem:[#allocation10 + $0x110] sm:$0xff]  }
 0x668   :  { %6996 = vmatpush1.bf16.msra.mxu1 %v8637_v43  ;;  %v8973_v43 = vld [vmem:[#allocation10 + $0x160] sm:$0xff]  }
 0x669   :  { %6997 = vmatprep.subr.bf16.mxu1 %v8646_v44  ;;  %v8974_v44 = vld [vmem:[#allocation10 + $0x120] sm:$0xff]  }
 0x66c   :  { %6998 = vmatpush1.bf16.msra.mxu1 %v8645_v47  ;;  %v8977_v47 = vld [vmem:[#allocation10 + $0x170] sm:$0xff]  }
 0x66d   :  { %6999 = vmatprep.subr.bf16.mxu1 %v8654_v30  ;;  %v8978_v30 = vld [vmem:[#allocation10 + $0x130] sm:$0xff]  }
 0x670   :  { %7000 = vmatpush1.bf16.msra.mxu1 %v8653_v31  ;;  %v8979_v31 = vld [vmem:[#allocation10 + $0x178] sm:$0xff]  }
 0x673   :  { %7002 = vmatmul.mubr.bf16.vlgmr.msra.gmra.mrb[12].mxu1 %v9464_v10 }
 0x686   :  { %v6880_v13 = vpop.f32.mrb[20].mxu1 }
 0x687   :  { %v8813_v57 = vadd.f32 %v6880_v13, %v1880_v55  ;;  %v6882_v58 = vpop.f32.mrb[21].mxu1  ;;  %v128_v55 = vsub.s32 4, %v9337_v51 }
 0x688   :  { %v8815_v59 = vadd.f32 %v6882_v58, %v1881_v56  ;;  %v6884_v60 = vpop.f32.mrb[22].mxu1  ;;  %v132_v56 = vsub.s32 5, %v9337_v51 }
 0x689   :  { %v7018_v61 = vmul.f32 0.01, %v8813_v57  ;;  %v6885_v17 = vpop.f32.mrb[23].mxu1  ;;  %v129_v13 = vrot.slane %v9473_v35, %v128_v55 }
 0x68a   :  { %v7019_v10 = vmul.f32 0.01, %v8815_v59 }
 0x68b   :  { %v7026_v15 = vmax.f32 %v8813_v57, %v7018_v61  ;;  %v133_v57 = vrot.slane %v9473_v35, %v132_v56 }
 0x68c   :  { %v7027_v11 = vmax.f32 %v8815_v59, %v7019_v10 }
 0x68d   :  { %v7034_v52 = vpack.c.bf16 %v7026_v15, %v7026_v15 }
 0x68e   :  { %v7035_v33 = vpack.c.bf16 %v7027_v11, %v7027_v11 }
 0x690   :  { %7593 = vmatprep.mubr.bf16.mxu0 %v7035_v33 }
 0x691   :  { %7594 = vmatmul.mubr.bf16.vlgmr.msra.gmra.mrb[20].mxu0 %v7034_v52 }
 0x692   :  { %8743 = vmatpush3.bf16.msra.mxu0 %v8950_v63 }
 0x693   :  { %8744 = vmatprep.subr.bf16.mxu0 %v8951_v24  ;;  %v8982_v24 = vld [vmem:[#allocation10 + $0x180] sm:$0xff]  }
 0x696   :  { %8745 = vmatpush3.bf16.msra.mxu0 %v8952_v54 }
 0x697   :  { %8746 = vmatprep.subr.bf16.mxu0 %v8953_v40  ;;  %v8983_v40 = vld [vmem:[#allocation10 + $0x1c8] sm:$0xff]  }
 0x69a   :  { %8747 = vmatpush3.bf16.msra.mxu0 %v8954_v42  ;;  %v8984_v42 = vld [vmem:[#allocation10 + $0x188] sm:$0xff]  }
 0x69b   :  { %8748 = vmatprep.subr.bf16.mxu0 %v8955_v18  ;;  %v8985_v18 = vld [vmem:[#allocation10 + $0x1d0] sm:$0xff]  }
 0x69e   :  { %8749 = vmatpush3.bf16.msra.mxu0 %v8956_v21  ;;  %v8986_v21 = vld [vmem:[#allocation10 + $0x190] sm:$0xff]  }
 0x69f   :  { %8750 = vmatprep.subr.bf16.mxu0 %v8957_v1  ;;  %v8987_v1 = vld [vmem:[#allocation10 + $0x1d8] sm:$0xff]  }
 0x6a2   :  { %8751 = vmatpush3.bf16.msra.mxu0 %v8958_v2  ;;  %v8988_v2 = vld [vmem:[#allocation10 + $0x198] sm:$0xff]  }
 0x6a3   :  { %8752 = vmatprep.subr.bf16.mxu0 %v8959_v41  ;;  %v8989_v41 = vld [vmem:[#allocation10 + $0x1e0] sm:$0xff]  }
 0x6a6   :  { %8753 = vmatpush3.bf16.msra.mxu0 %v8960_v3  ;;  %v8990_v3 = vld [vmem:[#allocation10 + $0x1a0] sm:$0xff]  }
 0x6a7   :  { %8754 = vmatprep.subr.bf16.mxu0 %v8961_v4  ;;  %v8991_v4 = vld [vmem:[#allocation10 + $0x1e8] sm:$0xff]  }
 0x6aa   :  { %8755 = vmatpush3.bf16.msra.mxu0 %v8962_v5  ;;  %v8992_v5 = vld [vmem:[#allocation10 + $0x1a8] sm:$0xff]  }
 0x6ab   :  { %8756 = vmatprep.subr.bf16.mxu0 %v8963_v6  ;;  %v8993_v6 = vld [vmem:[#allocation10 + $0x1f0] sm:$0xff]  }
 0x6ae   :  { %8757 = vmatpush3.bf16.msra.mxu0 %v8964_v62  ;;  %v8994_v62 = vld [vmem:[#allocation10 + $0x1b0] sm:$0xff]  }
 0x6af   :  { %8764 = vmatprep.subr.bf16.mxu0 %v8965_v14  ;;  %v8995_v14 = vld [vmem:[#allocation10 + $0x1f8] sm:$0xff]  }
 0x6c6   :  { %v6921_v23 = vpop.f32.mrb[4].mxu1 }
 0x6c7   :  { %v8816_v8 = vadd.f32 %v6921_v23, %v121_v28  ;;  %v6923_v25 = vpop.f32.mrb[5].mxu1  ;;  %v140_v28 = vsub.s32 7, %v9337_v51 }
 0x6c8   :  { %v8817_v26 = vadd.f32 %v6923_v25, %v125_v22  ;;  %v6925_v27 = vpop.f32.mrb[6].mxu1  ;;  %v137_v22 = vrot.slane %v9473_v35, %v136_v20 }
 0x6c9   :  { %v7020_v53 = vmul.f32 0.01, %v8816_v8  ;;  %v6926_v0 = vpop.f32.mrb[7].mxu1  ;;  %v141_v23 = vrot.slane %v9473_v35, %v140_v28  ;;  %v8655_v35 = vld [vmem:[#allocation11] ss:$0 sm:$0xff] }
 0x6ca   :  { %v7021_v29 = vmul.f32 0.01, %v8817_v26 }
 0x6cb   :  { %v7028_v12 = vmax.f32 %v8816_v8, %v7020_v53 }
 0x6cc   :  { %v7029_v32 = vmax.f32 %v8817_v26, %v7021_v29 }
 0x6cd   :  { %v7036_v9 = vpack.c.bf16 %v7028_v12, %v7028_v12 }
 0x6ce   :  { %v7037_v34 = vpack.c.bf16 %v7029_v32, %v7029_v32 }
 0x6d0   :  { %7633 = vmatprep.mubr.bf16.mxu0 %v7037_v34 }
 0x6d1   :  { %7634 = vmatmul.mubr.bf16.vlgmr.msra.gmra.mrb[24].mxu0 %v7036_v9 }
 0x6d2   :  { %8765 = vmatpush3.bf16.msra.mxu0 %v8966_v7 }
 0x6d3   :  { %8766 = vmatprep.subr.bf16.mxu0 %v8967_v36 }
 0x6d6   :  { %8767 = vmatpush3.bf16.msra.mxu0 %v8968_v37 }
 0x6d7   :  { %8768 = vmatprep.subr.bf16.mxu0 %v8969_v38 }
 0x6da   :  { %8769 = vmatpush3.bf16.msra.mxu0 %v8970_v39 }
 0x6db   :  { %8770 = vmatprep.subr.bf16.mxu0 %v8971_v48 }
 0x6de   :  { %8771 = vmatpush3.bf16.msra.mxu0 %v8972_v16 }
 0x6df   :  { %8772 = vmatprep.subr.bf16.mxu0 %v8973_v43 }
 0x6e2   :  { %8773 = vmatpush3.bf16.msra.mxu0 %v8974_v44 }
 0x6e3   :  { %8774 = vmatprep.subr.bf16.mxu0 %v8975_v45 }
 0x6e6   :  { %8775 = vmatpush3.bf16.msra.mxu0 %v8976_v46 }
 0x6e7   :  { %8776 = vmatprep.subr.bf16.mxu0 %v8977_v47 }
 0x6ea   :  { %8777 = vmatpush3.bf16.msra.mxu0 %v8978_v30 }
 0x6eb   :  { %8778 = vmatprep.subr.bf16.mxu0 %v8979_v31 }
 0x6ee   :  { %8779 = vmatpush3.bf16.msra.mxu0 %v8980_v49 }
 0x6ef   :  { %8786 = vmatprep.subr.bf16.mxu0 %v8981_v50 }
 0x706   :  { %v6962_v58 = vpop.f32.mrb[8].mxu1 }
 0x707   :  { %v8818_v59 = vadd.f32 %v6962_v58, %v129_v13  ;;  %v6964_v60 = vpop.f32.mrb[9].mxu1 }
 0x708   :  { %v8819_v61 = vadd.f32 %v6964_v60, %v133_v57  ;;  %v6966_v17 = vpop.f32.mrb[10].mxu1 }
 0x709   :  { %v7022_v10 = vmul.f32 0.01, %v8818_v59  ;;  %v6967_v15 = vpop.f32.mrb[11].mxu1 }
 0x70a   :  { %v7023_v11 = vmul.f32 0.01, %v8819_v61 }
 0x70b   :  { %v7030_v33 = vmax.f32 %v8818_v59, %v7022_v10 }
 0x70c   :  { %v7031_v63 = vmax.f32 %v8819_v61, %v7023_v11 }
 0x70d   :  { %v7038_v54 = vpack.c.bf16 %v7030_v33, %v7030_v33 }
 0x70e   :  { %v7039_v52 = vpack.c.bf16 %v7031_v63, %v7031_v63 }
 0x710   :  { %7673 = vmatprep.mubr.bf16.mxu0 %v7039_v52 }
 0x711   :  { %7674 = vmatmul.mubr.bf16.vlgmr.msra.gmra.mrb[28].mxu0 %v7038_v54 }
 0x712   :  { %8787 = vmatpush3.bf16.msra.mxu0 %v8982_v24 }
 0x713   :  { %8788 = vmatprep.subr.bf16.mxu0 %v8983_v40 }
 0x716   :  { %8789 = vmatpush3.bf16.msra.mxu0 %v8984_v42 }
 0x717   :  { %8790 = vmatprep.subr.bf16.mxu0 %v8985_v18 }
 0x71a   :  { %8791 = vmatpush3.bf16.msra.mxu0 %v8986_v21 }
 0x71b   :  { %8792 = vmatprep.subr.bf16.mxu0 %v8987_v1 }
 0x71e   :  { %8793 = vmatpush3.bf16.msra.mxu0 %v8988_v2 }
 0x71f   :  { %8794 = vmatprep.subr.bf16.mxu0 %v8989_v41 }
 0x722   :  { %8795 = vmatpush3.bf16.msra.mxu0 %v8990_v3 }
 0x723   :  { %8796 = vmatprep.subr.bf16.mxu0 %v8991_v4 }
 0x726   :  { %8797 = vmatpush3.bf16.msra.mxu0 %v8992_v5 }
 0x727   :  { %8798 = vmatprep.subr.bf16.mxu0 %v8993_v6 }
 0x72a   :  { %8799 = vmatpush3.bf16.msra.mxu0 %v8994_v62 }
 0x72b   :  { %8800 = vmatprep.subr.bf16.mxu0 %v8995_v14 }
 0x72e   :  { %8801 = vmatpush3.bf16.msra.mxu0 %v8996_v19 }
 0x746   :  { %v7003_v8 = vpop.f32.mrb[12].mxu1 }
 0x747   :  { %v8820_v25 = vadd.f32 %v7003_v8, %v137_v22  ;;  %v7005_v26 = vpop.f32.mrb[13].mxu1 }
 0x748   :  { %v8821_v27 = vadd.f32 %v7005_v26, %v141_v23  ;;  %v7007_v53 = vpop.f32.mrb[14].mxu1 }
 0x749   :  { %v7024_v0 = vmul.f32 0.01, %v8820_v25  ;;  %v7008_v29 = vpop.f32.mrb[15].mxu1 }
 0x74a   :  { %v7025_v12 = vmul.f32 0.01, %v8821_v27 }
 0x74b   :  { %v7032_v32 = vmax.f32 %v8820_v25, %v7024_v0 }
 0x74c   :  { %v7033_v34 = vmax.f32 %v8821_v27, %v7025_v12 }
 0x74d   :  { %v7040_v9 = vpack.c.bf16 %v7032_v32, %v7032_v32 }
 0x74e   :  { %v7041_v7 = vpack.c.bf16 %v7033_v34, %v7033_v34 }
 0x750   :  { %7713 = vmatprep.mubr.bf16.mxu0 %v7041_v7 }
 0x751   :  { %7714 = vmatmul.mubr.bf16.vlgmr.msra.gmra.mrb[32].mxu0 %v7040_v9 }
 0x764   :  { %v8736_v36 = vpop.f32.mrb[20].mxu0 }
 0x765   :  { %v8737_v51 = vpop.f32.mrb[21].mxu0 }
 0x766   :  { %v8738_v37 = vadd.f32 %v8737_v51, %v8736_v36  ;;  %v8739_v38 = vpop.f32.mrb[22].mxu0 }
 0x767   :  { %v8740_v39 = vpop.f32.mrb[23].mxu0 }
 0x768   :  { %v7596_v43 = vadd.f32 %v8738_v37, %v8655_v35 }
 0x7a4   :  { %v8758_v48 = vpop.f32.mrb[24].mxu0 }
 0x7a5   :  { %v8759_v16 = vpop.f32.mrb[25].mxu0 }
 0x7a6   :  { %v8760_v44 = vadd.f32 %v8759_v16, %v8758_v48  ;;  %v8761_v45 = vpop.f32.mrb[26].mxu0 }
 0x7a7   :  { %v8762_v46 = vpop.f32.mrb[27].mxu0 }
 0x7a8   :  { %v7636_v47 = vadd.f32 %v8760_v44, %v7596_v43 }
 0x7e4   :  { %v8780_v30 = vpop.f32.mrb[28].mxu0 }
 0x7e5   :  { %v8781_v31 = vpop.f32.mrb[29].mxu0 }
 0x7e6   :  { %v8782_v49 = vadd.f32 %v8781_v31, %v8780_v30  ;;  %v8783_v50 = vpop.f32.mrb[30].mxu0 }
 0x7e7   :  { %v8784_v55 = vpop.f32.mrb[31].mxu0 }
 0x7e8   :  { %v7676_v56 = vadd.f32 %v8782_v49, %v7636_v47 }
 0x824   :  { %v8802_v13 = vpop.f32.mrb[32].mxu0 }
 0x825   :  { %v8803_v57 = vpop.f32.mrb[33].mxu0 }
 0x826   :  { %v8804_v58 = vadd.f32 %v8803_v57, %v8802_v13  ;;  %v8805_v59 = vpop.f32.mrb[34].mxu0 }
 0x827   :  { %v8806_v60 = vpop.f32.mrb[35].mxu0 }
 0x828   :  { %v7716_v61 = vadd.f32 %v8804_v58, %v7676_v56 }
 0x82a   :  { %7721 = vst [vmem:[#allocation13] sm:$0xff] %v7716_v61 }
 0x82b   :  { %9142 = shalt.err (!%p9139_p10)
}
 0x82c   :  { %s9143_s13 = scalar_lea.hbm %s9512_s7, 128 }
 0x82d   :  { %p9144_p11 = scmp.ne.s32.totalorder %s9512_s7, %s9143_s13  ;;  %p9147_p12 = scmp.lt.u32.totalorder %s9143_s13, %s9512_s7 }
 0x82f   :  { %p9149_p13 = pnand %p9147_p12, %p9144_p11 }
 0x831   :  { %9152 = shalt.err (!%p9149_p13)
}
 0x832   :  { %7731 = dma.vmem_to_hbm [thread:$0]  %s7729_s3, 128, %s9512_s7, [#allocation4]  }
 0x833   :  { %9161 = dma.done.wait [#allocation4], 128  }
 0x834   :  { %9162 = vsyncadd [#allocation4], 4294967168 }
 0x835   :  { %7735 = vsyncpa [#allocation3], 1 }
 0x836   :  { %7736 = vsyncpa [#allocation6], 1 }
 0x837   :  { %7737 = vsyncpa [#allocation9], 1 }
 0x838   :  { %7738 = vsyncpa [#allocation12], 1 }
 0x839   :  { %7739 = vsyncpa [#allocation4], 1 }

</bundles_post_ra>
